<compile_context>
chip_gen: v7x
topology: tpu7x:2x2x1
jax: 0.10.0
libtpu: 0.0.40
codegen_flags: <defaults>
</compile_context>

<pallas_src>
import functools

import jax
import jax.numpy as jnp
from jax import lax
from jax.experimental import pallas as pl
from jax.experimental.pallas import tpu as pltpu

# Globals mirroring the PyTorch script
NUM_HIDDEN = 10
NUM_LAYERS = 5

HP = 32                  # per-gate padded hidden width (lanes)
GW = 4 * HP              # packed gate width = 128 lanes = one f32 vreg
LW = 2 * HP + 8          # rows per layer in the packed weight slab (Wx, Wh, bias)


def _sigmoid(x):
    # Exact rewrite of the logistic via tanh: one EUP push instead of exp+recip.
    return 0.5 * jnp.tanh(0.5 * x) + 0.5


def _gate(v, g):
    """Extract lane block g (width HP) of a (Bp, GW) packed value into lanes [0, HP)."""
    if g:
        v = pltpu.roll(v, shift=GW - g * HP, axis=1)     # XLU lane rotate (jnp.roll semantics)
    return v[:, :HP]


# ---------------------------------------------------------------------------
# Fused Pallas kernel: 5 LSTM layers + final Linear in one pallas_call.
# ---------------------------------------------------------------------------
def _fused_mv_lstm_kernel(x_ref, w_ref, hc0_ref, out_ref, y_scr, xg_scr,
                          *, num_layers, seq_len, batch):
    """Fused multi-layer LSTM + Linear forward (everything gate-packed on lanes).

    x_ref  : (T*Bp, HP)          time-major input, features in cols [0, F), rest 0
    w_ref  : (L*LW + 8, GW)      packed weight slab; per layer l at row base l*LW:
                                   rows [0,HP)   = W_ih^T  per-gate lane-packed
                                   rows [HP,2HP) = W_hh^T  per-gate lane-packed
                                   row  2HP      = combined bias, lane-packed
                                 final block: row L*LW = fc weight row,
                                              row L*LW+1 col 0 = fc bias
    hc0_ref: (2*L*Bp, HP)        h0 (layers 0..L-1) then c0, batch/hidden padded
    out_ref: ((2L+1)*Bp, HP)     h_n (L blocks), c_n (L blocks), then Linear out
                                 broadcast across lanes (wrapper takes col 0)
    y_scr  : VMEM (T*Bp, HP)     current layer's output sequence (on-chip only)
    xg_scr : VMEM (T*Bp, GW)     hoisted, lane-packed input pre-activations
    """
    L, T, Bp = num_layers, seq_len, batch
    h_last = None

    for l in range(L):
        base = l * LW
        wx = w_ref[base:base + HP, :]                          # (HP, GW)
        wh = w_ref[base + HP:base + 2 * HP, :]                 # (HP, GW)
        bias = w_ref[base + 2 * HP:base + 2 * HP + 1, :]       # (1, GW)

        # Hoisted input projection: ONE lane-packed matmul per layer, bias folded
        # in.  Off the serial recurrence path.
        xin = x_ref[...] if l == 0 else y_scr[...]
        xg_scr[...] = jnp.dot(xin, wx,
                              preferred_element_type=jnp.float32) + bias

        def step(t, carry):
            h, c = carry                                       # (Bp, HP) each
            r0 = pl.multiple_of(t * Bp, Bp)                    # 8-aligned rows
            # ONE recurrent MXU dot per cell; gates packed [i|f|g|o] on lanes.
            gates = xg_scr[pl.ds(r0, Bp), :] + jnp.dot(
                h, wh, preferred_element_type=jnp.float32)     # (Bp, GW)
            sig = _sigmoid(gates)                              # 1 EUP push (full vreg)
            tnh = jnp.tanh(gates)                              # 1 EUP push (full vreg)
            i_g = _gate(sig, 0)
            f_g = _gate(sig, 1)
            g_g = _gate(tnh, 2)
            o_g = _gate(sig, 3)
            c_new = f_g * c + i_g * g_g
            h_new = o_g * jnp.tanh(c_new)                      # 1 EUP push
            y_scr[pl.ds(r0, Bp), :] = h_new                    # stays in VMEM
            return h_new, c_new

        h0 = hc0_ref[l * Bp:(l + 1) * Bp, :]
        c0 = hc0_ref[(L + l) * Bp:(L + l + 1) * Bp, :]
        h_n, c_n = lax.fori_loop(0, T, step, (h0, c0), unroll=True)

        out_ref[l * Bp:(l + 1) * Bp, :] = h_n
        out_ref[(L + l) * Bp:(L + l + 1) * Bp, :] = c_n
        h_last = h_n

    # Final Linear on the last layer's last hidden state (== lstm_out[:, -1, :]).
    fc_base = L * LW
    fc_row = w_ref[fc_base:fc_base + 1, :HP]                   # (1, HP)
    fc_b = w_ref[fc_base + 1:fc_base + 2, 0:1]                 # (1, 1)
    out_val = jnp.sum(h_last * fc_row, axis=-1, keepdims=True) + fc_b   # (Bp, 1)
    out_ref[2 * L * Bp:(2 * L + 1) * Bp, :] = jnp.broadcast_to(out_val, (Bp, HP))


# ---------------------------------------------------------------------------
# Host-side packing (layout plumbing, not compute)
# ---------------------------------------------------------------------------
def _pack_weights(params, n_features):
    """All weights/biases + final Linear -> one lane-dense (L*LW + 8, 128) slab."""
    H, L = NUM_HIDDEN, NUM_LAYERS
    w_all = jnp.zeros((L * LW + 8, GW), jnp.float32)
    for l in range(L):
        d_in = n_features if l == 0 else H
        w_ih, w_hh, b = params["w_ih"][l], params["w_hh"][l], params["b"][l]
        base = l * LW
        for g in range(4):                 # PyTorch gate order: i, f, g, o
            col = g * HP
            w_all = w_all.at[base:base + d_in, col:col + H].set(
                w_ih[g * H:(g + 1) * H, :].T)
            w_all = w_all.at[base + HP:base + HP + H, col:col + H].set(
                w_hh[g * H:(g + 1) * H, :].T)
            w_all = w_all.at[base + 2 * HP, col:col + H].set(
                b[0, g * H:(g + 1) * H])
    w_all = w_all.at[L * LW, :H].set(params["fc_w"][0, :])
    w_all = w_all.at[L * LW + 1, 0].set(params["fc_b"][0, 0])
    return w_all


# ---------------------------------------------------------------------------
# Wrapper
# ---------------------------------------------------------------------------
@jax.jit
def mv_lstm_forward(params, x, h):
    """Equivalent of MV_LSTM.forward(x, h).

    x: (B, T, n_features); h = (h0, c0), each (num_layers, B, H).
    returns (out_linear (B, 1), (h_n, c_n)).
    """
    h0_all, c0_all = h
    B, T, F = x.shape
    H, L = NUM_HIDDEN, NUM_LAYERS
    Bp = max(8, ((B + 7) // 8) * 8)        # pad batch to the 8-sublane width

    # Time-major, batch- and feature-padded, flattened to 2-D (row t*Bp + b).
    x_p = (jnp.zeros((T, Bp, HP), jnp.float32)
           .at[:, :B, :F].set(jnp.transpose(x, (1, 0, 2)).astype(jnp.float32))
           .reshape(T * Bp, HP))
    # Padded rows/cols of h0/c0 are zero -> they stay exactly zero in-kernel.
    hc0 = (jnp.zeros((2 * L, Bp, HP), jnp.float32)
           .at[:L, :B, :H].set(h0_all.astype(jnp.float32))
           .at[L:, :B, :H].set(c0_all.astype(jnp.float32))
           .reshape(2 * L * Bp, HP))
    w_all = _pack_weights(params, F)       # in practice: pack once, reuse

    kernel = functools.partial(_fused_mv_lstm_kernel,
                               num_layers=L, seq_len=T, batch=Bp)
    vmem = pl.BlockSpec(memory_space=pltpu.MemorySpace.VMEM)
    out_slab = pl.pallas_call(
        kernel,
        out_shape=jax.ShapeDtypeStruct(((2 * L + 1) * Bp, HP), jnp.float32),
        in_specs=[vmem, vmem, vmem],
        out_specs=vmem,
        scratch_shapes=[pltpu.VMEM((T * Bp, HP), jnp.float32),    # y_scr
                        pltpu.VMEM((T * Bp, GW), jnp.float32)],   # xg_scr
    )(x_p, w_all, hc0)

    h_n = out_slab[:L * Bp].reshape(L, Bp, HP)[:, :B, :H]
    c_n = out_slab[L * Bp:2 * L * Bp].reshape(L, Bp, HP)[:, :B, :H]
    out = out_slab[2 * L * Bp:2 * L * Bp + B, :1]
    return out, (h_n, c_n)


# ---------------------------------------------------------------------------
# Deterministic parameter construction (PyTorch-like uniform init)
# ---------------------------------------------------------------------------
def make_params(key, n_features, hidden, num_layers):
    bound = 1.0 / jnp.sqrt(jnp.float32(hidden))
    w_ih, w_hh, b = [], [], []
    for l in range(num_layers):
        d_in = n_features if l == 0 else hidden
        key, k1, k2, k3, k4 = jax.random.split(key, 5)
        w_ih.append(jax.random.uniform(k1, (4 * hidden, d_in), jnp.float32,
                                       -bound, bound))
        w_hh.append(jax.random.uniform(k2, (4 * hidden, hidden), jnp.float32,
                                       -bound, bound))
        b_ih = jax.random.uniform(k3, (4 * hidden,), jnp.float32, -bound, bound)
        b_hh = jax.random.uniform(k4, (4 * hidden,), jnp.float32, -bound, bound)
        b.append((b_ih + b_hh)[None, :])      # (1, 4H) combined bias
    key, k5, k6 = jax.random.split(key, 3)
    fc_w = jax.random.uniform(k5, (1, hidden), jnp.float32, -bound, bound)
    fc_b = jax.random.uniform(k6, (1, 1), jnp.float32, -bound, bound)
    return {"w_ih": w_ih, "w_hh": w_hh, "b": b, "fc_w": fc_w, "fc_b": fc_b}


def init_hidden(batch_size, hidden, num_layers):
    return (jnp.zeros((num_layers, batch_size, hidden), jnp.float32),
            jnp.zeros((num_layers, batch_size, hidden), jnp.float32))


# ---------------------------------------------------------------------------
# Pure-JAX reference (mirrors the PyTorch module; numerical sanity check)
# ---------------------------------------------------------------------------
def mv_lstm_reference(params, x, h):
    h0_all, c0_all = h
    layer_in = x
    hn_list, cn_list = [], []
    H = NUM_HIDDEN
    for l in range(NUM_LAYERS):
        w_ih, w_hh, b = params["w_ih"][l], params["w_hh"][l], params["b"][l]

        def step(carry, x_t):
            hh, cc = carry
            gates = x_t @ w_ih.T + hh @ w_hh.T + b
            i_g = jax.nn.sigmoid(gates[:, 0 * H:1 * H])
            f_g = jax.nn.sigmoid(gates[:, 1 * H:2 * H])
            g_g = jnp.tanh(gates[:, 2 * H:3 * H])
            o_g = jax.nn.sigmoid(gates[:, 3 * H:4 * H])
            cc = f_g * cc + i_g * g_g
            hh = o_g * jnp.tanh(cc)
            return (hh, cc), hh

        (h_n, c_n), ys = lax.scan(step, (h0_all[l], c0_all[l]),
                                  jnp.swapaxes(layer_in, 0, 1))
        layer_in = jnp.swapaxes(ys, 0, 1)
        hn_list.append(h_n)
        cn_list.append(c_n)
    out_last = layer_in[:, -1, :]
    out_lin = out_last @ params["fc_w"].T + params["fc_b"]
    return out_lin, (jnp.stack(hn_list, 0), jnp.stack(cn_list, 0))


# ---------------------------------------------------------------------------
if __name__ == "__main__":
    key = jax.random.PRNGKey(0)
    batch = 2
    seq_len = 8        # "lookback" (small for the example)
    n_features = 4

    key, kx, kp = jax.random.split(key, 3)
    x = jax.random.normal(kx, (batch, seq_len, n_features), jnp.float32)
    params = make_params(kp, n_features, NUM_HIDDEN, NUM_LAYERS)
    h = init_hidden(batch, NUM_HIDDEN, NUM_LAYERS)

    out, (h_n, c_n) = mv_lstm_forward(params, x, h)
    jax.block_until_ready((out, h_n, c_n))

    ref_out, (ref_hn, ref_cn) = mv_lstm_reference(params, x, h)
    assert out.shape == (batch, 1)
    assert h_n.shape == (NUM_LAYERS, batch, NUM_HIDDEN)
    assert c_n.shape == (NUM_LAYERS, batch, NUM_HIDDEN)
    # Tolerance 1e-4: the kernel's tanh-form sigmoid (mathematically exact)
    # differs from jax.nn.sigmoid at the ~1e-6 level after 40 recurrent cells;
    # real layout/gate-order bugs would show up at >=1e-2.
    assert jnp.allclose(out, ref_out, atol=1e-4, rtol=1e-4)
    assert jnp.allclose(h_n, ref_hn, atol=1e-4, rtol=1e-4)
    assert jnp.allclose(c_n, ref_cn, atol=1e-4, rtol=1e-4)

    print("KERNEL_OK")
</pallas_src>

<mosaic_0001>
module attributes {stable_mosaic.version = 11 : i64} {
  func.func @_fused_mv_lstm_kernel(%arg0: memref<64x32xf32, #tpu.memory_space<vmem>>, %arg1: memref<368x128xf32, #tpu.memory_space<vmem>>, %arg2: memref<80x32xf32, #tpu.memory_space<vmem>>, %arg3: memref<88x32xf32, #tpu.memory_space<vmem>>, %arg4: memref<64x32xf32, #tpu.memory_space<vmem>>, %arg5: memref<64x128xf32, #tpu.memory_space<vmem>>) attributes {dimension_semantics = [], scalar_prefetch = 0 : i64, scratch_operands = 2 : i64, tpu.core_type = #tpu.core_type<tc>} {
    %c0 = arith.constant 0 : index
    %c0_0 = arith.constant 0 : index
    %0 = vector.load %arg1[%c0, %c0_0] : memref<368x128xf32, #tpu.memory_space<vmem>>, vector<32x128xf32>
    %c32 = arith.constant 32 : index
    %c0_1 = arith.constant 0 : index
    %1 = vector.load %arg1[%c32, %c0_1] : memref<368x128xf32, #tpu.memory_space<vmem>>, vector<32x128xf32>
    %c64 = arith.constant 64 : index
    %c0_2 = arith.constant 0 : index
    %2 = vector.load %arg1[%c64, %c0_2] : memref<368x128xf32, #tpu.memory_space<vmem>>, vector<1x128xf32>
    %c0_3 = arith.constant 0 : index
    %c0_4 = arith.constant 0 : index
    %3 = vector.load %arg0[%c0_3, %c0_4] : memref<64x32xf32, #tpu.memory_space<vmem>>, vector<64x32xf32>
    %cst = arith.constant dense<0.000000e+00> : vector<64x128xf32>
    %4 = tpu.matmul %3, %0, %cst {dimension_numbers = #tpu.dot_dimension_numbers<[1], [0], [0], [1], [0, 0, 1, 1], [], []>} : vector<64x32xf32>, vector<32x128xf32>, vector<64x128xf32> -> vector<64x128xf32>
    %5 = vector.broadcast %2 : vector<1x128xf32> to vector<64x128xf32>
    %6 = arith.addf %4, %5 : vector<64x128xf32>
    %c0_5 = arith.constant 0 : index
    %c0_6 = arith.constant 0 : index
    %7 = vector.load %arg5[%c0_5, %c0_6] : memref<64x128xf32, #tpu.memory_space<vmem>>, vector<64x128xf32>
    tpu.vector_store %arg5[%c0_5, %c0_6], %6 {strides = array<i32>} : memref<64x128xf32, #tpu.memory_space<vmem>>, vector<64x128xf32>,
    %c0_7 = arith.constant 0 : index
    %c0_8 = arith.constant 0 : index
    %8 = vector.load %arg2[%c0_7, %c0_8] : memref<80x32xf32, #tpu.memory_space<vmem>>, vector<8x32xf32>
    %c40 = arith.constant 40 : index
    %c0_9 = arith.constant 0 : index
    %9 = vector.load %arg2[%c40, %c0_9] : memref<80x32xf32, #tpu.memory_space<vmem>>, vector<8x32xf32>
    %c0_i32 = arith.constant 0 : i32
    %c8_i32 = arith.constant 8 : i32
    %10 = arith.muli %c0_i32, %c8_i32 : i32
    %11 = tpu.assume_multiple %10, 8 : i32
    %12 = arith.index_cast %11 : i32 to index
    %c0_10 = arith.constant 0 : index
    %13 = vector.load %arg5[%12, %c0_10] : memref<64x128xf32, #tpu.memory_space<vmem>>, vector<8x128xf32>
    %cst_11 = arith.constant dense<0.000000e+00> : vector<8x128xf32>
    %14 = tpu.matmul %8, %1, %cst_11 {dimension_numbers = #tpu.dot_dimension_numbers<[1], [0], [0], [1], [0, 0, 1, 1], [], []>} : vector<8x32xf32>, vector<32x128xf32>, vector<8x128xf32> -> vector<8x128xf32>
    %15 = arith.addf %13, %14 : vector<8x128xf32>
    %cst_12 = arith.constant 5.000000e-01 : f32
    %16 = vector.broadcast %cst_12 : f32 to vector<8x128xf32>
    %17 = arith.mulf %16, %15 : vector<8x128xf32>
    %18 = math.tanh %17 : vector<8x128xf32>
    %cst_13 = arith.constant 5.000000e-01 : f32
    %19 = vector.broadcast %cst_13 : f32 to vector<8x128xf32>
    %20 = arith.mulf %19, %18 : vector<8x128xf32>
    %cst_14 = arith.constant 5.000000e-01 : f32
    %21 = vector.broadcast %cst_14 : f32 to vector<8x128xf32>
    %22 = arith.addf %20, %21 : vector<8x128xf32>
    %23 = math.tanh %15 : vector<8x128xf32>
    %24 = vector.extract_strided_slice %22 {offsets = [0, 0], sizes = [8, 32], strides = [1, 1]} : vector<8x128xf32> to vector<8x32xf32>
    %c96_i32 = arith.constant 96 : i32
    %25 = tpu.dynamic_rotate %22 by %c96_i32 dim 1 : vector<8x128xf32>, i32 -> vector<8x128xf32>
    %26 = vector.extract_strided_slice %25 {offsets = [0, 0], sizes = [8, 32], strides = [1, 1]} : vector<8x128xf32> to vector<8x32xf32>
    %c64_i32 = arith.constant 64 : i32
    %27 = tpu.dynamic_rotate %23 by %c64_i32 dim 1 : vector<8x128xf32>, i32 -> vector<8x128xf32>
    %28 = vector.extract_strided_slice %27 {offsets = [0, 0], sizes = [8, 32], strides = [1, 1]} : vector<8x128xf32> to vector<8x32xf32>
    %c32_i32 = arith.constant 32 : i32
    %29 = tpu.dynamic_rotate %22 by %c32_i32 dim 1 : vector<8x128xf32>, i32 -> vector<8x128xf32>
    %30 = vector.extract_strided_slice %29 {offsets = [0, 0], sizes = [8, 32], strides = [1, 1]} : vector<8x128xf32> to vector<8x32xf32>
    %31 = arith.mulf %26, %9 : vector<8x32xf32>
    %32 = arith.mulf %24, %28 : vector<8x32xf32>
    %33 = arith.addf %31, %32 : vector<8x32xf32>
    %34 = math.tanh %33 : vector<8x32xf32>
    %35 = arith.mulf %30, %34 : vector<8x32xf32>
    %36 = arith.index_cast %11 : i32 to index
    %c0_15 = arith.constant 0 : index
    %37 = vector.load %arg4[%36, %c0_15] : memref<64x32xf32, #tpu.memory_space<vmem>>, vector<8x32xf32>
    tpu.vector_store %arg4[%36, %c0_15], %35 {strides = array<i32>} : memref<64x32xf32, #tpu.memory_space<vmem>>, vector<8x32xf32>,
    %c1_i32 = arith.constant 1 : i32
    %c8_i32_16 = arith.constant 8 : i32
    %38 = arith.muli %c1_i32, %c8_i32_16 : i32
    %39 = tpu.assume_multiple %38, 8 : i32
    %40 = arith.index_cast %39 : i32 to index
    %c0_17 = arith.constant 0 : index
    %41 = vector.load %arg5[%40, %c0_17] : memref<64x128xf32, #tpu.memory_space<vmem>>, vector<8x128xf32>
    %cst_18 = arith.constant dense<0.000000e+00> : vector<8x128xf32>
    %42 = tpu.matmul %35, %1, %cst_18 {dimension_numbers = #tpu.dot_dimension_numbers<[1], [0], [0], [1], [0, 0, 1, 1], [], []>} : vector<8x32xf32>, vector<32x128xf32>, vector<8x128xf32> -> vector<8x128xf32>
    %43 = arith.addf %41, %42 : vector<8x128xf32>
    %cst_19 = arith.constant 5.000000e-01 : f32
    %44 = vector.broadcast %cst_19 : f32 to vector<8x128xf32>
    %45 = arith.mulf %44, %43 : vector<8x128xf32>
    %46 = math.tanh %45 : vector<8x128xf32>
    %cst_20 = arith.constant 5.000000e-01 : f32
    %47 = vector.broadcast %cst_20 : f32 to vector<8x128xf32>
    %48 = arith.mulf %47, %46 : vector<8x128xf32>
    %cst_21 = arith.constant 5.000000e-01 : f32
    %49 = vector.broadcast %cst_21 : f32 to vector<8x128xf32>
    %50 = arith.addf %48, %49 : vector<8x128xf32>
    %51 = math.tanh %43 : vector<8x128xf32>
    %52 = vector.extract_strided_slice %50 {offsets = [0, 0], sizes = [8, 32], strides = [1, 1]} : vector<8x128xf32> to vector<8x32xf32>
    %c96_i32_22 = arith.constant 96 : i32
    %53 = tpu.dynamic_rotate %50 by %c96_i32_22 dim 1 : vector<8x128xf32>, i32 -> vector<8x128xf32>
    %54 = vector.extract_strided_slice %53 {offsets = [0, 0], sizes = [8, 32], strides = [1, 1]} : vector<8x128xf32> to vector<8x32xf32>
    %c64_i32_23 = arith.constant 64 : i32
    %55 = tpu.dynamic_rotate %51 by %c64_i32_23 dim 1 : vector<8x128xf32>, i32 -> vector<8x128xf32>
    %56 = vector.extract_strided_slice %55 {offsets = [0, 0], sizes = [8, 32], strides = [1, 1]} : vector<8x128xf32> to vector<8x32xf32>
    %c32_i32_24 = arith.constant 32 : i32
    %57 = tpu.dynamic_rotate %50 by %c32_i32_24 dim 1 : vector<8x128xf32>, i32 -> vector<8x128xf32>
    %58 = vector.extract_strided_slice %57 {offsets = [0, 0], sizes = [8, 32], strides = [1, 1]} : vector<8x128xf32> to vector<8x32xf32>
    %59 = arith.mulf %54, %33 : vector<8x32xf32>
    %60 = arith.mulf %52, %56 : vector<8x32xf32>
    %61 = arith.addf %59, %60 : vector<8x32xf32>
    %62 = math.tanh %61 : vector<8x32xf32>
    %63 = arith.mulf %58, %62 : vector<8x32xf32>
    %64 = arith.index_cast %39 : i32 to index
    %c0_25 = arith.constant 0 : index
    %65 = vector.load %arg4[%64, %c0_25] : memref<64x32xf32, #tpu.memory_space<vmem>>, vector<8x32xf32>
    tpu.vector_store %arg4[%64, %c0_25], %63 {strides = array<i32>} : memref<64x32xf32, #tpu.memory_space<vmem>>, vector<8x32xf32>,
    %c2_i32 = arith.constant 2 : i32
    %c8_i32_26 = arith.constant 8 : i32
    %66 = arith.muli %c2_i32, %c8_i32_26 : i32
    %67 = tpu.assume_multiple %66, 8 : i32
    %68 = arith.index_cast %67 : i32 to index
    %c0_27 = arith.constant 0 : index
    %69 = vector.load %arg5[%68, %c0_27] : memref<64x128xf32, #tpu.memory_space<vmem>>, vector<8x128xf32>
    %cst_28 = arith.constant dense<0.000000e+00> : vector<8x128xf32>
    %70 = tpu.matmul %63, %1, %cst_28 {dimension_numbers = #tpu.dot_dimension_numbers<[1], [0], [0], [1], [0, 0, 1, 1], [], []>} : vector<8x32xf32>, vector<32x128xf32>, vector<8x128xf32> -> vector<8x128xf32>
    %71 = arith.addf %69, %70 : vector<8x128xf32>
    %cst_29 = arith.constant 5.000000e-01 : f32
    %72 = vector.broadcast %cst_29 : f32 to vector<8x128xf32>
    %73 = arith.mulf %72, %71 : vector<8x128xf32>
    %74 = math.tanh %73 : vector<8x128xf32>
    %cst_30 = arith.constant 5.000000e-01 : f32
    %75 = vector.broadcast %cst_30 : f32 to vector<8x128xf32>
    %76 = arith.mulf %75, %74 : vector<8x128xf32>
    %cst_31 = arith.constant 5.000000e-01 : f32
    %77 = vector.broadcast %cst_31 : f32 to vector<8x128xf32>
    %78 = arith.addf %76, %77 : vector<8x128xf32>
    %79 = math.tanh %71 : vector<8x128xf32>
    %80 = vector.extract_strided_slice %78 {offsets = [0, 0], sizes = [8, 32], strides = [1, 1]} : vector<8x128xf32> to vector<8x32xf32>
    %c96_i32_32 = arith.constant 96 : i32
    %81 = tpu.dynamic_rotate %78 by %c96_i32_32 dim 1 : vector<8x128xf32>, i32 -> vector<8x128xf32>
    %82 = vector.extract_strided_slice %81 {offsets = [0, 0], sizes = [8, 32], strides = [1, 1]} : vector<8x128xf32> to vector<8x32xf32>
    %c64_i32_33 = arith.constant 64 : i32
    %83 = tpu.dynamic_rotate %79 by %c64_i32_33 dim 1 : vector<8x128xf32>, i32 -> vector<8x128xf32>
    %84 = vector.extract_strided_slice %83 {offsets = [0, 0], sizes = [8, 32], strides = [1, 1]} : vector<8x128xf32> to vector<8x32xf32>
    %c32_i32_34 = arith.constant 32 : i32
    %85 = tpu.dynamic_rotate %78 by %c32_i32_34 dim 1 : vector<8x128xf32>, i32 -> vector<8x128xf32>
    %86 = vector.extract_strided_slice %85 {offsets = [0, 0], sizes = [8, 32], strides = [1, 1]} : vector<8x128xf32> to vector<8x32xf32>
    %87 = arith.mulf %82, %61 : vector<8x32xf32>
    %88 = arith.mulf %80, %84 : vector<8x32xf32>
    %89 = arith.addf %87, %88 : vector<8x32xf32>
    %90 = math.tanh %89 : vector<8x32xf32>
    %91 = arith.mulf %86, %90 : vector<8x32xf32>
    %92 = arith.index_cast %67 : i32 to index
    %c0_35 = arith.constant 0 : index
    %93 = vector.load %arg4[%92, %c0_35] : memref<64x32xf32, #tpu.memory_space<vmem>>, vector<8x32xf32>
    tpu.vector_store %arg4[%92, %c0_35], %91 {strides = array<i32>} : memref<64x32xf32, #tpu.memory_space<vmem>>, vector<8x32xf32>,
    %c3_i32 = arith.constant 3 : i32
    %c8_i32_36 = arith.constant 8 : i32
    %94 = arith.muli %c3_i32, %c8_i32_36 : i32
    %95 = tpu.assume_multiple %94, 8 : i32
    %96 = arith.index_cast %95 : i32 to index
    %c0_37 = arith.constant 0 : index
    %97 = vector.load %arg5[%96, %c0_37] : memref<64x128xf32, #tpu.memory_space<vmem>>, vector<8x128xf32>
    %cst_38 = arith.constant dense<0.000000e+00> : vector<8x128xf32>
    %98 = tpu.matmul %91, %1, %cst_38 {dimension_numbers = #tpu.dot_dimension_numbers<[1], [0], [0], [1], [0, 0, 1, 1], [], []>} : vector<8x32xf32>, vector<32x128xf32>, vector<8x128xf32> -> vector<8x128xf32>
    %99 = arith.addf %97, %98 : vector<8x128xf32>
    %cst_39 = arith.constant 5.000000e-01 : f32
    %100 = vector.broadcast %cst_39 : f32 to vector<8x128xf32>
    %101 = arith.mulf %100, %99 : vector<8x128xf32>
    %102 = math.tanh %101 : vector<8x128xf32>
    %cst_40 = arith.constant 5.000000e-01 : f32
    %103 = vector.broadcast %cst_40 : f32 to vector<8x128xf32>
    %104 = arith.mulf %103, %102 : vector<8x128xf32>
    %cst_41 = arith.constant 5.000000e-01 : f32
    %105 = vector.broadcast %cst_41 : f32 to vector<8x128xf32>
    %106 = arith.addf %104, %105 : vector<8x128xf32>
    %107 = math.tanh %99 : vector<8x128xf32>
    %108 = vector.extract_strided_slice %106 {offsets = [0, 0], sizes = [8, 32], strides = [1, 1]} : vector<8x128xf32> to vector<8x32xf32>
    %c96_i32_42 = arith.constant 96 : i32
    %109 = tpu.dynamic_rotate %106 by %c96_i32_42 dim 1 : vector<8x128xf32>, i32 -> vector<8x128xf32>
    %110 = vector.extract_strided_slice %109 {offsets = [0, 0], sizes = [8, 32], strides = [1, 1]} : vector<8x128xf32> to vector<8x32xf32>
    %c64_i32_43 = arith.constant 64 : i32
    %111 = tpu.dynamic_rotate %107 by %c64_i32_43 dim 1 : vector<8x128xf32>, i32 -> vector<8x128xf32>
    %112 = vector.extract_strided_slice %111 {offsets = [0, 0], sizes = [8, 32], strides = [1, 1]} : vector<8x128xf32> to vector<8x32xf32>
    %c32_i32_44 = arith.constant 32 : i32
    %113 = tpu.dynamic_rotate %106 by %c32_i32_44 dim 1 : vector<8x128xf32>, i32 -> vector<8x128xf32>
    %114 = vector.extract_strided_slice %113 {offsets = [0, 0], sizes = [8, 32], strides = [1, 1]} : vector<8x128xf32> to vector<8x32xf32>
    %115 = arith.mulf %110, %89 : vector<8x32xf32>
    %116 = arith.mulf %108, %112 : vector<8x32xf32>
    %117 = arith.addf %115, %116 : vector<8x32xf32>
    %118 = math.tanh %117 : vector<8x32xf32>
    %119 = arith.mulf %114, %118 : vector<8x32xf32>
    %120 = arith.index_cast %95 : i32 to index
    %c0_45 = arith.constant 0 : index
    %121 = vector.load %arg4[%120, %c0_45] : memref<64x32xf32, #tpu.memory_space<vmem>>, vector<8x32xf32>
    tpu.vector_store %arg4[%120, %c0_45], %119 {strides = array<i32>} : memref<64x32xf32, #tpu.memory_space<vmem>>, vector<8x32xf32>,
    %c4_i32 = arith.constant 4 : i32
    %c8_i32_46 = arith.constant 8 : i32
    %122 = arith.muli %c4_i32, %c8_i32_46 : i32
    %123 = tpu.assume_multiple %122, 8 : i32
    %124 = arith.index_cast %123 : i32 to index
    %c0_47 = arith.constant 0 : index
    %125 = vector.load %arg5[%124, %c0_47] : memref<64x128xf32, #tpu.memory_space<vmem>>, vector<8x128xf32>
    %cst_48 = arith.constant dense<0.000000e+00> : vector<8x128xf32>
    %126 = tpu.matmul %119, %1, %cst_48 {dimension_numbers = #tpu.dot_dimension_numbers<[1], [0], [0], [1], [0, 0, 1, 1], [], []>} : vector<8x32xf32>, vector<32x128xf32>, vector<8x128xf32> -> vector<8x128xf32>
    %127 = arith.addf %125, %126 : vector<8x128xf32>
    %cst_49 = arith.constant 5.000000e-01 : f32
    %128 = vector.broadcast %cst_49 : f32 to vector<8x128xf32>
    %129 = arith.mulf %128, %127 : vector<8x128xf32>
    %130 = math.tanh %129 : vector<8x128xf32>
    %cst_50 = arith.constant 5.000000e-01 : f32
    %131 = vector.broadcast %cst_50 : f32 to vector<8x128xf32>
    %132 = arith.mulf %131, %130 : vector<8x128xf32>
    %cst_51 = arith.constant 5.000000e-01 : f32
    %133 = vector.broadcast %cst_51 : f32 to vector<8x128xf32>
    %134 = arith.addf %132, %133 : vector<8x128xf32>
    %135 = math.tanh %127 : vector<8x128xf32>
    %136 = vector.extract_strided_slice %134 {offsets = [0, 0], sizes = [8, 32], strides = [1, 1]} : vector<8x128xf32> to vector<8x32xf32>
    %c96_i32_52 = arith.constant 96 : i32
    %137 = tpu.dynamic_rotate %134 by %c96_i32_52 dim 1 : vector<8x128xf32>, i32 -> vector<8x128xf32>
    %138 = vector.extract_strided_slice %137 {offsets = [0, 0], sizes = [8, 32], strides = [1, 1]} : vector<8x128xf32> to vector<8x32xf32>
    %c64_i32_53 = arith.constant 64 : i32
    %139 = tpu.dynamic_rotate %135 by %c64_i32_53 dim 1 : vector<8x128xf32>, i32 -> vector<8x128xf32>
    %140 = vector.extract_strided_slice %139 {offsets = [0, 0], sizes = [8, 32], strides = [1, 1]} : vector<8x128xf32> to vector<8x32xf32>
    %c32_i32_54 = arith.constant 32 : i32
    %141 = tpu.dynamic_rotate %134 by %c32_i32_54 dim 1 : vector<8x128xf32>, i32 -> vector<8x128xf32>
    %142 = vector.extract_strided_slice %141 {offsets = [0, 0], sizes = [8, 32], strides = [1, 1]} : vector<8x128xf32> to vector<8x32xf32>
    %143 = arith.mulf %138, %117 : vector<8x32xf32>
    %144 = arith.mulf %136, %140 : vector<8x32xf32>
    %145 = arith.addf %143, %144 : vector<8x32xf32>
    %146 = math.tanh %145 : vector<8x32xf32>
    %147 = arith.mulf %142, %146 : vector<8x32xf32>
    %148 = arith.index_cast %123 : i32 to index
    %c0_55 = arith.constant 0 : index
    %149 = vector.load %arg4[%148, %c0_55] : memref<64x32xf32, #tpu.memory_space<vmem>>, vector<8x32xf32>
    tpu.vector_store %arg4[%148, %c0_55], %147 {strides = array<i32>} : memref<64x32xf32, #tpu.memory_space<vmem>>, vector<8x32xf32>,
    %c5_i32 = arith.constant 5 : i32
    %c8_i32_56 = arith.constant 8 : i32
    %150 = arith.muli %c5_i32, %c8_i32_56 : i32
    %151 = tpu.assume_multiple %150, 8 : i32
    %152 = arith.index_cast %151 : i32 to index
    %c0_57 = arith.constant 0 : index
    %153 = vector.load %arg5[%152, %c0_57] : memref<64x128xf32, #tpu.memory_space<vmem>>, vector<8x128xf32>
    %cst_58 = arith.constant dense<0.000000e+00> : vector<8x128xf32>
    %154 = tpu.matmul %147, %1, %cst_58 {dimension_numbers = #tpu.dot_dimension_numbers<[1], [0], [0], [1], [0, 0, 1, 1], [], []>} : vector<8x32xf32>, vector<32x128xf32>, vector<8x128xf32> -> vector<8x128xf32>
    %155 = arith.addf %153, %154 : vector<8x128xf32>
    %cst_59 = arith.constant 5.000000e-01 : f32
    %156 = vector.broadcast %cst_59 : f32 to vector<8x128xf32>
    %157 = arith.mulf %156, %155 : vector<8x128xf32>
    %158 = math.tanh %157 : vector<8x128xf32>
    %cst_60 = arith.constant 5.000000e-01 : f32
    %159 = vector.broadcast %cst_60 : f32 to vector<8x128xf32>
    %160 = arith.mulf %159, %158 : vector<8x128xf32>
    %cst_61 = arith.constant 5.000000e-01 : f32
    %161 = vector.broadcast %cst_61 : f32 to vector<8x128xf32>
    %162 = arith.addf %160, %161 : vector<8x128xf32>
    %163 = math.tanh %155 : vector<8x128xf32>
    %164 = vector.extract_strided_slice %162 {offsets = [0, 0], sizes = [8, 32], strides = [1, 1]} : vector<8x128xf32> to vector<8x32xf32>
    %c96_i32_62 = arith.constant 96 : i32
    %165 = tpu.dynamic_rotate %162 by %c96_i32_62 dim 1 : vector<8x128xf32>, i32 -> vector<8x128xf32>
    %166 = vector.extract_strided_slice %165 {offsets = [0, 0], sizes = [8, 32], strides = [1, 1]} : vector<8x128xf32> to vector<8x32xf32>
    %c64_i32_63 = arith.constant 64 : i32
    %167 = tpu.dynamic_rotate %163 by %c64_i32_63 dim 1 : vector<8x128xf32>, i32 -> vector<8x128xf32>
    %168 = vector.extract_strided_slice %167 {offsets = [0, 0], sizes = [8, 32], strides = [1, 1]} : vector<8x128xf32> to vector<8x32xf32>
    %c32_i32_64 = arith.constant 32 : i32
    %169 = tpu.dynamic_rotate %162 by %c32_i32_64 dim 1 : vector<8x128xf32>, i32 -> vector<8x128xf32>
    %170 = vector.extract_strided_slice %169 {offsets = [0, 0], sizes = [8, 32], strides = [1, 1]} : vector<8x128xf32> to vector<8x32xf32>
    %171 = arith.mulf %166, %145 : vector<8x32xf32>
    %172 = arith.mulf %164, %168 : vector<8x32xf32>
    %173 = arith.addf %171, %172 : vector<8x32xf32>
    %174 = math.tanh %173 : vector<8x32xf32>
    %175 = arith.mulf %170, %174 : vector<8x32xf32>
    %176 = arith.index_cast %151 : i32 to index
    %c0_65 = arith.constant 0 : index
    %177 = vector.load %arg4[%176, %c0_65] : memref<64x32xf32, #tpu.memory_space<vmem>>, vector<8x32xf32>
    tpu.vector_store %arg4[%176, %c0_65], %175 {strides = array<i32>} : memref<64x32xf32, #tpu.memory_space<vmem>>, vector<8x32xf32>,
    %c6_i32 = arith.constant 6 : i32
    %c8_i32_66 = arith.constant 8 : i32
    %178 = arith.muli %c6_i32, %c8_i32_66 : i32
    %179 = tpu.assume_multiple %178, 8 : i32
    %180 = arith.index_cast %179 : i32 to index
    %c0_67 = arith.constant 0 : index
    %181 = vector.load %arg5[%180, %c0_67] : memref<64x128xf32, #tpu.memory_space<vmem>>, vector<8x128xf32>
    %cst_68 = arith.constant dense<0.000000e+00> : vector<8x128xf32>
    %182 = tpu.matmul %175, %1, %cst_68 {dimension_numbers = #tpu.dot_dimension_numbers<[1], [0], [0], [1], [0, 0, 1, 1], [], []>} : vector<8x32xf32>, vector<32x128xf32>, vector<8x128xf32> -> vector<8x128xf32>
    %183 = arith.addf %181, %182 : vector<8x128xf32>
    %cst_69 = arith.constant 5.000000e-01 : f32
    %184 = vector.broadcast %cst_69 : f32 to vector<8x128xf32>
    %185 = arith.mulf %184, %183 : vector<8x128xf32>
    %186 = math.tanh %185 : vector<8x128xf32>
    %cst_70 = arith.constant 5.000000e-01 : f32
    %187 = vector.broadcast %cst_70 : f32 to vector<8x128xf32>
    %188 = arith.mulf %187, %186 : vector<8x128xf32>
    %cst_71 = arith.constant 5.000000e-01 : f32
    %189 = vector.broadcast %cst_71 : f32 to vector<8x128xf32>
    %190 = arith.addf %188, %189 : vector<8x128xf32>
    %191 = math.tanh %183 : vector<8x128xf32>
    %192 = vector.extract_strided_slice %190 {offsets = [0, 0], sizes = [8, 32], strides = [1, 1]} : vector<8x128xf32> to vector<8x32xf32>
    %c96_i32_72 = arith.constant 96 : i32
    %193 = tpu.dynamic_rotate %190 by %c96_i32_72 dim 1 : vector<8x128xf32>, i32 -> vector<8x128xf32>
    %194 = vector.extract_strided_slice %193 {offsets = [0, 0], sizes = [8, 32], strides = [1, 1]} : vector<8x128xf32> to vector<8x32xf32>
    %c64_i32_73 = arith.constant 64 : i32
    %195 = tpu.dynamic_rotate %191 by %c64_i32_73 dim 1 : vector<8x128xf32>, i32 -> vector<8x128xf32>
    %196 = vector.extract_strided_slice %195 {offsets = [0, 0], sizes = [8, 32], strides = [1, 1]} : vector<8x128xf32> to vector<8x32xf32>
    %c32_i32_74 = arith.constant 32 : i32
    %197 = tpu.dynamic_rotate %190 by %c32_i32_74 dim 1 : vector<8x128xf32>, i32 -> vector<8x128xf32>
    %198 = vector.extract_strided_slice %197 {offsets = [0, 0], sizes = [8, 32], strides = [1, 1]} : vector<8x128xf32> to vector<8x32xf32>
    %199 = arith.mulf %194, %173 : vector<8x32xf32>
    %200 = arith.mulf %192, %196 : vector<8x32xf32>
    %201 = arith.addf %199, %200 : vector<8x32xf32>
    %202 = math.tanh %201 : vector<8x32xf32>
    %203 = arith.mulf %198, %202 : vector<8x32xf32>
    %204 = arith.index_cast %179 : i32 to index
    %c0_75 = arith.constant 0 : index
    %205 = vector.load %arg4[%204, %c0_75] : memref<64x32xf32, #tpu.memory_space<vmem>>, vector<8x32xf32>
    tpu.vector_store %arg4[%204, %c0_75], %203 {strides = array<i32>} : memref<64x32xf32, #tpu.memory_space<vmem>>, vector<8x32xf32>,
    %c7_i32 = arith.constant 7 : i32
    %c8_i32_76 = arith.constant 8 : i32
    %206 = arith.muli %c7_i32, %c8_i32_76 : i32
    %207 = tpu.assume_multiple %206, 8 : i32
    %208 = arith.index_cast %207 : i32 to index
    %c0_77 = arith.constant 0 : index
    %209 = vector.load %arg5[%208, %c0_77] : memref<64x128xf32, #tpu.memory_space<vmem>>, vector<8x128xf32>
    %cst_78 = arith.constant dense<0.000000e+00> : vector<8x128xf32>
    %210 = tpu.matmul %203, %1, %cst_78 {dimension_numbers = #tpu.dot_dimension_numbers<[1], [0], [0], [1], [0, 0, 1, 1], [], []>} : vector<8x32xf32>, vector<32x128xf32>, vector<8x128xf32> -> vector<8x128xf32>
    %211 = arith.addf %209, %210 : vector<8x128xf32>
    %cst_79 = arith.constant 5.000000e-01 : f32
    %212 = vector.broadcast %cst_79 : f32 to vector<8x128xf32>
    %213 = arith.mulf %212, %211 : vector<8x128xf32>
    %214 = math.tanh %213 : vector<8x128xf32>
    %cst_80 = arith.constant 5.000000e-01 : f32
    %215 = vector.broadcast %cst_80 : f32 to vector<8x128xf32>
    %216 = arith.mulf %215, %214 : vector<8x128xf32>
    %cst_81 = arith.constant 5.000000e-01 : f32
    %217 = vector.broadcast %cst_81 : f32 to vector<8x128xf32>
    %218 = arith.addf %216, %217 : vector<8x128xf32>
    %219 = math.tanh %211 : vector<8x128xf32>
    %220 = vector.extract_strided_slice %218 {offsets = [0, 0], sizes = [8, 32], strides = [1, 1]} : vector<8x128xf32> to vector<8x32xf32>
    %c96_i32_82 = arith.constant 96 : i32
    %221 = tpu.dynamic_rotate %218 by %c96_i32_82 dim 1 : vector<8x128xf32>, i32 -> vector<8x128xf32>
    %222 = vector.extract_strided_slice %221 {offsets = [0, 0], sizes = [8, 32], strides = [1, 1]} : vector<8x128xf32> to vector<8x32xf32>
    %c64_i32_83 = arith.constant 64 : i32
    %223 = tpu.dynamic_rotate %219 by %c64_i32_83 dim 1 : vector<8x128xf32>, i32 -> vector<8x128xf32>
    %224 = vector.extract_strided_slice %223 {offsets = [0, 0], sizes = [8, 32], strides = [1, 1]} : vector<8x128xf32> to vector<8x32xf32>
    %c32_i32_84 = arith.constant 32 : i32
    %225 = tpu.dynamic_rotate %218 by %c32_i32_84 dim 1 : vector<8x128xf32>, i32 -> vector<8x128xf32>
    %226 = vector.extract_strided_slice %225 {offsets = [0, 0], sizes = [8, 32], strides = [1, 1]} : vector<8x128xf32> to vector<8x32xf32>
    %227 = arith.mulf %222, %201 : vector<8x32xf32>
    %228 = arith.mulf %220, %224 : vector<8x32xf32>
    %229 = arith.addf %227, %228 : vector<8x32xf32>
    %230 = math.tanh %229 : vector<8x32xf32>
    %231 = arith.mulf %226, %230 : vector<8x32xf32>
    %232 = arith.index_cast %207 : i32 to index
    %c0_85 = arith.constant 0 : index
    %233 = vector.load %arg4[%232, %c0_85] : memref<64x32xf32, #tpu.memory_space<vmem>>, vector<8x32xf32>
    tpu.vector_store %arg4[%232, %c0_85], %231 {strides = array<i32>} : memref<64x32xf32, #tpu.memory_space<vmem>>, vector<8x32xf32>,
    %c8_i32_86 = arith.constant 8 : i32
    %c0_87 = arith.constant 0 : index
    %c0_88 = arith.constant 0 : index
    %234 = vector.load %arg3[%c0_87, %c0_88] : memref<88x32xf32, #tpu.memory_space<vmem>>, vector<8x32xf32>
    tpu.vector_store %arg3[%c0_87, %c0_88], %231 {strides = array<i32>} : memref<88x32xf32, #tpu.memory_space<vmem>>, vector<8x32xf32>,
    %c40_89 = arith.constant 40 : index
    %c0_90 = arith.constant 0 : index
    %235 = vector.load %arg3[%c40_89, %c0_90] : memref<88x32xf32, #tpu.memory_space<vmem>>, vector<8x32xf32>
    tpu.vector_store %arg3[%c40_89, %c0_90], %229 {strides = array<i32>} : memref<88x32xf32, #tpu.memory_space<vmem>>, vector<8x32xf32>,
    %c72 = arith.constant 72 : index
    %c0_91 = arith.constant 0 : index
    %236 = vector.load %arg1[%c72, %c0_91] : memref<368x128xf32, #tpu.memory_space<vmem>>, vector<32x128xf32>
    %c104 = arith.constant 104 : index
    %c0_92 = arith.constant 0 : index
    %237 = vector.load %arg1[%c104, %c0_92] : memref<368x128xf32, #tpu.memory_space<vmem>>, vector<32x128xf32>
    %c136 = arith.constant 136 : index
    %c0_93 = arith.constant 0 : index
    %238 = vector.load %arg1[%c136, %c0_93] : memref<368x128xf32, #tpu.memory_space<vmem>>, vector<1x128xf32>
    %c0_94 = arith.constant 0 : index
    %c0_95 = arith.constant 0 : index
    %239 = vector.load %arg4[%c0_94, %c0_95] : memref<64x32xf32, #tpu.memory_space<vmem>>, vector<64x32xf32>
    %cst_96 = arith.constant dense<0.000000e+00> : vector<64x128xf32>
    %240 = tpu.matmul %239, %236, %cst_96 {dimension_numbers = #tpu.dot_dimension_numbers<[1], [0], [0], [1], [0, 0, 1, 1], [], []>} : vector<64x32xf32>, vector<32x128xf32>, vector<64x128xf32> -> vector<64x128xf32>
    %241 = vector.broadcast %238 : vector<1x128xf32> to vector<64x128xf32>
    %242 = arith.addf %240, %241 : vector<64x128xf32>
    %c0_97 = arith.constant 0 : index
    %c0_98 = arith.constant 0 : index
    %243 = vector.load %arg5[%c0_97, %c0_98] : memref<64x128xf32, #tpu.memory_space<vmem>>, vector<64x128xf32>
    tpu.vector_store %arg5[%c0_97, %c0_98], %242 {strides = array<i32>} : memref<64x128xf32, #tpu.memory_space<vmem>>, vector<64x128xf32>,
    %c8 = arith.constant 8 : index
    %c0_99 = arith.constant 0 : index
    %244 = vector.load %arg2[%c8, %c0_99] : memref<80x32xf32, #tpu.memory_space<vmem>>, vector<8x32xf32>
    %c48 = arith.constant 48 : index
    %c0_100 = arith.constant 0 : index
    %245 = vector.load %arg2[%c48, %c0_100] : memref<80x32xf32, #tpu.memory_space<vmem>>, vector<8x32xf32>
    %c0_i32_101 = arith.constant 0 : i32
    %c8_i32_102 = arith.constant 8 : i32
    %246 = arith.muli %c0_i32_101, %c8_i32_102 : i32
    %247 = tpu.assume_multiple %246, 8 : i32
    %248 = arith.index_cast %247 : i32 to index
    %c0_103 = arith.constant 0 : index
    %249 = vector.load %arg5[%248, %c0_103] : memref<64x128xf32, #tpu.memory_space<vmem>>, vector<8x128xf32>
    %cst_104 = arith.constant dense<0.000000e+00> : vector<8x128xf32>
    %250 = tpu.matmul %244, %237, %cst_104 {dimension_numbers = #tpu.dot_dimension_numbers<[1], [0], [0], [1], [0, 0, 1, 1], [], []>} : vector<8x32xf32>, vector<32x128xf32>, vector<8x128xf32> -> vector<8x128xf32>
    %251 = arith.addf %249, %250 : vector<8x128xf32>
    %cst_105 = arith.constant 5.000000e-01 : f32
    %252 = vector.broadcast %cst_105 : f32 to vector<8x128xf32>
    %253 = arith.mulf %252, %251 : vector<8x128xf32>
    %254 = math.tanh %253 : vector<8x128xf32>
    %cst_106 = arith.constant 5.000000e-01 : f32
    %255 = vector.broadcast %cst_106 : f32 to vector<8x128xf32>
    %256 = arith.mulf %255, %254 : vector<8x128xf32>
    %cst_107 = arith.constant 5.000000e-01 : f32
    %257 = vector.broadcast %cst_107 : f32 to vector<8x128xf32>
    %258 = arith.addf %256, %257 : vector<8x128xf32>
    %259 = math.tanh %251 : vector<8x128xf32>
    %260 = vector.extract_strided_slice %258 {offsets = [0, 0], sizes = [8, 32], strides = [1, 1]} : vector<8x128xf32> to vector<8x32xf32>
    %c96_i32_108 = arith.constant 96 : i32
    %261 = tpu.dynamic_rotate %258 by %c96_i32_108 dim 1 : vector<8x128xf32>, i32 -> vector<8x128xf32>
    %262 = vector.extract_strided_slice %261 {offsets = [0, 0], sizes = [8, 32], strides = [1, 1]} : vector<8x128xf32> to vector<8x32xf32>
    %c64_i32_109 = arith.constant 64 : i32
    %263 = tpu.dynamic_rotate %259 by %c64_i32_109 dim 1 : vector<8x128xf32>, i32 -> vector<8x128xf32>
    %264 = vector.extract_strided_slice %263 {offsets = [0, 0], sizes = [8, 32], strides = [1, 1]} : vector<8x128xf32> to vector<8x32xf32>
    %c32_i32_110 = arith.constant 32 : i32
    %265 = tpu.dynamic_rotate %258 by %c32_i32_110 dim 1 : vector<8x128xf32>, i32 -> vector<8x128xf32>
    %266 = vector.extract_strided_slice %265 {offsets = [0, 0], sizes = [8, 32], strides = [1, 1]} : vector<8x128xf32> to vector<8x32xf32>
    %267 = arith.mulf %262, %245 : vector<8x32xf32>
    %268 = arith.mulf %260, %264 : vector<8x32xf32>
    %269 = arith.addf %267, %268 : vector<8x32xf32>
    %270 = math.tanh %269 : vector<8x32xf32>
    %271 = arith.mulf %266, %270 : vector<8x32xf32>
    %272 = arith.index_cast %247 : i32 to index
    %c0_111 = arith.constant 0 : index
    %273 = vector.load %arg4[%272, %c0_111] : memref<64x32xf32, #tpu.memory_space<vmem>>, vector<8x32xf32>
    tpu.vector_store %arg4[%272, %c0_111], %271 {strides = array<i32>} : memref<64x32xf32, #tpu.memory_space<vmem>>, vector<8x32xf32>,
    %c1_i32_112 = arith.constant 1 : i32
    %c8_i32_113 = arith.constant 8 : i32
    %274 = arith.muli %c1_i32_112, %c8_i32_113 : i32
    %275 = tpu.assume_multiple %274, 8 : i32
    %276 = arith.index_cast %275 : i32 to index
    %c0_114 = arith.constant 0 : index
    %277 = vector.load %arg5[%276, %c0_114] : memref<64x128xf32, #tpu.memory_space<vmem>>, vector<8x128xf32>
    %cst_115 = arith.constant dense<0.000000e+00> : vector<8x128xf32>
    %278 = tpu.matmul %271, %237, %cst_115 {dimension_numbers = #tpu.dot_dimension_numbers<[1], [0], [0], [1], [0, 0, 1, 1], [], []>} : vector<8x32xf32>, vector<32x128xf32>, vector<8x128xf32> -> vector<8x128xf32>
    %279 = arith.addf %277, %278 : vector<8x128xf32>
    %cst_116 = arith.constant 5.000000e-01 : f32
    %280 = vector.broadcast %cst_116 : f32 to vector<8x128xf32>
    %281 = arith.mulf %280, %279 : vector<8x128xf32>
    %282 = math.tanh %281 : vector<8x128xf32>
    %cst_117 = arith.constant 5.000000e-01 : f32
    %283 = vector.broadcast %cst_117 : f32 to vector<8x128xf32>
    %284 = arith.mulf %283, %282 : vector<8x128xf32>
    %cst_118 = arith.constant 5.000000e-01 : f32
    %285 = vector.broadcast %cst_118 : f32 to vector<8x128xf32>
    %286 = arith.addf %284, %285 : vector<8x128xf32>
    %287 = math.tanh %279 : vector<8x128xf32>
    %288 = vector.extract_strided_slice %286 {offsets = [0, 0], sizes = [8, 32], strides = [1, 1]} : vector<8x128xf32> to vector<8x32xf32>
    %c96_i32_119 = arith.constant 96 : i32
    %289 = tpu.dynamic_rotate %286 by %c96_i32_119 dim 1 : vector<8x128xf32>, i32 -> vector<8x128xf32>
    %290 = vector.extract_strided_slice %289 {offsets = [0, 0], sizes = [8, 32], strides = [1, 1]} : vector<8x128xf32> to vector<8x32xf32>
    %c64_i32_120 = arith.constant 64 : i32
    %291 = tpu.dynamic_rotate %287 by %c64_i32_120 dim 1 : vector<8x128xf32>, i32 -> vector<8x128xf32>
    %292 = vector.extract_strided_slice %291 {offsets = [0, 0], sizes = [8, 32], strides = [1, 1]} : vector<8x128xf32> to vector<8x32xf32>
    %c32_i32_121 = arith.constant 32 : i32
    %293 = tpu.dynamic_rotate %286 by %c32_i32_121 dim 1 : vector<8x128xf32>, i32 -> vector<8x128xf32>
    %294 = vector.extract_strided_slice %293 {offsets = [0, 0], sizes = [8, 32], strides = [1, 1]} : vector<8x128xf32> to vector<8x32xf32>
    %295 = arith.mulf %290, %269 : vector<8x32xf32>
    %296 = arith.mulf %288, %292 : vector<8x32xf32>
    %297 = arith.addf %295, %296 : vector<8x32xf32>
    %298 = math.tanh %297 : vector<8x32xf32>
    %299 = arith.mulf %294, %298 : vector<8x32xf32>
    %300 = arith.index_cast %275 : i32 to index
    %c0_122 = arith.constant 0 : index
    %301 = vector.load %arg4[%300, %c0_122] : memref<64x32xf32, #tpu.memory_space<vmem>>, vector<8x32xf32>
    tpu.vector_store %arg4[%300, %c0_122], %299 {strides = array<i32>} : memref<64x32xf32, #tpu.memory_space<vmem>>, vector<8x32xf32>,
    %c2_i32_123 = arith.constant 2 : i32
    %c8_i32_124 = arith.constant 8 : i32
    %302 = arith.muli %c2_i32_123, %c8_i32_124 : i32
    %303 = tpu.assume_multiple %302, 8 : i32
    %304 = arith.index_cast %303 : i32 to index
    %c0_125 = arith.constant 0 : index
    %305 = vector.load %arg5[%304, %c0_125] : memref<64x128xf32, #tpu.memory_space<vmem>>, vector<8x128xf32>
    %cst_126 = arith.constant dense<0.000000e+00> : vector<8x128xf32>
    %306 = tpu.matmul %299, %237, %cst_126 {dimension_numbers = #tpu.dot_dimension_numbers<[1], [0], [0], [1], [0, 0, 1, 1], [], []>} : vector<8x32xf32>, vector<32x128xf32>, vector<8x128xf32> -> vector<8x128xf32>
    %307 = arith.addf %305, %306 : vector<8x128xf32>
    %cst_127 = arith.constant 5.000000e-01 : f32
    %308 = vector.broadcast %cst_127 : f32 to vector<8x128xf32>
    %309 = arith.mulf %308, %307 : vector<8x128xf32>
    %310 = math.tanh %309 : vector<8x128xf32>
    %cst_128 = arith.constant 5.000000e-01 : f32
    %311 = vector.broadcast %cst_128 : f32 to vector<8x128xf32>
    %312 = arith.mulf %311, %310 : vector<8x128xf32>
    %cst_129 = arith.constant 5.000000e-01 : f32
    %313 = vector.broadcast %cst_129 : f32 to vector<8x128xf32>
    %314 = arith.addf %312, %313 : vector<8x128xf32>
    %315 = math.tanh %307 : vector<8x128xf32>
    %316 = vector.extract_strided_slice %314 {offsets = [0, 0], sizes = [8, 32], strides = [1, 1]} : vector<8x128xf32> to vector<8x32xf32>
    %c96_i32_130 = arith.constant 96 : i32
    %317 = tpu.dynamic_rotate %314 by %c96_i32_130 dim 1 : vector<8x128xf32>, i32 -> vector<8x128xf32>
    %318 = vector.extract_strided_slice %317 {offsets = [0, 0], sizes = [8, 32], strides = [1, 1]} : vector<8x128xf32> to vector<8x32xf32>
    %c64_i32_131 = arith.constant 64 : i32
    %319 = tpu.dynamic_rotate %315 by %c64_i32_131 dim 1 : vector<8x128xf32>, i32 -> vector<8x128xf32>
    %320 = vector.extract_strided_slice %319 {offsets = [0, 0], sizes = [8, 32], strides = [1, 1]} : vector<8x128xf32> to vector<8x32xf32>
    %c32_i32_132 = arith.constant 32 : i32
    %321 = tpu.dynamic_rotate %314 by %c32_i32_132 dim 1 : vector<8x128xf32>, i32 -> vector<8x128xf32>
    %322 = vector.extract_strided_slice %321 {offsets = [0, 0], sizes = [8, 32], strides = [1, 1]} : vector<8x128xf32> to vector<8x32xf32>
    %323 = arith.mulf %318, %297 : vector<8x32xf32>
    %324 = arith.mulf %316, %320 : vector<8x32xf32>
    %325 = arith.addf %323, %324 : vector<8x32xf32>
    %326 = math.tanh %325 : vector<8x32xf32>
    %327 = arith.mulf %322, %326 : vector<8x32xf32>
    %328 = arith.index_cast %303 : i32 to index
    %c0_133 = arith.constant 0 : index
    %329 = vector.load %arg4[%328, %c0_133] : memref<64x32xf32, #tpu.memory_space<vmem>>, vector<8x32xf32>
    tpu.vector_store %arg4[%328, %c0_133], %327 {strides = array<i32>} : memref<64x32xf32, #tpu.memory_space<vmem>>, vector<8x32xf32>,
    %c3_i32_134 = arith.constant 3 : i32
    %c8_i32_135 = arith.constant 8 : i32
    %330 = arith.muli %c3_i32_134, %c8_i32_135 : i32
    %331 = tpu.assume_multiple %330, 8 : i32
    %332 = arith.index_cast %331 : i32 to index
    %c0_136 = arith.constant 0 : index
    %333 = vector.load %arg5[%332, %c0_136] : memref<64x128xf32, #tpu.memory_space<vmem>>, vector<8x128xf32>
    %cst_137 = arith.constant dense<0.000000e+00> : vector<8x128xf32>
    %334 = tpu.matmul %327, %237, %cst_137 {dimension_numbers = #tpu.dot_dimension_numbers<[1], [0], [0], [1], [0, 0, 1, 1], [], []>} : vector<8x32xf32>, vector<32x128xf32>, vector<8x128xf32> -> vector<8x128xf32>
    %335 = arith.addf %333, %334 : vector<8x128xf32>
    %cst_138 = arith.constant 5.000000e-01 : f32
    %336 = vector.broadcast %cst_138 : f32 to vector<8x128xf32>
    %337 = arith.mulf %336, %335 : vector<8x128xf32>
    %338 = math.tanh %337 : vector<8x128xf32>
    %cst_139 = arith.constant 5.000000e-01 : f32
    %339 = vector.broadcast %cst_139 : f32 to vector<8x128xf32>
    %340 = arith.mulf %339, %338 : vector<8x128xf32>
    %cst_140 = arith.constant 5.000000e-01 : f32
    %341 = vector.broadcast %cst_140 : f32 to vector<8x128xf32>
    %342 = arith.addf %340, %341 : vector<8x128xf32>
    %343 = math.tanh %335 : vector<8x128xf32>
    %344 = vector.extract_strided_slice %342 {offsets = [0, 0], sizes = [8, 32], strides = [1, 1]} : vector<8x128xf32> to vector<8x32xf32>
    %c96_i32_141 = arith.constant 96 : i32
    %345 = tpu.dynamic_rotate %342 by %c96_i32_141 dim 1 : vector<8x128xf32>, i32 -> vector<8x128xf32>
    %346 = vector.extract_strided_slice %345 {offsets = [0, 0], sizes = [8, 32], strides = [1, 1]} : vector<8x128xf32> to vector<8x32xf32>
    %c64_i32_142 = arith.constant 64 : i32
    %347 = tpu.dynamic_rotate %343 by %c64_i32_142 dim 1 : vector<8x128xf32>, i32 -> vector<8x128xf32>
    %348 = vector.extract_strided_slice %347 {offsets = [0, 0], sizes = [8, 32], strides = [1, 1]} : vector<8x128xf32> to vector<8x32xf32>
    %c32_i32_143 = arith.constant 32 : i32
    %349 = tpu.dynamic_rotate %342 by %c32_i32_143 dim 1 : vector<8x128xf32>, i32 -> vector<8x128xf32>
    %350 = vector.extract_strided_slice %349 {offsets = [0, 0], sizes = [8, 32], strides = [1, 1]} : vector<8x128xf32> to vector<8x32xf32>
    %351 = arith.mulf %346, %325 : vector<8x32xf32>
    %352 = arith.mulf %344, %348 : vector<8x32xf32>
    %353 = arith.addf %351, %352 : vector<8x32xf32>
    %354 = math.tanh %353 : vector<8x32xf32>
    %355 = arith.mulf %350, %354 : vector<8x32xf32>
    %356 = arith.index_cast %331 : i32 to index
    %c0_144 = arith.constant 0 : index
    %357 = vector.load %arg4[%356, %c0_144] : memref<64x32xf32, #tpu.memory_space<vmem>>, vector<8x32xf32>
    tpu.vector_store %arg4[%356, %c0_144], %355 {strides = array<i32>} : memref<64x32xf32, #tpu.memory_space<vmem>>, vector<8x32xf32>,
    %c4_i32_145 = arith.constant 4 : i32
    %c8_i32_146 = arith.constant 8 : i32
    %358 = arith.muli %c4_i32_145, %c8_i32_146 : i32
    %359 = tpu.assume_multiple %358, 8 : i32
    %360 = arith.index_cast %359 : i32 to index
    %c0_147 = arith.constant 0 : index
    %361 = vector.load %arg5[%360, %c0_147] : memref<64x128xf32, #tpu.memory_space<vmem>>, vector<8x128xf32>
    %cst_148 = arith.constant dense<0.000000e+00> : vector<8x128xf32>
    %362 = tpu.matmul %355, %237, %cst_148 {dimension_numbers = #tpu.dot_dimension_numbers<[1], [0], [0], [1], [0, 0, 1, 1], [], []>} : vector<8x32xf32>, vector<32x128xf32>, vector<8x128xf32> -> vector<8x128xf32>
    %363 = arith.addf %361, %362 : vector<8x128xf32>
    %cst_149 = arith.constant 5.000000e-01 : f32
    %364 = vector.broadcast %cst_149 : f32 to vector<8x128xf32>
    %365 = arith.mulf %364, %363 : vector<8x128xf32>
    %366 = math.tanh %365 : vector<8x128xf32>
    %cst_150 = arith.constant 5.000000e-01 : f32
    %367 = vector.broadcast %cst_150 : f32 to vector<8x128xf32>
    %368 = arith.mulf %367, %366 : vector<8x128xf32>
    %cst_151 = arith.constant 5.000000e-01 : f32
    %369 = vector.broadcast %cst_151 : f32 to vector<8x128xf32>
    %370 = arith.addf %368, %369 : vector<8x128xf32>
    %371 = math.tanh %363 : vector<8x128xf32>
    %372 = vector.extract_strided_slice %370 {offsets = [0, 0], sizes = [8, 32], strides = [1, 1]} : vector<8x128xf32> to vector<8x32xf32>
    %c96_i32_152 = arith.constant 96 : i32
    %373 = tpu.dynamic_rotate %370 by %c96_i32_152 dim 1 : vector<8x128xf32>, i32 -> vector<8x128xf32>
    %374 = vector.extract_strided_slice %373 {offsets = [0, 0], sizes = [8, 32], strides = [1, 1]} : vector<8x128xf32> to vector<8x32xf32>
    %c64_i32_153 = arith.constant 64 : i32
    %375 = tpu.dynamic_rotate %371 by %c64_i32_153 dim 1 : vector<8x128xf32>, i32 -> vector<8x128xf32>
    %376 = vector.extract_strided_slice %375 {offsets = [0, 0], sizes = [8, 32], strides = [1, 1]} : vector<8x128xf32> to vector<8x32xf32>
    %c32_i32_154 = arith.constant 32 : i32
    %377 = tpu.dynamic_rotate %370 by %c32_i32_154 dim 1 : vector<8x128xf32>, i32 -> vector<8x128xf32>
    %378 = vector.extract_strided_slice %377 {offsets = [0, 0], sizes = [8, 32], strides = [1, 1]} : vector<8x128xf32> to vector<8x32xf32>
    %379 = arith.mulf %374, %353 : vector<8x32xf32>
    %380 = arith.mulf %372, %376 : vector<8x32xf32>
    %381 = arith.addf %379, %380 : vector<8x32xf32>
    %382 = math.tanh %381 : vector<8x32xf32>
    %383 = arith.mulf %378, %382 : vector<8x32xf32>
    %384 = arith.index_cast %359 : i32 to index
    %c0_155 = arith.constant 0 : index
    %385 = vector.load %arg4[%384, %c0_155] : memref<64x32xf32, #tpu.memory_space<vmem>>, vector<8x32xf32>
    tpu.vector_store %arg4[%384, %c0_155], %383 {strides = array<i32>} : memref<64x32xf32, #tpu.memory_space<vmem>>, vector<8x32xf32>,
    %c5_i32_156 = arith.constant 5 : i32
    %c8_i32_157 = arith.constant 8 : i32
    %386 = arith.muli %c5_i32_156, %c8_i32_157 : i32
    %387 = tpu.assume_multiple %386, 8 : i32
    %388 = arith.index_cast %387 : i32 to index
    %c0_158 = arith.constant 0 : index
    %389 = vector.load %arg5[%388, %c0_158] : memref<64x128xf32, #tpu.memory_space<vmem>>, vector<8x128xf32>
    %cst_159 = arith.constant dense<0.000000e+00> : vector<8x128xf32>
    %390 = tpu.matmul %383, %237, %cst_159 {dimension_numbers = #tpu.dot_dimension_numbers<[1], [0], [0], [1], [0, 0, 1, 1], [], []>} : vector<8x32xf32>, vector<32x128xf32>, vector<8x128xf32> -> vector<8x128xf32>
    %391 = arith.addf %389, %390 : vector<8x128xf32>
    %cst_160 = arith.constant 5.000000e-01 : f32
    %392 = vector.broadcast %cst_160 : f32 to vector<8x128xf32>
    %393 = arith.mulf %392, %391 : vector<8x128xf32>
    %394 = math.tanh %393 : vector<8x128xf32>
    %cst_161 = arith.constant 5.000000e-01 : f32
    %395 = vector.broadcast %cst_161 : f32 to vector<8x128xf32>
    %396 = arith.mulf %395, %394 : vector<8x128xf32>
    %cst_162 = arith.constant 5.000000e-01 : f32
    %397 = vector.broadcast %cst_162 : f32 to vector<8x128xf32>
    %398 = arith.addf %396, %397 : vector<8x128xf32>
    %399 = math.tanh %391 : vector<8x128xf32>
    %400 = vector.extract_strided_slice %398 {offsets = [0, 0], sizes = [8, 32], strides = [1, 1]} : vector<8x128xf32> to vector<8x32xf32>
    %c96_i32_163 = arith.constant 96 : i32
    %401 = tpu.dynamic_rotate %398 by %c96_i32_163 dim 1 : vector<8x128xf32>, i32 -> vector<8x128xf32>
    %402 = vector.extract_strided_slice %401 {offsets = [0, 0], sizes = [8, 32], strides = [1, 1]} : vector<8x128xf32> to vector<8x32xf32>
    %c64_i32_164 = arith.constant 64 : i32
    %403 = tpu.dynamic_rotate %399 by %c64_i32_164 dim 1 : vector<8x128xf32>, i32 -> vector<8x128xf32>
    %404 = vector.extract_strided_slice %403 {offsets = [0, 0], sizes = [8, 32], strides = [1, 1]} : vector<8x128xf32> to vector<8x32xf32>
    %c32_i32_165 = arith.constant 32 : i32
    %405 = tpu.dynamic_rotate %398 by %c32_i32_165 dim 1 : vector<8x128xf32>, i32 -> vector<8x128xf32>
    %406 = vector.extract_strided_slice %405 {offsets = [0, 0], sizes = [8, 32], strides = [1, 1]} : vector<8x128xf32> to vector<8x32xf32>
    %407 = arith.mulf %402, %381 : vector<8x32xf32>
    %408 = arith.mulf %400, %404 : vector<8x32xf32>
    %409 = arith.addf %407, %408 : vector<8x32xf32>
    %410 = math.tanh %409 : vector<8x32xf32>
    %411 = arith.mulf %406, %410 : vector<8x32xf32>
    %412 = arith.index_cast %387 : i32 to index
    %c0_166 = arith.constant 0 : index
    %413 = vector.load %arg4[%412, %c0_166] : memref<64x32xf32, #tpu.memory_space<vmem>>, vector<8x32xf32>
    tpu.vector_store %arg4[%412, %c0_166], %411 {strides = array<i32>} : memref<64x32xf32, #tpu.memory_space<vmem>>, vector<8x32xf32>,
    %c6_i32_167 = arith.constant 6 : i32
    %c8_i32_168 = arith.constant 8 : i32
    %414 = arith.muli %c6_i32_167, %c8_i32_168 : i32
    %415 = tpu.assume_multiple %414, 8 : i32
    %416 = arith.index_cast %415 : i32 to index
    %c0_169 = arith.constant 0 : index
    %417 = vector.load %arg5[%416, %c0_169] : memref<64x128xf32, #tpu.memory_space<vmem>>, vector<8x128xf32>
    %cst_170 = arith.constant dense<0.000000e+00> : vector<8x128xf32>
    %418 = tpu.matmul %411, %237, %cst_170 {dimension_numbers = #tpu.dot_dimension_numbers<[1], [0], [0], [1], [0, 0, 1, 1], [], []>} : vector<8x32xf32>, vector<32x128xf32>, vector<8x128xf32> -> vector<8x128xf32>
    %419 = arith.addf %417, %418 : vector<8x128xf32>
    %cst_171 = arith.constant 5.000000e-01 : f32
    %420 = vector.broadcast %cst_171 : f32 to vector<8x128xf32>
    %421 = arith.mulf %420, %419 : vector<8x128xf32>
    %422 = math.tanh %421 : vector<8x128xf32>
    %cst_172 = arith.constant 5.000000e-01 : f32
    %423 = vector.broadcast %cst_172 : f32 to vector<8x128xf32>
    %424 = arith.mulf %423, %422 : vector<8x128xf32>
    %cst_173 = arith.constant 5.000000e-01 : f32
    %425 = vector.broadcast %cst_173 : f32 to vector<8x128xf32>
    %426 = arith.addf %424, %425 : vector<8x128xf32>
    %427 = math.tanh %419 : vector<8x128xf32>
    %428 = vector.extract_strided_slice %426 {offsets = [0, 0], sizes = [8, 32], strides = [1, 1]} : vector<8x128xf32> to vector<8x32xf32>
    %c96_i32_174 = arith.constant 96 : i32
    %429 = tpu.dynamic_rotate %426 by %c96_i32_174 dim 1 : vector<8x128xf32>, i32 -> vector<8x128xf32>
    %430 = vector.extract_strided_slice %429 {offsets = [0, 0], sizes = [8, 32], strides = [1, 1]} : vector<8x128xf32> to vector<8x32xf32>
    %c64_i32_175 = arith.constant 64 : i32
    %431 = tpu.dynamic_rotate %427 by %c64_i32_175 dim 1 : vector<8x128xf32>, i32 -> vector<8x128xf32>
    %432 = vector.extract_strided_slice %431 {offsets = [0, 0], sizes = [8, 32], strides = [1, 1]} : vector<8x128xf32> to vector<8x32xf32>
    %c32_i32_176 = arith.constant 32 : i32
    %433 = tpu.dynamic_rotate %426 by %c32_i32_176 dim 1 : vector<8x128xf32>, i32 -> vector<8x128xf32>
    %434 = vector.extract_strided_slice %433 {offsets = [0, 0], sizes = [8, 32], strides = [1, 1]} : vector<8x128xf32> to vector<8x32xf32>
    %435 = arith.mulf %430, %409 : vector<8x32xf32>
    %436 = arith.mulf %428, %432 : vector<8x32xf32>
    %437 = arith.addf %435, %436 : vector<8x32xf32>
    %438 = math.tanh %437 : vector<8x32xf32>
    %439 = arith.mulf %434, %438 : vector<8x32xf32>
    %440 = arith.index_cast %415 : i32 to index
    %c0_177 = arith.constant 0 : index
    %441 = vector.load %arg4[%440, %c0_177] : memref<64x32xf32, #tpu.memory_space<vmem>>, vector<8x32xf32>
    tpu.vector_store %arg4[%440, %c0_177], %439 {strides = array<i32>} : memref<64x32xf32, #tpu.memory_space<vmem>>, vector<8x32xf32>,
    %c7_i32_178 = arith.constant 7 : i32
    %c8_i32_179 = arith.constant 8 : i32
    %442 = arith.muli %c7_i32_178, %c8_i32_179 : i32
    %443 = tpu.assume_multiple %442, 8 : i32
    %444 = arith.index_cast %443 : i32 to index
    %c0_180 = arith.constant 0 : index
    %445 = vector.load %arg5[%444, %c0_180] : memref<64x128xf32, #tpu.memory_space<vmem>>, vector<8x128xf32>
    %cst_181 = arith.constant dense<0.000000e+00> : vector<8x128xf32>
    %446 = tpu.matmul %439, %237, %cst_181 {dimension_numbers = #tpu.dot_dimension_numbers<[1], [0], [0], [1], [0, 0, 1, 1], [], []>} : vector<8x32xf32>, vector<32x128xf32>, vector<8x128xf32> -> vector<8x128xf32>
    %447 = arith.addf %445, %446 : vector<8x128xf32>
    %cst_182 = arith.constant 5.000000e-01 : f32
    %448 = vector.broadcast %cst_182 : f32 to vector<8x128xf32>
    %449 = arith.mulf %448, %447 : vector<8x128xf32>
    %450 = math.tanh %449 : vector<8x128xf32>
    %cst_183 = arith.constant 5.000000e-01 : f32
    %451 = vector.broadcast %cst_183 : f32 to vector<8x128xf32>
    %452 = arith.mulf %451, %450 : vector<8x128xf32>
    %cst_184 = arith.constant 5.000000e-01 : f32
    %453 = vector.broadcast %cst_184 : f32 to vector<8x128xf32>
    %454 = arith.addf %452, %453 : vector<8x128xf32>
    %455 = math.tanh %447 : vector<8x128xf32>
    %456 = vector.extract_strided_slice %454 {offsets = [0, 0], sizes = [8, 32], strides = [1, 1]} : vector<8x128xf32> to vector<8x32xf32>
    %c96_i32_185 = arith.constant 96 : i32
    %457 = tpu.dynamic_rotate %454 by %c96_i32_185 dim 1 : vector<8x128xf32>, i32 -> vector<8x128xf32>
    %458 = vector.extract_strided_slice %457 {offsets = [0, 0], sizes = [8, 32], strides = [1, 1]} : vector<8x128xf32> to vector<8x32xf32>
    %c64_i32_186 = arith.constant 64 : i32
    %459 = tpu.dynamic_rotate %455 by %c64_i32_186 dim 1 : vector<8x128xf32>, i32 -> vector<8x128xf32>
    %460 = vector.extract_strided_slice %459 {offsets = [0, 0], sizes = [8, 32], strides = [1, 1]} : vector<8x128xf32> to vector<8x32xf32>
    %c32_i32_187 = arith.constant 32 : i32
    %461 = tpu.dynamic_rotate %454 by %c32_i32_187 dim 1 : vector<8x128xf32>, i32 -> vector<8x128xf32>
    %462 = vector.extract_strided_slice %461 {offsets = [0, 0], sizes = [8, 32], strides = [1, 1]} : vector<8x128xf32> to vector<8x32xf32>
    %463 = arith.mulf %458, %437 : vector<8x32xf32>
    %464 = arith.mulf %456, %460 : vector<8x32xf32>
    %465 = arith.addf %463, %464 : vector<8x32xf32>
    %466 = math.tanh %465 : vector<8x32xf32>
    %467 = arith.mulf %462, %466 : vector<8x32xf32>
    %468 = arith.index_cast %443 : i32 to index
    %c0_188 = arith.constant 0 : index
    %469 = vector.load %arg4[%468, %c0_188] : memref<64x32xf32, #tpu.memory_space<vmem>>, vector<8x32xf32>
    tpu.vector_store %arg4[%468, %c0_188], %467 {strides = array<i32>} : memref<64x32xf32, #tpu.memory_space<vmem>>, vector<8x32xf32>,
    %c8_i32_189 = arith.constant 8 : i32
    %c8_190 = arith.constant 8 : index
    %c0_191 = arith.constant 0 : index
    %470 = vector.load %arg3[%c8_190, %c0_191] : memref<88x32xf32, #tpu.memory_space<vmem>>, vector<8x32xf32>
    tpu.vector_store %arg3[%c8_190, %c0_191], %467 {strides = array<i32>} : memref<88x32xf32, #tpu.memory_space<vmem>>, vector<8x32xf32>,
    %c48_192 = arith.constant 48 : index
    %c0_193 = arith.constant 0 : index
    %471 = vector.load %arg3[%c48_192, %c0_193] : memref<88x32xf32, #tpu.memory_space<vmem>>, vector<8x32xf32>
    tpu.vector_store %arg3[%c48_192, %c0_193], %465 {strides = array<i32>} : memref<88x32xf32, #tpu.memory_space<vmem>>, vector<8x32xf32>,
    %c144 = arith.constant 144 : index
    %c0_194 = arith.constant 0 : index
    %472 = vector.load %arg1[%c144, %c0_194] : memref<368x128xf32, #tpu.memory_space<vmem>>, vector<32x128xf32>
    %c176 = arith.constant 176 : index
    %c0_195 = arith.constant 0 : index
    %473 = vector.load %arg1[%c176, %c0_195] : memref<368x128xf32, #tpu.memory_space<vmem>>, vector<32x128xf32>
    %c208 = arith.constant 208 : index
    %c0_196 = arith.constant 0 : index
    %474 = vector.load %arg1[%c208, %c0_196] : memref<368x128xf32, #tpu.memory_space<vmem>>, vector<1x128xf32>
    %c0_197 = arith.constant 0 : index
    %c0_198 = arith.constant 0 : index
    %475 = vector.load %arg4[%c0_197, %c0_198] : memref<64x32xf32, #tpu.memory_space<vmem>>, vector<64x32xf32>
    %cst_199 = arith.constant dense<0.000000e+00> : vector<64x128xf32>
    %476 = tpu.matmul %475, %472, %cst_199 {dimension_numbers = #tpu.dot_dimension_numbers<[1], [0], [0], [1], [0, 0, 1, 1], [], []>} : vector<64x32xf32>, vector<32x128xf32>, vector<64x128xf32> -> vector<64x128xf32>
    %477 = vector.broadcast %474 : vector<1x128xf32> to vector<64x128xf32>
    %478 = arith.addf %476, %477 : vector<64x128xf32>
    %c0_200 = arith.constant 0 : index
    %c0_201 = arith.constant 0 : index
    %479 = vector.load %arg5[%c0_200, %c0_201] : memref<64x128xf32, #tpu.memory_space<vmem>>, vector<64x128xf32>
    tpu.vector_store %arg5[%c0_200, %c0_201], %478 {strides = array<i32>} : memref<64x128xf32, #tpu.memory_space<vmem>>, vector<64x128xf32>,
    %c16 = arith.constant 16 : index
    %c0_202 = arith.constant 0 : index
    %480 = vector.load %arg2[%c16, %c0_202] : memref<80x32xf32, #tpu.memory_space<vmem>>, vector<8x32xf32>
    %c56 = arith.constant 56 : index
    %c0_203 = arith.constant 0 : index
    %481 = vector.load %arg2[%c56, %c0_203] : memref<80x32xf32, #tpu.memory_space<vmem>>, vector<8x32xf32>
    %c0_i32_204 = arith.constant 0 : i32
    %c8_i32_205 = arith.constant 8 : i32
    %482 = arith.muli %c0_i32_204, %c8_i32_205 : i32
    %483 = tpu.assume_multiple %482, 8 : i32
    %484 = arith.index_cast %483 : i32 to index
    %c0_206 = arith.constant 0 : index
    %485 = vector.load %arg5[%484, %c0_206] : memref<64x128xf32, #tpu.memory_space<vmem>>, vector<8x128xf32>
    %cst_207 = arith.constant dense<0.000000e+00> : vector<8x128xf32>
    %486 = tpu.matmul %480, %473, %cst_207 {dimension_numbers = #tpu.dot_dimension_numbers<[1], [0], [0], [1], [0, 0, 1, 1], [], []>} : vector<8x32xf32>, vector<32x128xf32>, vector<8x128xf32> -> vector<8x128xf32>
    %487 = arith.addf %485, %486 : vector<8x128xf32>
    %cst_208 = arith.constant 5.000000e-01 : f32
    %488 = vector.broadcast %cst_208 : f32 to vector<8x128xf32>
    %489 = arith.mulf %488, %487 : vector<8x128xf32>
    %490 = math.tanh %489 : vector<8x128xf32>
    %cst_209 = arith.constant 5.000000e-01 : f32
    %491 = vector.broadcast %cst_209 : f32 to vector<8x128xf32>
    %492 = arith.mulf %491, %490 : vector<8x128xf32>
    %cst_210 = arith.constant 5.000000e-01 : f32
    %493 = vector.broadcast %cst_210 : f32 to vector<8x128xf32>
    %494 = arith.addf %492, %493 : vector<8x128xf32>
    %495 = math.tanh %487 : vector<8x128xf32>
    %496 = vector.extract_strided_slice %494 {offsets = [0, 0], sizes = [8, 32], strides = [1, 1]} : vector<8x128xf32> to vector<8x32xf32>
    %c96_i32_211 = arith.constant 96 : i32
    %497 = tpu.dynamic_rotate %494 by %c96_i32_211 dim 1 : vector<8x128xf32>, i32 -> vector<8x128xf32>
    %498 = vector.extract_strided_slice %497 {offsets = [0, 0], sizes = [8, 32], strides = [1, 1]} : vector<8x128xf32> to vector<8x32xf32>
    %c64_i32_212 = arith.constant 64 : i32
    %499 = tpu.dynamic_rotate %495 by %c64_i32_212 dim 1 : vector<8x128xf32>, i32 -> vector<8x128xf32>
    %500 = vector.extract_strided_slice %499 {offsets = [0, 0], sizes = [8, 32], strides = [1, 1]} : vector<8x128xf32> to vector<8x32xf32>
    %c32_i32_213 = arith.constant 32 : i32
    %501 = tpu.dynamic_rotate %494 by %c32_i32_213 dim 1 : vector<8x128xf32>, i32 -> vector<8x128xf32>
    %502 = vector.extract_strided_slice %501 {offsets = [0, 0], sizes = [8, 32], strides = [1, 1]} : vector<8x128xf32> to vector<8x32xf32>
    %503 = arith.mulf %498, %481 : vector<8x32xf32>
    %504 = arith.mulf %496, %500 : vector<8x32xf32>
    %505 = arith.addf %503, %504 : vector<8x32xf32>
    %506 = math.tanh %505 : vector<8x32xf32>
    %507 = arith.mulf %502, %506 : vector<8x32xf32>
    %508 = arith.index_cast %483 : i32 to index
    %c0_214 = arith.constant 0 : index
    %509 = vector.load %arg4[%508, %c0_214] : memref<64x32xf32, #tpu.memory_space<vmem>>, vector<8x32xf32>
    tpu.vector_store %arg4[%508, %c0_214], %507 {strides = array<i32>} : memref<64x32xf32, #tpu.memory_space<vmem>>, vector<8x32xf32>,
    %c1_i32_215 = arith.constant 1 : i32
    %c8_i32_216 = arith.constant 8 : i32
    %510 = arith.muli %c1_i32_215, %c8_i32_216 : i32
    %511 = tpu.assume_multiple %510, 8 : i32
    %512 = arith.index_cast %511 : i32 to index
    %c0_217 = arith.constant 0 : index
    %513 = vector.load %arg5[%512, %c0_217] : memref<64x128xf32, #tpu.memory_space<vmem>>, vector<8x128xf32>
    %cst_218 = arith.constant dense<0.000000e+00> : vector<8x128xf32>
    %514 = tpu.matmul %507, %473, %cst_218 {dimension_numbers = #tpu.dot_dimension_numbers<[1], [0], [0], [1], [0, 0, 1, 1], [], []>} : vector<8x32xf32>, vector<32x128xf32>, vector<8x128xf32> -> vector<8x128xf32>
    %515 = arith.addf %513, %514 : vector<8x128xf32>
    %cst_219 = arith.constant 5.000000e-01 : f32
    %516 = vector.broadcast %cst_219 : f32 to vector<8x128xf32>
    %517 = arith.mulf %516, %515 : vector<8x128xf32>
    %518 = math.tanh %517 : vector<8x128xf32>
    %cst_220 = arith.constant 5.000000e-01 : f32
    %519 = vector.broadcast %cst_220 : f32 to vector<8x128xf32>
    %520 = arith.mulf %519, %518 : vector<8x128xf32>
    %cst_221 = arith.constant 5.000000e-01 : f32
    %521 = vector.broadcast %cst_221 : f32 to vector<8x128xf32>
    %522 = arith.addf %520, %521 : vector<8x128xf32>
    %523 = math.tanh %515 : vector<8x128xf32>
    %524 = vector.extract_strided_slice %522 {offsets = [0, 0], sizes = [8, 32], strides = [1, 1]} : vector<8x128xf32> to vector<8x32xf32>
    %c96_i32_222 = arith.constant 96 : i32
    %525 = tpu.dynamic_rotate %522 by %c96_i32_222 dim 1 : vector<8x128xf32>, i32 -> vector<8x128xf32>
    %526 = vector.extract_strided_slice %525 {offsets = [0, 0], sizes = [8, 32], strides = [1, 1]} : vector<8x128xf32> to vector<8x32xf32>
    %c64_i32_223 = arith.constant 64 : i32
    %527 = tpu.dynamic_rotate %523 by %c64_i32_223 dim 1 : vector<8x128xf32>, i32 -> vector<8x128xf32>
    %528 = vector.extract_strided_slice %527 {offsets = [0, 0], sizes = [8, 32], strides = [1, 1]} : vector<8x128xf32> to vector<8x32xf32>
    %c32_i32_224 = arith.constant 32 : i32
    %529 = tpu.dynamic_rotate %522 by %c32_i32_224 dim 1 : vector<8x128xf32>, i32 -> vector<8x128xf32>
    %530 = vector.extract_strided_slice %529 {offsets = [0, 0], sizes = [8, 32], strides = [1, 1]} : vector<8x128xf32> to vector<8x32xf32>
    %531 = arith.mulf %526, %505 : vector<8x32xf32>
    %532 = arith.mulf %524, %528 : vector<8x32xf32>
    %533 = arith.addf %531, %532 : vector<8x32xf32>
    %534 = math.tanh %533 : vector<8x32xf32>
    %535 = arith.mulf %530, %534 : vector<8x32xf32>
    %536 = arith.index_cast %511 : i32 to index
    %c0_225 = arith.constant 0 : index
    %537 = vector.load %arg4[%536, %c0_225] : memref<64x32xf32, #tpu.memory_space<vmem>>, vector<8x32xf32>
    tpu.vector_store %arg4[%536, %c0_225], %535 {strides = array<i32>} : memref<64x32xf32, #tpu.memory_space<vmem>>, vector<8x32xf32>,
    %c2_i32_226 = arith.constant 2 : i32
    %c8_i32_227 = arith.constant 8 : i32
    %538 = arith.muli %c2_i32_226, %c8_i32_227 : i32
    %539 = tpu.assume_multiple %538, 8 : i32
    %540 = arith.index_cast %539 : i32 to index
    %c0_228 = arith.constant 0 : index
    %541 = vector.load %arg5[%540, %c0_228] : memref<64x128xf32, #tpu.memory_space<vmem>>, vector<8x128xf32>
    %cst_229 = arith.constant dense<0.000000e+00> : vector<8x128xf32>
    %542 = tpu.matmul %535, %473, %cst_229 {dimension_numbers = #tpu.dot_dimension_numbers<[1], [0], [0], [1], [0, 0, 1, 1], [], []>} : vector<8x32xf32>, vector<32x128xf32>, vector<8x128xf32> -> vector<8x128xf32>
    %543 = arith.addf %541, %542 : vector<8x128xf32>
    %cst_230 = arith.constant 5.000000e-01 : f32
    %544 = vector.broadcast %cst_230 : f32 to vector<8x128xf32>
    %545 = arith.mulf %544, %543 : vector<8x128xf32>
    %546 = math.tanh %545 : vector<8x128xf32>
    %cst_231 = arith.constant 5.000000e-01 : f32
    %547 = vector.broadcast %cst_231 : f32 to vector<8x128xf32>
    %548 = arith.mulf %547, %546 : vector<8x128xf32>
    %cst_232 = arith.constant 5.000000e-01 : f32
    %549 = vector.broadcast %cst_232 : f32 to vector<8x128xf32>
    %550 = arith.addf %548, %549 : vector<8x128xf32>
    %551 = math.tanh %543 : vector<8x128xf32>
    %552 = vector.extract_strided_slice %550 {offsets = [0, 0], sizes = [8, 32], strides = [1, 1]} : vector<8x128xf32> to vector<8x32xf32>
    %c96_i32_233 = arith.constant 96 : i32
    %553 = tpu.dynamic_rotate %550 by %c96_i32_233 dim 1 : vector<8x128xf32>, i32 -> vector<8x128xf32>
    %554 = vector.extract_strided_slice %553 {offsets = [0, 0], sizes = [8, 32], strides = [1, 1]} : vector<8x128xf32> to vector<8x32xf32>
    %c64_i32_234 = arith.constant 64 : i32
    %555 = tpu.dynamic_rotate %551 by %c64_i32_234 dim 1 : vector<8x128xf32>, i32 -> vector<8x128xf32>
    %556 = vector.extract_strided_slice %555 {offsets = [0, 0], sizes = [8, 32], strides = [1, 1]} : vector<8x128xf32> to vector<8x32xf32>
    %c32_i32_235 = arith.constant 32 : i32
    %557 = tpu.dynamic_rotate %550 by %c32_i32_235 dim 1 : vector<8x128xf32>, i32 -> vector<8x128xf32>
    %558 = vector.extract_strided_slice %557 {offsets = [0, 0], sizes = [8, 32], strides = [1, 1]} : vector<8x128xf32> to vector<8x32xf32>
    %559 = arith.mulf %554, %533 : vector<8x32xf32>
    %560 = arith.mulf %552, %556 : vector<8x32xf32>
    %561 = arith.addf %559, %560 : vector<8x32xf32>
    %562 = math.tanh %561 : vector<8x32xf32>
    %563 = arith.mulf %558, %562 : vector<8x32xf32>
    %564 = arith.index_cast %539 : i32 to index
    %c0_236 = arith.constant 0 : index
    %565 = vector.load %arg4[%564, %c0_236] : memref<64x32xf32, #tpu.memory_space<vmem>>, vector<8x32xf32>
    tpu.vector_store %arg4[%564, %c0_236], %563 {strides = array<i32>} : memref<64x32xf32, #tpu.memory_space<vmem>>, vector<8x32xf32>,
    %c3_i32_237 = arith.constant 3 : i32
    %c8_i32_238 = arith.constant 8 : i32
    %566 = arith.muli %c3_i32_237, %c8_i32_238 : i32
    %567 = tpu.assume_multiple %566, 8 : i32
    %568 = arith.index_cast %567 : i32 to index
    %c0_239 = arith.constant 0 : index
    %569 = vector.load %arg5[%568, %c0_239] : memref<64x128xf32, #tpu.memory_space<vmem>>, vector<8x128xf32>
    %cst_240 = arith.constant dense<0.000000e+00> : vector<8x128xf32>
    %570 = tpu.matmul %563, %473, %cst_240 {dimension_numbers = #tpu.dot_dimension_numbers<[1], [0], [0], [1], [0, 0, 1, 1], [], []>} : vector<8x32xf32>, vector<32x128xf32>, vector<8x128xf32> -> vector<8x128xf32>
    %571 = arith.addf %569, %570 : vector<8x128xf32>
    %cst_241 = arith.constant 5.000000e-01 : f32
    %572 = vector.broadcast %cst_241 : f32 to vector<8x128xf32>
    %573 = arith.mulf %572, %571 : vector<8x128xf32>
    %574 = math.tanh %573 : vector<8x128xf32>
    %cst_242 = arith.constant 5.000000e-01 : f32
    %575 = vector.broadcast %cst_242 : f32 to vector<8x128xf32>
    %576 = arith.mulf %575, %574 : vector<8x128xf32>
    %cst_243 = arith.constant 5.000000e-01 : f32
    %577 = vector.broadcast %cst_243 : f32 to vector<8x128xf32>
    %578 = arith.addf %576, %577 : vector<8x128xf32>
    %579 = math.tanh %571 : vector<8x128xf32>
    %580 = vector.extract_strided_slice %578 {offsets = [0, 0], sizes = [8, 32], strides = [1, 1]} : vector<8x128xf32> to vector<8x32xf32>
    %c96_i32_244 = arith.constant 96 : i32
    %581 = tpu.dynamic_rotate %578 by %c96_i32_244 dim 1 : vector<8x128xf32>, i32 -> vector<8x128xf32>
    %582 = vector.extract_strided_slice %581 {offsets = [0, 0], sizes = [8, 32], strides = [1, 1]} : vector<8x128xf32> to vector<8x32xf32>
    %c64_i32_245 = arith.constant 64 : i32
    %583 = tpu.dynamic_rotate %579 by %c64_i32_245 dim 1 : vector<8x128xf32>, i32 -> vector<8x128xf32>
    %584 = vector.extract_strided_slice %583 {offsets = [0, 0], sizes = [8, 32], strides = [1, 1]} : vector<8x128xf32> to vector<8x32xf32>
    %c32_i32_246 = arith.constant 32 : i32
    %585 = tpu.dynamic_rotate %578 by %c32_i32_246 dim 1 : vector<8x128xf32>, i32 -> vector<8x128xf32>
    %586 = vector.extract_strided_slice %585 {offsets = [0, 0], sizes = [8, 32], strides = [1, 1]} : vector<8x128xf32> to vector<8x32xf32>
    %587 = arith.mulf %582, %561 : vector<8x32xf32>
    %588 = arith.mulf %580, %584 : vector<8x32xf32>
    %589 = arith.addf %587, %588 : vector<8x32xf32>
    %590 = math.tanh %589 : vector<8x32xf32>
    %591 = arith.mulf %586, %590 : vector<8x32xf32>
    %592 = arith.index_cast %567 : i32 to index
    %c0_247 = arith.constant 0 : index
    %593 = vector.load %arg4[%592, %c0_247] : memref<64x32xf32, #tpu.memory_space<vmem>>, vector<8x32xf32>
    tpu.vector_store %arg4[%592, %c0_247], %591 {strides = array<i32>} : memref<64x32xf32, #tpu.memory_space<vmem>>, vector<8x32xf32>,
    %c4_i32_248 = arith.constant 4 : i32
    %c8_i32_249 = arith.constant 8 : i32
    %594 = arith.muli %c4_i32_248, %c8_i32_249 : i32
    %595 = tpu.assume_multiple %594, 8 : i32
    %596 = arith.index_cast %595 : i32 to index
    %c0_250 = arith.constant 0 : index
    %597 = vector.load %arg5[%596, %c0_250] : memref<64x128xf32, #tpu.memory_space<vmem>>, vector<8x128xf32>
    %cst_251 = arith.constant dense<0.000000e+00> : vector<8x128xf32>
    %598 = tpu.matmul %591, %473, %cst_251 {dimension_numbers = #tpu.dot_dimension_numbers<[1], [0], [0], [1], [0, 0, 1, 1], [], []>} : vector<8x32xf32>, vector<32x128xf32>, vector<8x128xf32> -> vector<8x128xf32>
    %599 = arith.addf %597, %598 : vector<8x128xf32>
    %cst_252 = arith.constant 5.000000e-01 : f32
    %600 = vector.broadcast %cst_252 : f32 to vector<8x128xf32>
    %601 = arith.mulf %600, %599 : vector<8x128xf32>
    %602 = math.tanh %601 : vector<8x128xf32>
    %cst_253 = arith.constant 5.000000e-01 : f32
    %603 = vector.broadcast %cst_253 : f32 to vector<8x128xf32>
    %604 = arith.mulf %603, %602 : vector<8x128xf32>
    %cst_254 = arith.constant 5.000000e-01 : f32
    %605 = vector.broadcast %cst_254 : f32 to vector<8x128xf32>
    %606 = arith.addf %604, %605 : vector<8x128xf32>
    %607 = math.tanh %599 : vector<8x128xf32>
    %608 = vector.extract_strided_slice %606 {offsets = [0, 0], sizes = [8, 32], strides = [1, 1]} : vector<8x128xf32> to vector<8x32xf32>
    %c96_i32_255 = arith.constant 96 : i32
    %609 = tpu.dynamic_rotate %606 by %c96_i32_255 dim 1 : vector<8x128xf32>, i32 -> vector<8x128xf32>
    %610 = vector.extract_strided_slice %609 {offsets = [0, 0], sizes = [8, 32], strides = [1, 1]} : vector<8x128xf32> to vector<8x32xf32>
    %c64_i32_256 = arith.constant 64 : i32
    %611 = tpu.dynamic_rotate %607 by %c64_i32_256 dim 1 : vector<8x128xf32>, i32 -> vector<8x128xf32>
    %612 = vector.extract_strided_slice %611 {offsets = [0, 0], sizes = [8, 32], strides = [1, 1]} : vector<8x128xf32> to vector<8x32xf32>
    %c32_i32_257 = arith.constant 32 : i32
    %613 = tpu.dynamic_rotate %606 by %c32_i32_257 dim 1 : vector<8x128xf32>, i32 -> vector<8x128xf32>
    %614 = vector.extract_strided_slice %613 {offsets = [0, 0], sizes = [8, 32], strides = [1, 1]} : vector<8x128xf32> to vector<8x32xf32>
    %615 = arith.mulf %610, %589 : vector<8x32xf32>
    %616 = arith.mulf %608, %612 : vector<8x32xf32>
    %617 = arith.addf %615, %616 : vector<8x32xf32>
    %618 = math.tanh %617 : vector<8x32xf32>
    %619 = arith.mulf %614, %618 : vector<8x32xf32>
    %620 = arith.index_cast %595 : i32 to index
    %c0_258 = arith.constant 0 : index
    %621 = vector.load %arg4[%620, %c0_258] : memref<64x32xf32, #tpu.memory_space<vmem>>, vector<8x32xf32>
    tpu.vector_store %arg4[%620, %c0_258], %619 {strides = array<i32>} : memref<64x32xf32, #tpu.memory_space<vmem>>, vector<8x32xf32>,
    %c5_i32_259 = arith.constant 5 : i32
    %c8_i32_260 = arith.constant 8 : i32
    %622 = arith.muli %c5_i32_259, %c8_i32_260 : i32
    %623 = tpu.assume_multiple %622, 8 : i32
    %624 = arith.index_cast %623 : i32 to index
    %c0_261 = arith.constant 0 : index
    %625 = vector.load %arg5[%624, %c0_261] : memref<64x128xf32, #tpu.memory_space<vmem>>, vector<8x128xf32>
    %cst_262 = arith.constant dense<0.000000e+00> : vector<8x128xf32>
    %626 = tpu.matmul %619, %473, %cst_262 {dimension_numbers = #tpu.dot_dimension_numbers<[1], [0], [0], [1], [0, 0, 1, 1], [], []>} : vector<8x32xf32>, vector<32x128xf32>, vector<8x128xf32> -> vector<8x128xf32>
    %627 = arith.addf %625, %626 : vector<8x128xf32>
    %cst_263 = arith.constant 5.000000e-01 : f32
    %628 = vector.broadcast %cst_263 : f32 to vector<8x128xf32>
    %629 = arith.mulf %628, %627 : vector<8x128xf32>
    %630 = math.tanh %629 : vector<8x128xf32>
    %cst_264 = arith.constant 5.000000e-01 : f32
    %631 = vector.broadcast %cst_264 : f32 to vector<8x128xf32>
    %632 = arith.mulf %631, %630 : vector<8x128xf32>
    %cst_265 = arith.constant 5.000000e-01 : f32
    %633 = vector.broadcast %cst_265 : f32 to vector<8x128xf32>
    %634 = arith.addf %632, %633 : vector<8x128xf32>
    %635 = math.tanh %627 : vector<8x128xf32>
    %636 = vector.extract_strided_slice %634 {offsets = [0, 0], sizes = [8, 32], strides = [1, 1]} : vector<8x128xf32> to vector<8x32xf32>
    %c96_i32_266 = arith.constant 96 : i32
    %637 = tpu.dynamic_rotate %634 by %c96_i32_266 dim 1 : vector<8x128xf32>, i32 -> vector<8x128xf32>
    %638 = vector.extract_strided_slice %637 {offsets = [0, 0], sizes = [8, 32], strides = [1, 1]} : vector<8x128xf32> to vector<8x32xf32>
    %c64_i32_267 = arith.constant 64 : i32
    %639 = tpu.dynamic_rotate %635 by %c64_i32_267 dim 1 : vector<8x128xf32>, i32 -> vector<8x128xf32>
    %640 = vector.extract_strided_slice %639 {offsets = [0, 0], sizes = [8, 32], strides = [1, 1]} : vector<8x128xf32> to vector<8x32xf32>
    %c32_i32_268 = arith.constant 32 : i32
    %641 = tpu.dynamic_rotate %634 by %c32_i32_268 dim 1 : vector<8x128xf32>, i32 -> vector<8x128xf32>
    %642 = vector.extract_strided_slice %641 {offsets = [0, 0], sizes = [8, 32], strides = [1, 1]} : vector<8x128xf32> to vector<8x32xf32>
    %643 = arith.mulf %638, %617 : vector<8x32xf32>
    %644 = arith.mulf %636, %640 : vector<8x32xf32>
    %645 = arith.addf %643, %644 : vector<8x32xf32>
    %646 = math.tanh %645 : vector<8x32xf32>
    %647 = arith.mulf %642, %646 : vector<8x32xf32>
    %648 = arith.index_cast %623 : i32 to index
    %c0_269 = arith.constant 0 : index
    %649 = vector.load %arg4[%648, %c0_269] : memref<64x32xf32, #tpu.memory_space<vmem>>, vector<8x32xf32>
    tpu.vector_store %arg4[%648, %c0_269], %647 {strides = array<i32>} : memref<64x32xf32, #tpu.memory_space<vmem>>, vector<8x32xf32>,
    %c6_i32_270 = arith.constant 6 : i32
    %c8_i32_271 = arith.constant 8 : i32
    %650 = arith.muli %c6_i32_270, %c8_i32_271 : i32
    %651 = tpu.assume_multiple %650, 8 : i32
    %652 = arith.index_cast %651 : i32 to index
    %c0_272 = arith.constant 0 : index
    %653 = vector.load %arg5[%652, %c0_272] : memref<64x128xf32, #tpu.memory_space<vmem>>, vector<8x128xf32>
    %cst_273 = arith.constant dense<0.000000e+00> : vector<8x128xf32>
    %654 = tpu.matmul %647, %473, %cst_273 {dimension_numbers = #tpu.dot_dimension_numbers<[1], [0], [0], [1], [0, 0, 1, 1], [], []>} : vector<8x32xf32>, vector<32x128xf32>, vector<8x128xf32> -> vector<8x128xf32>
    %655 = arith.addf %653, %654 : vector<8x128xf32>
    %cst_274 = arith.constant 5.000000e-01 : f32
    %656 = vector.broadcast %cst_274 : f32 to vector<8x128xf32>
    %657 = arith.mulf %656, %655 : vector<8x128xf32>
    %658 = math.tanh %657 : vector<8x128xf32>
    %cst_275 = arith.constant 5.000000e-01 : f32
    %659 = vector.broadcast %cst_275 : f32 to vector<8x128xf32>
    %660 = arith.mulf %659, %658 : vector<8x128xf32>
    %cst_276 = arith.constant 5.000000e-01 : f32
    %661 = vector.broadcast %cst_276 : f32 to vector<8x128xf32>
    %662 = arith.addf %660, %661 : vector<8x128xf32>
    %663 = math.tanh %655 : vector<8x128xf32>
    %664 = vector.extract_strided_slice %662 {offsets = [0, 0], sizes = [8, 32], strides = [1, 1]} : vector<8x128xf32> to vector<8x32xf32>
    %c96_i32_277 = arith.constant 96 : i32
    %665 = tpu.dynamic_rotate %662 by %c96_i32_277 dim 1 : vector<8x128xf32>, i32 -> vector<8x128xf32>
    %666 = vector.extract_strided_slice %665 {offsets = [0, 0], sizes = [8, 32], strides = [1, 1]} : vector<8x128xf32> to vector<8x32xf32>
    %c64_i32_278 = arith.constant 64 : i32
    %667 = tpu.dynamic_rotate %663 by %c64_i32_278 dim 1 : vector<8x128xf32>, i32 -> vector<8x128xf32>
    %668 = vector.extract_strided_slice %667 {offsets = [0, 0], sizes = [8, 32], strides = [1, 1]} : vector<8x128xf32> to vector<8x32xf32>
    %c32_i32_279 = arith.constant 32 : i32
    %669 = tpu.dynamic_rotate %662 by %c32_i32_279 dim 1 : vector<8x128xf32>, i32 -> vector<8x128xf32>
    %670 = vector.extract_strided_slice %669 {offsets = [0, 0], sizes = [8, 32], strides = [1, 1]} : vector<8x128xf32> to vector<8x32xf32>
    %671 = arith.mulf %666, %645 : vector<8x32xf32>
    %672 = arith.mulf %664, %668 : vector<8x32xf32>
    %673 = arith.addf %671, %672 : vector<8x32xf32>
    %674 = math.tanh %673 : vector<8x32xf32>
    %675 = arith.mulf %670, %674 : vector<8x32xf32>
    %676 = arith.index_cast %651 : i32 to index
    %c0_280 = arith.constant 0 : index
    %677 = vector.load %arg4[%676, %c0_280] : memref<64x32xf32, #tpu.memory_space<vmem>>, vector<8x32xf32>
    tpu.vector_store %arg4[%676, %c0_280], %675 {strides = array<i32>} : memref<64x32xf32, #tpu.memory_space<vmem>>, vector<8x32xf32>,
    %c7_i32_281 = arith.constant 7 : i32
    %c8_i32_282 = arith.constant 8 : i32
    %678 = arith.muli %c7_i32_281, %c8_i32_282 : i32
    %679 = tpu.assume_multiple %678, 8 : i32
    %680 = arith.index_cast %679 : i32 to index
    %c0_283 = arith.constant 0 : index
    %681 = vector.load %arg5[%680, %c0_283] : memref<64x128xf32, #tpu.memory_space<vmem>>, vector<8x128xf32>
    %cst_284 = arith.constant dense<0.000000e+00> : vector<8x128xf32>
    %682 = tpu.matmul %675, %473, %cst_284 {dimension_numbers = #tpu.dot_dimension_numbers<[1], [0], [0], [1], [0, 0, 1, 1], [], []>} : vector<8x32xf32>, vector<32x128xf32>, vector<8x128xf32> -> vector<8x128xf32>
    %683 = arith.addf %681, %682 : vector<8x128xf32>
    %cst_285 = arith.constant 5.000000e-01 : f32
    %684 = vector.broadcast %cst_285 : f32 to vector<8x128xf32>
    %685 = arith.mulf %684, %683 : vector<8x128xf32>
    %686 = math.tanh %685 : vector<8x128xf32>
    %cst_286 = arith.constant 5.000000e-01 : f32
    %687 = vector.broadcast %cst_286 : f32 to vector<8x128xf32>
    %688 = arith.mulf %687, %686 : vector<8x128xf32>
    %cst_287 = arith.constant 5.000000e-01 : f32
    %689 = vector.broadcast %cst_287 : f32 to vector<8x128xf32>
    %690 = arith.addf %688, %689 : vector<8x128xf32>
    %691 = math.tanh %683 : vector<8x128xf32>
    %692 = vector.extract_strided_slice %690 {offsets = [0, 0], sizes = [8, 32], strides = [1, 1]} : vector<8x128xf32> to vector<8x32xf32>
    %c96_i32_288 = arith.constant 96 : i32
    %693 = tpu.dynamic_rotate %690 by %c96_i32_288 dim 1 : vector<8x128xf32>, i32 -> vector<8x128xf32>
    %694 = vector.extract_strided_slice %693 {offsets = [0, 0], sizes = [8, 32], strides = [1, 1]} : vector<8x128xf32> to vector<8x32xf32>
    %c64_i32_289 = arith.constant 64 : i32
    %695 = tpu.dynamic_rotate %691 by %c64_i32_289 dim 1 : vector<8x128xf32>, i32 -> vector<8x128xf32>
    %696 = vector.extract_strided_slice %695 {offsets = [0, 0], sizes = [8, 32], strides = [1, 1]} : vector<8x128xf32> to vector<8x32xf32>
    %c32_i32_290 = arith.constant 32 : i32
    %697 = tpu.dynamic_rotate %690 by %c32_i32_290 dim 1 : vector<8x128xf32>, i32 -> vector<8x128xf32>
    %698 = vector.extract_strided_slice %697 {offsets = [0, 0], sizes = [8, 32], strides = [1, 1]} : vector<8x128xf32> to vector<8x32xf32>
    %699 = arith.mulf %694, %673 : vector<8x32xf32>
    %700 = arith.mulf %692, %696 : vector<8x32xf32>
    %701 = arith.addf %699, %700 : vector<8x32xf32>
    %702 = math.tanh %701 : vector<8x32xf32>
    %703 = arith.mulf %698, %702 : vector<8x32xf32>
    %704 = arith.index_cast %679 : i32 to index
    %c0_291 = arith.constant 0 : index
    %705 = vector.load %arg4[%704, %c0_291] : memref<64x32xf32, #tpu.memory_space<vmem>>, vector<8x32xf32>
    tpu.vector_store %arg4[%704, %c0_291], %703 {strides = array<i32>} : memref<64x32xf32, #tpu.memory_space<vmem>>, vector<8x32xf32>,
    %c8_i32_292 = arith.constant 8 : i32
    %c16_293 = arith.constant 16 : index
    %c0_294 = arith.constant 0 : index
    %706 = vector.load %arg3[%c16_293, %c0_294] : memref<88x32xf32, #tpu.memory_space<vmem>>, vector<8x32xf32>
    tpu.vector_store %arg3[%c16_293, %c0_294], %703 {strides = array<i32>} : memref<88x32xf32, #tpu.memory_space<vmem>>, vector<8x32xf32>,
    %c56_295 = arith.constant 56 : index
    %c0_296 = arith.constant 0 : index
    %707 = vector.load %arg3[%c56_295, %c0_296] : memref<88x32xf32, #tpu.memory_space<vmem>>, vector<8x32xf32>
    tpu.vector_store %arg3[%c56_295, %c0_296], %701 {strides = array<i32>} : memref<88x32xf32, #tpu.memory_space<vmem>>, vector<8x32xf32>,
    %c216 = arith.constant 216 : index
    %c0_297 = arith.constant 0 : index
    %708 = vector.load %arg1[%c216, %c0_297] : memref<368x128xf32, #tpu.memory_space<vmem>>, vector<32x128xf32>
    %c248 = arith.constant 248 : index
    %c0_298 = arith.constant 0 : index
    %709 = vector.load %arg1[%c248, %c0_298] : memref<368x128xf32, #tpu.memory_space<vmem>>, vector<32x128xf32>
    %c280 = arith.constant 280 : index
    %c0_299 = arith.constant 0 : index
    %710 = vector.load %arg1[%c280, %c0_299] : memref<368x128xf32, #tpu.memory_space<vmem>>, vector<1x128xf32>
    %c0_300 = arith.constant 0 : index
    %c0_301 = arith.constant 0 : index
    %711 = vector.load %arg4[%c0_300, %c0_301] : memref<64x32xf32, #tpu.memory_space<vmem>>, vector<64x32xf32>
    %cst_302 = arith.constant dense<0.000000e+00> : vector<64x128xf32>
    %712 = tpu.matmul %711, %708, %cst_302 {dimension_numbers = #tpu.dot_dimension_numbers<[1], [0], [0], [1], [0, 0, 1, 1], [], []>} : vector<64x32xf32>, vector<32x128xf32>, vector<64x128xf32> -> vector<64x128xf32>
    %713 = vector.broadcast %710 : vector<1x128xf32> to vector<64x128xf32>
    %714 = arith.addf %712, %713 : vector<64x128xf32>
    %c0_303 = arith.constant 0 : index
    %c0_304 = arith.constant 0 : index
    %715 = vector.load %arg5[%c0_303, %c0_304] : memref<64x128xf32, #tpu.memory_space<vmem>>, vector<64x128xf32>
    tpu.vector_store %arg5[%c0_303, %c0_304], %714 {strides = array<i32>} : memref<64x128xf32, #tpu.memory_space<vmem>>, vector<64x128xf32>,
    %c24 = arith.constant 24 : index
    %c0_305 = arith.constant 0 : index
    %716 = vector.load %arg2[%c24, %c0_305] : memref<80x32xf32, #tpu.memory_space<vmem>>, vector<8x32xf32>
    %c64_306 = arith.constant 64 : index
    %c0_307 = arith.constant 0 : index
    %717 = vector.load %arg2[%c64_306, %c0_307] : memref<80x32xf32, #tpu.memory_space<vmem>>, vector<8x32xf32>
    %c0_i32_308 = arith.constant 0 : i32
    %c8_i32_309 = arith.constant 8 : i32
    %718 = arith.muli %c0_i32_308, %c8_i32_309 : i32
    %719 = tpu.assume_multiple %718, 8 : i32
    %720 = arith.index_cast %719 : i32 to index
    %c0_310 = arith.constant 0 : index
    %721 = vector.load %arg5[%720, %c0_310] : memref<64x128xf32, #tpu.memory_space<vmem>>, vector<8x128xf32>
    %cst_311 = arith.constant dense<0.000000e+00> : vector<8x128xf32>
    %722 = tpu.matmul %716, %709, %cst_311 {dimension_numbers = #tpu.dot_dimension_numbers<[1], [0], [0], [1], [0, 0, 1, 1], [], []>} : vector<8x32xf32>, vector<32x128xf32>, vector<8x128xf32> -> vector<8x128xf32>
    %723 = arith.addf %721, %722 : vector<8x128xf32>
    %cst_312 = arith.constant 5.000000e-01 : f32
    %724 = vector.broadcast %cst_312 : f32 to vector<8x128xf32>
    %725 = arith.mulf %724, %723 : vector<8x128xf32>
    %726 = math.tanh %725 : vector<8x128xf32>
    %cst_313 = arith.constant 5.000000e-01 : f32
    %727 = vector.broadcast %cst_313 : f32 to vector<8x128xf32>
    %728 = arith.mulf %727, %726 : vector<8x128xf32>
    %cst_314 = arith.constant 5.000000e-01 : f32
    %729 = vector.broadcast %cst_314 : f32 to vector<8x128xf32>
    %730 = arith.addf %728, %729 : vector<8x128xf32>
    %731 = math.tanh %723 : vector<8x128xf32>
    %732 = vector.extract_strided_slice %730 {offsets = [0, 0], sizes = [8, 32], strides = [1, 1]} : vector<8x128xf32> to vector<8x32xf32>
    %c96_i32_315 = arith.constant 96 : i32
    %733 = tpu.dynamic_rotate %730 by %c96_i32_315 dim 1 : vector<8x128xf32>, i32 -> vector<8x128xf32>
    %734 = vector.extract_strided_slice %733 {offsets = [0, 0], sizes = [8, 32], strides = [1, 1]} : vector<8x128xf32> to vector<8x32xf32>
    %c64_i32_316 = arith.constant 64 : i32
    %735 = tpu.dynamic_rotate %731 by %c64_i32_316 dim 1 : vector<8x128xf32>, i32 -> vector<8x128xf32>
    %736 = vector.extract_strided_slice %735 {offsets = [0, 0], sizes = [8, 32], strides = [1, 1]} : vector<8x128xf32> to vector<8x32xf32>
    %c32_i32_317 = arith.constant 32 : i32
    %737 = tpu.dynamic_rotate %730 by %c32_i32_317 dim 1 : vector<8x128xf32>, i32 -> vector<8x128xf32>
    %738 = vector.extract_strided_slice %737 {offsets = [0, 0], sizes = [8, 32], strides = [1, 1]} : vector<8x128xf32> to vector<8x32xf32>
    %739 = arith.mulf %734, %717 : vector<8x32xf32>
    %740 = arith.mulf %732, %736 : vector<8x32xf32>
    %741 = arith.addf %739, %740 : vector<8x32xf32>
    %742 = math.tanh %741 : vector<8x32xf32>
    %743 = arith.mulf %738, %742 : vector<8x32xf32>
    %744 = arith.index_cast %719 : i32 to index
    %c0_318 = arith.constant 0 : index
    %745 = vector.load %arg4[%744, %c0_318] : memref<64x32xf32, #tpu.memory_space<vmem>>, vector<8x32xf32>
    tpu.vector_store %arg4[%744, %c0_318], %743 {strides = array<i32>} : memref<64x32xf32, #tpu.memory_space<vmem>>, vector<8x32xf32>,
    %c1_i32_319 = arith.constant 1 : i32
    %c8_i32_320 = arith.constant 8 : i32
    %746 = arith.muli %c1_i32_319, %c8_i32_320 : i32
    %747 = tpu.assume_multiple %746, 8 : i32
    %748 = arith.index_cast %747 : i32 to index
    %c0_321 = arith.constant 0 : index
    %749 = vector.load %arg5[%748, %c0_321] : memref<64x128xf32, #tpu.memory_space<vmem>>, vector<8x128xf32>
    %cst_322 = arith.constant dense<0.000000e+00> : vector<8x128xf32>
    %750 = tpu.matmul %743, %709, %cst_322 {dimension_numbers = #tpu.dot_dimension_numbers<[1], [0], [0], [1], [0, 0, 1, 1], [], []>} : vector<8x32xf32>, vector<32x128xf32>, vector<8x128xf32> -> vector<8x128xf32>
    %751 = arith.addf %749, %750 : vector<8x128xf32>
    %cst_323 = arith.constant 5.000000e-01 : f32
    %752 = vector.broadcast %cst_323 : f32 to vector<8x128xf32>
    %753 = arith.mulf %752, %751 : vector<8x128xf32>
    %754 = math.tanh %753 : vector<8x128xf32>
    %cst_324 = arith.constant 5.000000e-01 : f32
    %755 = vector.broadcast %cst_324 : f32 to vector<8x128xf32>
    %756 = arith.mulf %755, %754 : vector<8x128xf32>
    %cst_325 = arith.constant 5.000000e-01 : f32
    %757 = vector.broadcast %cst_325 : f32 to vector<8x128xf32>
    %758 = arith.addf %756, %757 : vector<8x128xf32>
    %759 = math.tanh %751 : vector<8x128xf32>
    %760 = vector.extract_strided_slice %758 {offsets = [0, 0], sizes = [8, 32], strides = [1, 1]} : vector<8x128xf32> to vector<8x32xf32>
    %c96_i32_326 = arith.constant 96 : i32
    %761 = tpu.dynamic_rotate %758 by %c96_i32_326 dim 1 : vector<8x128xf32>, i32 -> vector<8x128xf32>
    %762 = vector.extract_strided_slice %761 {offsets = [0, 0], sizes = [8, 32], strides = [1, 1]} : vector<8x128xf32> to vector<8x32xf32>
    %c64_i32_327 = arith.constant 64 : i32
    %763 = tpu.dynamic_rotate %759 by %c64_i32_327 dim 1 : vector<8x128xf32>, i32 -> vector<8x128xf32>
    %764 = vector.extract_strided_slice %763 {offsets = [0, 0], sizes = [8, 32], strides = [1, 1]} : vector<8x128xf32> to vector<8x32xf32>
    %c32_i32_328 = arith.constant 32 : i32
    %765 = tpu.dynamic_rotate %758 by %c32_i32_328 dim 1 : vector<8x128xf32>, i32 -> vector<8x128xf32>
    %766 = vector.extract_strided_slice %765 {offsets = [0, 0], sizes = [8, 32], strides = [1, 1]} : vector<8x128xf32> to vector<8x32xf32>
    %767 = arith.mulf %762, %741 : vector<8x32xf32>
    %768 = arith.mulf %760, %764 : vector<8x32xf32>
    %769 = arith.addf %767, %768 : vector<8x32xf32>
    %770 = math.tanh %769 : vector<8x32xf32>
    %771 = arith.mulf %766, %770 : vector<8x32xf32>
    %772 = arith.index_cast %747 : i32 to index
    %c0_329 = arith.constant 0 : index
    %773 = vector.load %arg4[%772, %c0_329] : memref<64x32xf32, #tpu.memory_space<vmem>>, vector<8x32xf32>
    tpu.vector_store %arg4[%772, %c0_329], %771 {strides = array<i32>} : memref<64x32xf32, #tpu.memory_space<vmem>>, vector<8x32xf32>,
    %c2_i32_330 = arith.constant 2 : i32
    %c8_i32_331 = arith.constant 8 : i32
    %774 = arith.muli %c2_i32_330, %c8_i32_331 : i32
    %775 = tpu.assume_multiple %774, 8 : i32
    %776 = arith.index_cast %775 : i32 to index
    %c0_332 = arith.constant 0 : index
    %777 = vector.load %arg5[%776, %c0_332] : memref<64x128xf32, #tpu.memory_space<vmem>>, vector<8x128xf32>
    %cst_333 = arith.constant dense<0.000000e+00> : vector<8x128xf32>
    %778 = tpu.matmul %771, %709, %cst_333 {dimension_numbers = #tpu.dot_dimension_numbers<[1], [0], [0], [1], [0, 0, 1, 1], [], []>} : vector<8x32xf32>, vector<32x128xf32>, vector<8x128xf32> -> vector<8x128xf32>
    %779 = arith.addf %777, %778 : vector<8x128xf32>
    %cst_334 = arith.constant 5.000000e-01 : f32
    %780 = vector.broadcast %cst_334 : f32 to vector<8x128xf32>
    %781 = arith.mulf %780, %779 : vector<8x128xf32>
    %782 = math.tanh %781 : vector<8x128xf32>
    %cst_335 = arith.constant 5.000000e-01 : f32
    %783 = vector.broadcast %cst_335 : f32 to vector<8x128xf32>
    %784 = arith.mulf %783, %782 : vector<8x128xf32>
    %cst_336 = arith.constant 5.000000e-01 : f32
    %785 = vector.broadcast %cst_336 : f32 to vector<8x128xf32>
    %786 = arith.addf %784, %785 : vector<8x128xf32>
    %787 = math.tanh %779 : vector<8x128xf32>
    %788 = vector.extract_strided_slice %786 {offsets = [0, 0], sizes = [8, 32], strides = [1, 1]} : vector<8x128xf32> to vector<8x32xf32>
    %c96_i32_337 = arith.constant 96 : i32
    %789 = tpu.dynamic_rotate %786 by %c96_i32_337 dim 1 : vector<8x128xf32>, i32 -> vector<8x128xf32>
    %790 = vector.extract_strided_slice %789 {offsets = [0, 0], sizes = [8, 32], strides = [1, 1]} : vector<8x128xf32> to vector<8x32xf32>
    %c64_i32_338 = arith.constant 64 : i32
    %791 = tpu.dynamic_rotate %787 by %c64_i32_338 dim 1 : vector<8x128xf32>, i32 -> vector<8x128xf32>
    %792 = vector.extract_strided_slice %791 {offsets = [0, 0], sizes = [8, 32], strides = [1, 1]} : vector<8x128xf32> to vector<8x32xf32>
    %c32_i32_339 = arith.constant 32 : i32
    %793 = tpu.dynamic_rotate %786 by %c32_i32_339 dim 1 : vector<8x128xf32>, i32 -> vector<8x128xf32>
    %794 = vector.extract_strided_slice %793 {offsets = [0, 0], sizes = [8, 32], strides = [1, 1]} : vector<8x128xf32> to vector<8x32xf32>
    %795 = arith.mulf %790, %769 : vector<8x32xf32>
    %796 = arith.mulf %788, %792 : vector<8x32xf32>
    %797 = arith.addf %795, %796 : vector<8x32xf32>
    %798 = math.tanh %797 : vector<8x32xf32>
    %799 = arith.mulf %794, %798 : vector<8x32xf32>
    %800 = arith.index_cast %775 : i32 to index
    %c0_340 = arith.constant 0 : index
    %801 = vector.load %arg4[%800, %c0_340] : memref<64x32xf32, #tpu.memory_space<vmem>>, vector<8x32xf32>
    tpu.vector_store %arg4[%800, %c0_340], %799 {strides = array<i32>} : memref<64x32xf32, #tpu.memory_space<vmem>>, vector<8x32xf32>,
    %c3_i32_341 = arith.constant 3 : i32
    %c8_i32_342 = arith.constant 8 : i32
    %802 = arith.muli %c3_i32_341, %c8_i32_342 : i32
    %803 = tpu.assume_multiple %802, 8 : i32
    %804 = arith.index_cast %803 : i32 to index
    %c0_343 = arith.constant 0 : index
    %805 = vector.load %arg5[%804, %c0_343] : memref<64x128xf32, #tpu.memory_space<vmem>>, vector<8x128xf32>
    %cst_344 = arith.constant dense<0.000000e+00> : vector<8x128xf32>
    %806 = tpu.matmul %799, %709, %cst_344 {dimension_numbers = #tpu.dot_dimension_numbers<[1], [0], [0], [1], [0, 0, 1, 1], [], []>} : vector<8x32xf32>, vector<32x128xf32>, vector<8x128xf32> -> vector<8x128xf32>
    %807 = arith.addf %805, %806 : vector<8x128xf32>
    %cst_345 = arith.constant 5.000000e-01 : f32
    %808 = vector.broadcast %cst_345 : f32 to vector<8x128xf32>
    %809 = arith.mulf %808, %807 : vector<8x128xf32>
    %810 = math.tanh %809 : vector<8x128xf32>
    %cst_346 = arith.constant 5.000000e-01 : f32
    %811 = vector.broadcast %cst_346 : f32 to vector<8x128xf32>
    %812 = arith.mulf %811, %810 : vector<8x128xf32>
    %cst_347 = arith.constant 5.000000e-01 : f32
    %813 = vector.broadcast %cst_347 : f32 to vector<8x128xf32>
    %814 = arith.addf %812, %813 : vector<8x128xf32>
    %815 = math.tanh %807 : vector<8x128xf32>
    %816 = vector.extract_strided_slice %814 {offsets = [0, 0], sizes = [8, 32], strides = [1, 1]} : vector<8x128xf32> to vector<8x32xf32>
    %c96_i32_348 = arith.constant 96 : i32
    %817 = tpu.dynamic_rotate %814 by %c96_i32_348 dim 1 : vector<8x128xf32>, i32 -> vector<8x128xf32>
    %818 = vector.extract_strided_slice %817 {offsets = [0, 0], sizes = [8, 32], strides = [1, 1]} : vector<8x128xf32> to vector<8x32xf32>
    %c64_i32_349 = arith.constant 64 : i32
    %819 = tpu.dynamic_rotate %815 by %c64_i32_349 dim 1 : vector<8x128xf32>, i32 -> vector<8x128xf32>
    %820 = vector.extract_strided_slice %819 {offsets = [0, 0], sizes = [8, 32], strides = [1, 1]} : vector<8x128xf32> to vector<8x32xf32>
    %c32_i32_350 = arith.constant 32 : i32
    %821 = tpu.dynamic_rotate %814 by %c32_i32_350 dim 1 : vector<8x128xf32>, i32 -> vector<8x128xf32>
    %822 = vector.extract_strided_slice %821 {offsets = [0, 0], sizes = [8, 32], strides = [1, 1]} : vector<8x128xf32> to vector<8x32xf32>
    %823 = arith.mulf %818, %797 : vector<8x32xf32>
    %824 = arith.mulf %816, %820 : vector<8x32xf32>
    %825 = arith.addf %823, %824 : vector<8x32xf32>
    %826 = math.tanh %825 : vector<8x32xf32>
    %827 = arith.mulf %822, %826 : vector<8x32xf32>
    %828 = arith.index_cast %803 : i32 to index
    %c0_351 = arith.constant 0 : index
    %829 = vector.load %arg4[%828, %c0_351] : memref<64x32xf32, #tpu.memory_space<vmem>>, vector<8x32xf32>
    tpu.vector_store %arg4[%828, %c0_351], %827 {strides = array<i32>} : memref<64x32xf32, #tpu.memory_space<vmem>>, vector<8x32xf32>,
    %c4_i32_352 = arith.constant 4 : i32
    %c8_i32_353 = arith.constant 8 : i32
    %830 = arith.muli %c4_i32_352, %c8_i32_353 : i32
    %831 = tpu.assume_multiple %830, 8 : i32
    %832 = arith.index_cast %831 : i32 to index
    %c0_354 = arith.constant 0 : index
    %833 = vector.load %arg5[%832, %c0_354] : memref<64x128xf32, #tpu.memory_space<vmem>>, vector<8x128xf32>
    %cst_355 = arith.constant dense<0.000000e+00> : vector<8x128xf32>
    %834 = tpu.matmul %827, %709, %cst_355 {dimension_numbers = #tpu.dot_dimension_numbers<[1], [0], [0], [1], [0, 0, 1, 1], [], []>} : vector<8x32xf32>, vector<32x128xf32>, vector<8x128xf32> -> vector<8x128xf32>
    %835 = arith.addf %833, %834 : vector<8x128xf32>
    %cst_356 = arith.constant 5.000000e-01 : f32
    %836 = vector.broadcast %cst_356 : f32 to vector<8x128xf32>
    %837 = arith.mulf %836, %835 : vector<8x128xf32>
    %838 = math.tanh %837 : vector<8x128xf32>
    %cst_357 = arith.constant 5.000000e-01 : f32
    %839 = vector.broadcast %cst_357 : f32 to vector<8x128xf32>
    %840 = arith.mulf %839, %838 : vector<8x128xf32>
    %cst_358 = arith.constant 5.000000e-01 : f32
    %841 = vector.broadcast %cst_358 : f32 to vector<8x128xf32>
    %842 = arith.addf %840, %841 : vector<8x128xf32>
    %843 = math.tanh %835 : vector<8x128xf32>
    %844 = vector.extract_strided_slice %842 {offsets = [0, 0], sizes = [8, 32], strides = [1, 1]} : vector<8x128xf32> to vector<8x32xf32>
    %c96_i32_359 = arith.constant 96 : i32
    %845 = tpu.dynamic_rotate %842 by %c96_i32_359 dim 1 : vector<8x128xf32>, i32 -> vector<8x128xf32>
    %846 = vector.extract_strided_slice %845 {offsets = [0, 0], sizes = [8, 32], strides = [1, 1]} : vector<8x128xf32> to vector<8x32xf32>
    %c64_i32_360 = arith.constant 64 : i32
    %847 = tpu.dynamic_rotate %843 by %c64_i32_360 dim 1 : vector<8x128xf32>, i32 -> vector<8x128xf32>
    %848 = vector.extract_strided_slice %847 {offsets = [0, 0], sizes = [8, 32], strides = [1, 1]} : vector<8x128xf32> to vector<8x32xf32>
    %c32_i32_361 = arith.constant 32 : i32
    %849 = tpu.dynamic_rotate %842 by %c32_i32_361 dim 1 : vector<8x128xf32>, i32 -> vector<8x128xf32>
    %850 = vector.extract_strided_slice %849 {offsets = [0, 0], sizes = [8, 32], strides = [1, 1]} : vector<8x128xf32> to vector<8x32xf32>
    %851 = arith.mulf %846, %825 : vector<8x32xf32>
    %852 = arith.mulf %844, %848 : vector<8x32xf32>
    %853 = arith.addf %851, %852 : vector<8x32xf32>
    %854 = math.tanh %853 : vector<8x32xf32>
    %855 = arith.mulf %850, %854 : vector<8x32xf32>
    %856 = arith.index_cast %831 : i32 to index
    %c0_362 = arith.constant 0 : index
    %857 = vector.load %arg4[%856, %c0_362] : memref<64x32xf32, #tpu.memory_space<vmem>>, vector<8x32xf32>
    tpu.vector_store %arg4[%856, %c0_362], %855 {strides = array<i32>} : memref<64x32xf32, #tpu.memory_space<vmem>>, vector<8x32xf32>,
    %c5_i32_363 = arith.constant 5 : i32
    %c8_i32_364 = arith.constant 8 : i32
    %858 = arith.muli %c5_i32_363, %c8_i32_364 : i32
    %859 = tpu.assume_multiple %858, 8 : i32
    %860 = arith.index_cast %859 : i32 to index
    %c0_365 = arith.constant 0 : index
    %861 = vector.load %arg5[%860, %c0_365] : memref<64x128xf32, #tpu.memory_space<vmem>>, vector<8x128xf32>
    %cst_366 = arith.constant dense<0.000000e+00> : vector<8x128xf32>
    %862 = tpu.matmul %855, %709, %cst_366 {dimension_numbers = #tpu.dot_dimension_numbers<[1], [0], [0], [1], [0, 0, 1, 1], [], []>} : vector<8x32xf32>, vector<32x128xf32>, vector<8x128xf32> -> vector<8x128xf32>
    %863 = arith.addf %861, %862 : vector<8x128xf32>
    %cst_367 = arith.constant 5.000000e-01 : f32
    %864 = vector.broadcast %cst_367 : f32 to vector<8x128xf32>
    %865 = arith.mulf %864, %863 : vector<8x128xf32>
    %866 = math.tanh %865 : vector<8x128xf32>
    %cst_368 = arith.constant 5.000000e-01 : f32
    %867 = vector.broadcast %cst_368 : f32 to vector<8x128xf32>
    %868 = arith.mulf %867, %866 : vector<8x128xf32>
    %cst_369 = arith.constant 5.000000e-01 : f32
    %869 = vector.broadcast %cst_369 : f32 to vector<8x128xf32>
    %870 = arith.addf %868, %869 : vector<8x128xf32>
    %871 = math.tanh %863 : vector<8x128xf32>
    %872 = vector.extract_strided_slice %870 {offsets = [0, 0], sizes = [8, 32], strides = [1, 1]} : vector<8x128xf32> to vector<8x32xf32>
    %c96_i32_370 = arith.constant 96 : i32
    %873 = tpu.dynamic_rotate %870 by %c96_i32_370 dim 1 : vector<8x128xf32>, i32 -> vector<8x128xf32>
    %874 = vector.extract_strided_slice %873 {offsets = [0, 0], sizes = [8, 32], strides = [1, 1]} : vector<8x128xf32> to vector<8x32xf32>
    %c64_i32_371 = arith.constant 64 : i32
    %875 = tpu.dynamic_rotate %871 by %c64_i32_371 dim 1 : vector<8x128xf32>, i32 -> vector<8x128xf32>
    %876 = vector.extract_strided_slice %875 {offsets = [0, 0], sizes = [8, 32], strides = [1, 1]} : vector<8x128xf32> to vector<8x32xf32>
    %c32_i32_372 = arith.constant 32 : i32
    %877 = tpu.dynamic_rotate %870 by %c32_i32_372 dim 1 : vector<8x128xf32>, i32 -> vector<8x128xf32>
    %878 = vector.extract_strided_slice %877 {offsets = [0, 0], sizes = [8, 32], strides = [1, 1]} : vector<8x128xf32> to vector<8x32xf32>
    %879 = arith.mulf %874, %853 : vector<8x32xf32>
    %880 = arith.mulf %872, %876 : vector<8x32xf32>
    %881 = arith.addf %879, %880 : vector<8x32xf32>
    %882 = math.tanh %881 : vector<8x32xf32>
    %883 = arith.mulf %878, %882 : vector<8x32xf32>
    %884 = arith.index_cast %859 : i32 to index
    %c0_373 = arith.constant 0 : index
    %885 = vector.load %arg4[%884, %c0_373] : memref<64x32xf32, #tpu.memory_space<vmem>>, vector<8x32xf32>
    tpu.vector_store %arg4[%884, %c0_373], %883 {strides = array<i32>} : memref<64x32xf32, #tpu.memory_space<vmem>>, vector<8x32xf32>,
    %c6_i32_374 = arith.constant 6 : i32
    %c8_i32_375 = arith.constant 8 : i32
    %886 = arith.muli %c6_i32_374, %c8_i32_375 : i32
    %887 = tpu.assume_multiple %886, 8 : i32
    %888 = arith.index_cast %887 : i32 to index
    %c0_376 = arith.constant 0 : index
    %889 = vector.load %arg5[%888, %c0_376] : memref<64x128xf32, #tpu.memory_space<vmem>>, vector<8x128xf32>
    %cst_377 = arith.constant dense<0.000000e+00> : vector<8x128xf32>
    %890 = tpu.matmul %883, %709, %cst_377 {dimension_numbers = #tpu.dot_dimension_numbers<[1], [0], [0], [1], [0, 0, 1, 1], [], []>} : vector<8x32xf32>, vector<32x128xf32>, vector<8x128xf32> -> vector<8x128xf32>
    %891 = arith.addf %889, %890 : vector<8x128xf32>
    %cst_378 = arith.constant 5.000000e-01 : f32
    %892 = vector.broadcast %cst_378 : f32 to vector<8x128xf32>
    %893 = arith.mulf %892, %891 : vector<8x128xf32>
    %894 = math.tanh %893 : vector<8x128xf32>
    %cst_379 = arith.constant 5.000000e-01 : f32
    %895 = vector.broadcast %cst_379 : f32 to vector<8x128xf32>
    %896 = arith.mulf %895, %894 : vector<8x128xf32>
    %cst_380 = arith.constant 5.000000e-01 : f32
    %897 = vector.broadcast %cst_380 : f32 to vector<8x128xf32>
    %898 = arith.addf %896, %897 : vector<8x128xf32>
    %899 = math.tanh %891 : vector<8x128xf32>
    %900 = vector.extract_strided_slice %898 {offsets = [0, 0], sizes = [8, 32], strides = [1, 1]} : vector<8x128xf32> to vector<8x32xf32>
    %c96_i32_381 = arith.constant 96 : i32
    %901 = tpu.dynamic_rotate %898 by %c96_i32_381 dim 1 : vector<8x128xf32>, i32 -> vector<8x128xf32>
    %902 = vector.extract_strided_slice %901 {offsets = [0, 0], sizes = [8, 32], strides = [1, 1]} : vector<8x128xf32> to vector<8x32xf32>
    %c64_i32_382 = arith.constant 64 : i32
    %903 = tpu.dynamic_rotate %899 by %c64_i32_382 dim 1 : vector<8x128xf32>, i32 -> vector<8x128xf32>
    %904 = vector.extract_strided_slice %903 {offsets = [0, 0], sizes = [8, 32], strides = [1, 1]} : vector<8x128xf32> to vector<8x32xf32>
    %c32_i32_383 = arith.constant 32 : i32
    %905 = tpu.dynamic_rotate %898 by %c32_i32_383 dim 1 : vector<8x128xf32>, i32 -> vector<8x128xf32>
    %906 = vector.extract_strided_slice %905 {offsets = [0, 0], sizes = [8, 32], strides = [1, 1]} : vector<8x128xf32> to vector<8x32xf32>
    %907 = arith.mulf %902, %881 : vector<8x32xf32>
    %908 = arith.mulf %900, %904 : vector<8x32xf32>
    %909 = arith.addf %907, %908 : vector<8x32xf32>
    %910 = math.tanh %909 : vector<8x32xf32>
    %911 = arith.mulf %906, %910 : vector<8x32xf32>
    %912 = arith.index_cast %887 : i32 to index
    %c0_384 = arith.constant 0 : index
    %913 = vector.load %arg4[%912, %c0_384] : memref<64x32xf32, #tpu.memory_space<vmem>>, vector<8x32xf32>
    tpu.vector_store %arg4[%912, %c0_384], %911 {strides = array<i32>} : memref<64x32xf32, #tpu.memory_space<vmem>>, vector<8x32xf32>,
    %c7_i32_385 = arith.constant 7 : i32
    %c8_i32_386 = arith.constant 8 : i32
    %914 = arith.muli %c7_i32_385, %c8_i32_386 : i32
    %915 = tpu.assume_multiple %914, 8 : i32
    %916 = arith.index_cast %915 : i32 to index
    %c0_387 = arith.constant 0 : index
    %917 = vector.load %arg5[%916, %c0_387] : memref<64x128xf32, #tpu.memory_space<vmem>>, vector<8x128xf32>
    %cst_388 = arith.constant dense<0.000000e+00> : vector<8x128xf32>
    %918 = tpu.matmul %911, %709, %cst_388 {dimension_numbers = #tpu.dot_dimension_numbers<[1], [0], [0], [1], [0, 0, 1, 1], [], []>} : vector<8x32xf32>, vector<32x128xf32>, vector<8x128xf32> -> vector<8x128xf32>
    %919 = arith.addf %917, %918 : vector<8x128xf32>
    %cst_389 = arith.constant 5.000000e-01 : f32
    %920 = vector.broadcast %cst_389 : f32 to vector<8x128xf32>
    %921 = arith.mulf %920, %919 : vector<8x128xf32>
    %922 = math.tanh %921 : vector<8x128xf32>
    %cst_390 = arith.constant 5.000000e-01 : f32
    %923 = vector.broadcast %cst_390 : f32 to vector<8x128xf32>
    %924 = arith.mulf %923, %922 : vector<8x128xf32>
    %cst_391 = arith.constant 5.000000e-01 : f32
    %925 = vector.broadcast %cst_391 : f32 to vector<8x128xf32>
    %926 = arith.addf %924, %925 : vector<8x128xf32>
    %927 = math.tanh %919 : vector<8x128xf32>
    %928 = vector.extract_strided_slice %926 {offsets = [0, 0], sizes = [8, 32], strides = [1, 1]} : vector<8x128xf32> to vector<8x32xf32>
    %c96_i32_392 = arith.constant 96 : i32
    %929 = tpu.dynamic_rotate %926 by %c96_i32_392 dim 1 : vector<8x128xf32>, i32 -> vector<8x128xf32>
    %930 = vector.extract_strided_slice %929 {offsets = [0, 0], sizes = [8, 32], strides = [1, 1]} : vector<8x128xf32> to vector<8x32xf32>
    %c64_i32_393 = arith.constant 64 : i32
    %931 = tpu.dynamic_rotate %927 by %c64_i32_393 dim 1 : vector<8x128xf32>, i32 -> vector<8x128xf32>
    %932 = vector.extract_strided_slice %931 {offsets = [0, 0], sizes = [8, 32], strides = [1, 1]} : vector<8x128xf32> to vector<8x32xf32>
    %c32_i32_394 = arith.constant 32 : i32
    %933 = tpu.dynamic_rotate %926 by %c32_i32_394 dim 1 : vector<8x128xf32>, i32 -> vector<8x128xf32>
    %934 = vector.extract_strided_slice %933 {offsets = [0, 0], sizes = [8, 32], strides = [1, 1]} : vector<8x128xf32> to vector<8x32xf32>
    %935 = arith.mulf %930, %909 : vector<8x32xf32>
    %936 = arith.mulf %928, %932 : vector<8x32xf32>
    %937 = arith.addf %935, %936 : vector<8x32xf32>
    %938 = math.tanh %937 : vector<8x32xf32>
    %939 = arith.mulf %934, %938 : vector<8x32xf32>
    %940 = arith.index_cast %915 : i32 to index
    %c0_395 = arith.constant 0 : index
    %941 = vector.load %arg4[%940, %c0_395] : memref<64x32xf32, #tpu.memory_space<vmem>>, vector<8x32xf32>
    tpu.vector_store %arg4[%940, %c0_395], %939 {strides = array<i32>} : memref<64x32xf32, #tpu.memory_space<vmem>>, vector<8x32xf32>,
    %c8_i32_396 = arith.constant 8 : i32
    %c24_397 = arith.constant 24 : index
    %c0_398 = arith.constant 0 : index
    %942 = vector.load %arg3[%c24_397, %c0_398] : memref<88x32xf32, #tpu.memory_space<vmem>>, vector<8x32xf32>
    tpu.vector_store %arg3[%c24_397, %c0_398], %939 {strides = array<i32>} : memref<88x32xf32, #tpu.memory_space<vmem>>, vector<8x32xf32>,
    %c64_399 = arith.constant 64 : index
    %c0_400 = arith.constant 0 : index
    %943 = vector.load %arg3[%c64_399, %c0_400] : memref<88x32xf32, #tpu.memory_space<vmem>>, vector<8x32xf32>
    tpu.vector_store %arg3[%c64_399, %c0_400], %937 {strides = array<i32>} : memref<88x32xf32, #tpu.memory_space<vmem>>, vector<8x32xf32>,
    %c288 = arith.constant 288 : index
    %c0_401 = arith.constant 0 : index
    %944 = vector.load %arg1[%c288, %c0_401] : memref<368x128xf32, #tpu.memory_space<vmem>>, vector<32x128xf32>
    %c320 = arith.constant 320 : index
    %c0_402 = arith.constant 0 : index
    %945 = vector.load %arg1[%c320, %c0_402] : memref<368x128xf32, #tpu.memory_space<vmem>>, vector<32x128xf32>
    %c352 = arith.constant 352 : index
    %c0_403 = arith.constant 0 : index
    %946 = vector.load %arg1[%c352, %c0_403] : memref<368x128xf32, #tpu.memory_space<vmem>>, vector<1x128xf32>
    %c0_404 = arith.constant 0 : index
    %c0_405 = arith.constant 0 : index
    %947 = vector.load %arg4[%c0_404, %c0_405] : memref<64x32xf32, #tpu.memory_space<vmem>>, vector<64x32xf32>
    %cst_406 = arith.constant dense<0.000000e+00> : vector<64x128xf32>
    %948 = tpu.matmul %947, %944, %cst_406 {dimension_numbers = #tpu.dot_dimension_numbers<[1], [0], [0], [1], [0, 0, 1, 1], [], []>} : vector<64x32xf32>, vector<32x128xf32>, vector<64x128xf32> -> vector<64x128xf32>
    %949 = vector.broadcast %946 : vector<1x128xf32> to vector<64x128xf32>
    %950 = arith.addf %948, %949 : vector<64x128xf32>
    %c0_407 = arith.constant 0 : index
    %c0_408 = arith.constant 0 : index
    %951 = vector.load %arg5[%c0_407, %c0_408] : memref<64x128xf32, #tpu.memory_space<vmem>>, vector<64x128xf32>
    tpu.vector_store %arg5[%c0_407, %c0_408], %950 {strides = array<i32>} : memref<64x128xf32, #tpu.memory_space<vmem>>, vector<64x128xf32>,
    %c32_409 = arith.constant 32 : index
    %c0_410 = arith.constant 0 : index
    %952 = vector.load %arg2[%c32_409, %c0_410] : memref<80x32xf32, #tpu.memory_space<vmem>>, vector<8x32xf32>
    %c72_411 = arith.constant 72 : index
    %c0_412 = arith.constant 0 : index
    %953 = vector.load %arg2[%c72_411, %c0_412] : memref<80x32xf32, #tpu.memory_space<vmem>>, vector<8x32xf32>
    %c0_i32_413 = arith.constant 0 : i32
    %c8_i32_414 = arith.constant 8 : i32
    %954 = arith.muli %c0_i32_413, %c8_i32_414 : i32
    %955 = tpu.assume_multiple %954, 8 : i32
    %956 = arith.index_cast %955 : i32 to index
    %c0_415 = arith.constant 0 : index
    %957 = vector.load %arg5[%956, %c0_415] : memref<64x128xf32, #tpu.memory_space<vmem>>, vector<8x128xf32>
    %cst_416 = arith.constant dense<0.000000e+00> : vector<8x128xf32>
    %958 = tpu.matmul %952, %945, %cst_416 {dimension_numbers = #tpu.dot_dimension_numbers<[1], [0], [0], [1], [0, 0, 1, 1], [], []>} : vector<8x32xf32>, vector<32x128xf32>, vector<8x128xf32> -> vector<8x128xf32>
    %959 = arith.addf %957, %958 : vector<8x128xf32>
    %cst_417 = arith.constant 5.000000e-01 : f32
    %960 = vector.broadcast %cst_417 : f32 to vector<8x128xf32>
    %961 = arith.mulf %960, %959 : vector<8x128xf32>
    %962 = math.tanh %961 : vector<8x128xf32>
    %cst_418 = arith.constant 5.000000e-01 : f32
    %963 = vector.broadcast %cst_418 : f32 to vector<8x128xf32>
    %964 = arith.mulf %963, %962 : vector<8x128xf32>
    %cst_419 = arith.constant 5.000000e-01 : f32
    %965 = vector.broadcast %cst_419 : f32 to vector<8x128xf32>
    %966 = arith.addf %964, %965 : vector<8x128xf32>
    %967 = math.tanh %959 : vector<8x128xf32>
    %968 = vector.extract_strided_slice %966 {offsets = [0, 0], sizes = [8, 32], strides = [1, 1]} : vector<8x128xf32> to vector<8x32xf32>
    %c96_i32_420 = arith.constant 96 : i32
    %969 = tpu.dynamic_rotate %966 by %c96_i32_420 dim 1 : vector<8x128xf32>, i32 -> vector<8x128xf32>
    %970 = vector.extract_strided_slice %969 {offsets = [0, 0], sizes = [8, 32], strides = [1, 1]} : vector<8x128xf32> to vector<8x32xf32>
    %c64_i32_421 = arith.constant 64 : i32
    %971 = tpu.dynamic_rotate %967 by %c64_i32_421 dim 1 : vector<8x128xf32>, i32 -> vector<8x128xf32>
    %972 = vector.extract_strided_slice %971 {offsets = [0, 0], sizes = [8, 32], strides = [1, 1]} : vector<8x128xf32> to vector<8x32xf32>
    %c32_i32_422 = arith.constant 32 : i32
    %973 = tpu.dynamic_rotate %966 by %c32_i32_422 dim 1 : vector<8x128xf32>, i32 -> vector<8x128xf32>
    %974 = vector.extract_strided_slice %973 {offsets = [0, 0], sizes = [8, 32], strides = [1, 1]} : vector<8x128xf32> to vector<8x32xf32>
    %975 = arith.mulf %970, %953 : vector<8x32xf32>
    %976 = arith.mulf %968, %972 : vector<8x32xf32>
    %977 = arith.addf %975, %976 : vector<8x32xf32>
    %978 = math.tanh %977 : vector<8x32xf32>
    %979 = arith.mulf %974, %978 : vector<8x32xf32>
    %980 = arith.index_cast %955 : i32 to index
    %c0_423 = arith.constant 0 : index
    %981 = vector.load %arg4[%980, %c0_423] : memref<64x32xf32, #tpu.memory_space<vmem>>, vector<8x32xf32>
    tpu.vector_store %arg4[%980, %c0_423], %979 {strides = array<i32>} : memref<64x32xf32, #tpu.memory_space<vmem>>, vector<8x32xf32>,
    %c1_i32_424 = arith.constant 1 : i32
    %c8_i32_425 = arith.constant 8 : i32
    %982 = arith.muli %c1_i32_424, %c8_i32_425 : i32
    %983 = tpu.assume_multiple %982, 8 : i32
    %984 = arith.index_cast %983 : i32 to index
    %c0_426 = arith.constant 0 : index
    %985 = vector.load %arg5[%984, %c0_426] : memref<64x128xf32, #tpu.memory_space<vmem>>, vector<8x128xf32>
    %cst_427 = arith.constant dense<0.000000e+00> : vector<8x128xf32>
    %986 = tpu.matmul %979, %945, %cst_427 {dimension_numbers = #tpu.dot_dimension_numbers<[1], [0], [0], [1], [0, 0, 1, 1], [], []>} : vector<8x32xf32>, vector<32x128xf32>, vector<8x128xf32> -> vector<8x128xf32>
    %987 = arith.addf %985, %986 : vector<8x128xf32>
    %cst_428 = arith.constant 5.000000e-01 : f32
    %988 = vector.broadcast %cst_428 : f32 to vector<8x128xf32>
    %989 = arith.mulf %988, %987 : vector<8x128xf32>
    %990 = math.tanh %989 : vector<8x128xf32>
    %cst_429 = arith.constant 5.000000e-01 : f32
    %991 = vector.broadcast %cst_429 : f32 to vector<8x128xf32>
    %992 = arith.mulf %991, %990 : vector<8x128xf32>
    %cst_430 = arith.constant 5.000000e-01 : f32
    %993 = vector.broadcast %cst_430 : f32 to vector<8x128xf32>
    %994 = arith.addf %992, %993 : vector<8x128xf32>
    %995 = math.tanh %987 : vector<8x128xf32>
    %996 = vector.extract_strided_slice %994 {offsets = [0, 0], sizes = [8, 32], strides = [1, 1]} : vector<8x128xf32> to vector<8x32xf32>
    %c96_i32_431 = arith.constant 96 : i32
    %997 = tpu.dynamic_rotate %994 by %c96_i32_431 dim 1 : vector<8x128xf32>, i32 -> vector<8x128xf32>
    %998 = vector.extract_strided_slice %997 {offsets = [0, 0], sizes = [8, 32], strides = [1, 1]} : vector<8x128xf32> to vector<8x32xf32>
    %c64_i32_432 = arith.constant 64 : i32
    %999 = tpu.dynamic_rotate %995 by %c64_i32_432 dim 1 : vector<8x128xf32>, i32 -> vector<8x128xf32>
    %1000 = vector.extract_strided_slice %999 {offsets = [0, 0], sizes = [8, 32], strides = [1, 1]} : vector<8x128xf32> to vector<8x32xf32>
    %c32_i32_433 = arith.constant 32 : i32
    %1001 = tpu.dynamic_rotate %994 by %c32_i32_433 dim 1 : vector<8x128xf32>, i32 -> vector<8x128xf32>
    %1002 = vector.extract_strided_slice %1001 {offsets = [0, 0], sizes = [8, 32], strides = [1, 1]} : vector<8x128xf32> to vector<8x32xf32>
    %1003 = arith.mulf %998, %977 : vector<8x32xf32>
    %1004 = arith.mulf %996, %1000 : vector<8x32xf32>
    %1005 = arith.addf %1003, %1004 : vector<8x32xf32>
    %1006 = math.tanh %1005 : vector<8x32xf32>
    %1007 = arith.mulf %1002, %1006 : vector<8x32xf32>
    %1008 = arith.index_cast %983 : i32 to index
    %c0_434 = arith.constant 0 : index
    %1009 = vector.load %arg4[%1008, %c0_434] : memref<64x32xf32, #tpu.memory_space<vmem>>, vector<8x32xf32>
    tpu.vector_store %arg4[%1008, %c0_434], %1007 {strides = array<i32>} : memref<64x32xf32, #tpu.memory_space<vmem>>, vector<8x32xf32>,
    %c2_i32_435 = arith.constant 2 : i32
    %c8_i32_436 = arith.constant 8 : i32
    %1010 = arith.muli %c2_i32_435, %c8_i32_436 : i32
    %1011 = tpu.assume_multiple %1010, 8 : i32
    %1012 = arith.index_cast %1011 : i32 to index
    %c0_437 = arith.constant 0 : index
    %1013 = vector.load %arg5[%1012, %c0_437] : memref<64x128xf32, #tpu.memory_space<vmem>>, vector<8x128xf32>
    %cst_438 = arith.constant dense<0.000000e+00> : vector<8x128xf32>
    %1014 = tpu.matmul %1007, %945, %cst_438 {dimension_numbers = #tpu.dot_dimension_numbers<[1], [0], [0], [1], [0, 0, 1, 1], [], []>} : vector<8x32xf32>, vector<32x128xf32>, vector<8x128xf32> -> vector<8x128xf32>
    %1015 = arith.addf %1013, %1014 : vector<8x128xf32>
    %cst_439 = arith.constant 5.000000e-01 : f32
    %1016 = vector.broadcast %cst_439 : f32 to vector<8x128xf32>
    %1017 = arith.mulf %1016, %1015 : vector<8x128xf32>
    %1018 = math.tanh %1017 : vector<8x128xf32>
    %cst_440 = arith.constant 5.000000e-01 : f32
    %1019 = vector.broadcast %cst_440 : f32 to vector<8x128xf32>
    %1020 = arith.mulf %1019, %1018 : vector<8x128xf32>
    %cst_441 = arith.constant 5.000000e-01 : f32
    %1021 = vector.broadcast %cst_441 : f32 to vector<8x128xf32>
    %1022 = arith.addf %1020, %1021 : vector<8x128xf32>
    %1023 = math.tanh %1015 : vector<8x128xf32>
    %1024 = vector.extract_strided_slice %1022 {offsets = [0, 0], sizes = [8, 32], strides = [1, 1]} : vector<8x128xf32> to vector<8x32xf32>
    %c96_i32_442 = arith.constant 96 : i32
    %1025 = tpu.dynamic_rotate %1022 by %c96_i32_442 dim 1 : vector<8x128xf32>, i32 -> vector<8x128xf32>
    %1026 = vector.extract_strided_slice %1025 {offsets = [0, 0], sizes = [8, 32], strides = [1, 1]} : vector<8x128xf32> to vector<8x32xf32>
    %c64_i32_443 = arith.constant 64 : i32
    %1027 = tpu.dynamic_rotate %1023 by %c64_i32_443 dim 1 : vector<8x128xf32>, i32 -> vector<8x128xf32>
    %1028 = vector.extract_strided_slice %1027 {offsets = [0, 0], sizes = [8, 32], strides = [1, 1]} : vector<8x128xf32> to vector<8x32xf32>
    %c32_i32_444 = arith.constant 32 : i32
    %1029 = tpu.dynamic_rotate %1022 by %c32_i32_444 dim 1 : vector<8x128xf32>, i32 -> vector<8x128xf32>
    %1030 = vector.extract_strided_slice %1029 {offsets = [0, 0], sizes = [8, 32], strides = [1, 1]} : vector<8x128xf32> to vector<8x32xf32>
    %1031 = arith.mulf %1026, %1005 : vector<8x32xf32>
    %1032 = arith.mulf %1024, %1028 : vector<8x32xf32>
    %1033 = arith.addf %1031, %1032 : vector<8x32xf32>
    %1034 = math.tanh %1033 : vector<8x32xf32>
    %1035 = arith.mulf %1030, %1034 : vector<8x32xf32>
    %1036 = arith.index_cast %1011 : i32 to index
    %c0_445 = arith.constant 0 : index
    %1037 = vector.load %arg4[%1036, %c0_445] : memref<64x32xf32, #tpu.memory_space<vmem>>, vector<8x32xf32>
    tpu.vector_store %arg4[%1036, %c0_445], %1035 {strides = array<i32>} : memref<64x32xf32, #tpu.memory_space<vmem>>, vector<8x32xf32>,
    %c3_i32_446 = arith.constant 3 : i32
    %c8_i32_447 = arith.constant 8 : i32
    %1038 = arith.muli %c3_i32_446, %c8_i32_447 : i32
    %1039 = tpu.assume_multiple %1038, 8 : i32
    %1040 = arith.index_cast %1039 : i32 to index
    %c0_448 = arith.constant 0 : index
    %1041 = vector.load %arg5[%1040, %c0_448] : memref<64x128xf32, #tpu.memory_space<vmem>>, vector<8x128xf32>
    %cst_449 = arith.constant dense<0.000000e+00> : vector<8x128xf32>
    %1042 = tpu.matmul %1035, %945, %cst_449 {dimension_numbers = #tpu.dot_dimension_numbers<[1], [0], [0], [1], [0, 0, 1, 1], [], []>} : vector<8x32xf32>, vector<32x128xf32>, vector<8x128xf32> -> vector<8x128xf32>
    %1043 = arith.addf %1041, %1042 : vector<8x128xf32>
    %cst_450 = arith.constant 5.000000e-01 : f32
    %1044 = vector.broadcast %cst_450 : f32 to vector<8x128xf32>
    %1045 = arith.mulf %1044, %1043 : vector<8x128xf32>
    %1046 = math.tanh %1045 : vector<8x128xf32>
    %cst_451 = arith.constant 5.000000e-01 : f32
    %1047 = vector.broadcast %cst_451 : f32 to vector<8x128xf32>
    %1048 = arith.mulf %1047, %1046 : vector<8x128xf32>
    %cst_452 = arith.constant 5.000000e-01 : f32
    %1049 = vector.broadcast %cst_452 : f32 to vector<8x128xf32>
    %1050 = arith.addf %1048, %1049 : vector<8x128xf32>
    %1051 = math.tanh %1043 : vector<8x128xf32>
    %1052 = vector.extract_strided_slice %1050 {offsets = [0, 0], sizes = [8, 32], strides = [1, 1]} : vector<8x128xf32> to vector<8x32xf32>
    %c96_i32_453 = arith.constant 96 : i32
    %1053 = tpu.dynamic_rotate %1050 by %c96_i32_453 dim 1 : vector<8x128xf32>, i32 -> vector<8x128xf32>
    %1054 = vector.extract_strided_slice %1053 {offsets = [0, 0], sizes = [8, 32], strides = [1, 1]} : vector<8x128xf32> to vector<8x32xf32>
    %c64_i32_454 = arith.constant 64 : i32
    %1055 = tpu.dynamic_rotate %1051 by %c64_i32_454 dim 1 : vector<8x128xf32>, i32 -> vector<8x128xf32>
    %1056 = vector.extract_strided_slice %1055 {offsets = [0, 0], sizes = [8, 32], strides = [1, 1]} : vector<8x128xf32> to vector<8x32xf32>
    %c32_i32_455 = arith.constant 32 : i32
    %1057 = tpu.dynamic_rotate %1050 by %c32_i32_455 dim 1 : vector<8x128xf32>, i32 -> vector<8x128xf32>
    %1058 = vector.extract_strided_slice %1057 {offsets = [0, 0], sizes = [8, 32], strides = [1, 1]} : vector<8x128xf32> to vector<8x32xf32>
    %1059 = arith.mulf %1054, %1033 : vector<8x32xf32>
    %1060 = arith.mulf %1052, %1056 : vector<8x32xf32>
    %1061 = arith.addf %1059, %1060 : vector<8x32xf32>
    %1062 = math.tanh %1061 : vector<8x32xf32>
    %1063 = arith.mulf %1058, %1062 : vector<8x32xf32>
    %1064 = arith.index_cast %1039 : i32 to index
    %c0_456 = arith.constant 0 : index
    %1065 = vector.load %arg4[%1064, %c0_456] : memref<64x32xf32, #tpu.memory_space<vmem>>, vector<8x32xf32>
    tpu.vector_store %arg4[%1064, %c0_456], %1063 {strides = array<i32>} : memref<64x32xf32, #tpu.memory_space<vmem>>, vector<8x32xf32>,
    %c4_i32_457 = arith.constant 4 : i32
    %c8_i32_458 = arith.constant 8 : i32
    %1066 = arith.muli %c4_i32_457, %c8_i32_458 : i32
    %1067 = tpu.assume_multiple %1066, 8 : i32
    %1068 = arith.index_cast %1067 : i32 to index
    %c0_459 = arith.constant 0 : index
    %1069 = vector.load %arg5[%1068, %c0_459] : memref<64x128xf32, #tpu.memory_space<vmem>>, vector<8x128xf32>
    %cst_460 = arith.constant dense<0.000000e+00> : vector<8x128xf32>
    %1070 = tpu.matmul %1063, %945, %cst_460 {dimension_numbers = #tpu.dot_dimension_numbers<[1], [0], [0], [1], [0, 0, 1, 1], [], []>} : vector<8x32xf32>, vector<32x128xf32>, vector<8x128xf32> -> vector<8x128xf32>
    %1071 = arith.addf %1069, %1070 : vector<8x128xf32>
    %cst_461 = arith.constant 5.000000e-01 : f32
    %1072 = vector.broadcast %cst_461 : f32 to vector<8x128xf32>
    %1073 = arith.mulf %1072, %1071 : vector<8x128xf32>
    %1074 = math.tanh %1073 : vector<8x128xf32>
    %cst_462 = arith.constant 5.000000e-01 : f32
    %1075 = vector.broadcast %cst_462 : f32 to vector<8x128xf32>
    %1076 = arith.mulf %1075, %1074 : vector<8x128xf32>
    %cst_463 = arith.constant 5.000000e-01 : f32
    %1077 = vector.broadcast %cst_463 : f32 to vector<8x128xf32>
    %1078 = arith.addf %1076, %1077 : vector<8x128xf32>
    %1079 = math.tanh %1071 : vector<8x128xf32>
    %1080 = vector.extract_strided_slice %1078 {offsets = [0, 0], sizes = [8, 32], strides = [1, 1]} : vector<8x128xf32> to vector<8x32xf32>
    %c96_i32_464 = arith.constant 96 : i32
    %1081 = tpu.dynamic_rotate %1078 by %c96_i32_464 dim 1 : vector<8x128xf32>, i32 -> vector<8x128xf32>
    %1082 = vector.extract_strided_slice %1081 {offsets = [0, 0], sizes = [8, 32], strides = [1, 1]} : vector<8x128xf32> to vector<8x32xf32>
    %c64_i32_465 = arith.constant 64 : i32
    %1083 = tpu.dynamic_rotate %1079 by %c64_i32_465 dim 1 : vector<8x128xf32>, i32 -> vector<8x128xf32>
    %1084 = vector.extract_strided_slice %1083 {offsets = [0, 0], sizes = [8, 32], strides = [1, 1]} : vector<8x128xf32> to vector<8x32xf32>
    %c32_i32_466 = arith.constant 32 : i32
    %1085 = tpu.dynamic_rotate %1078 by %c32_i32_466 dim 1 : vector<8x128xf32>, i32 -> vector<8x128xf32>
    %1086 = vector.extract_strided_slice %1085 {offsets = [0, 0], sizes = [8, 32], strides = [1, 1]} : vector<8x128xf32> to vector<8x32xf32>
    %1087 = arith.mulf %1082, %1061 : vector<8x32xf32>
    %1088 = arith.mulf %1080, %1084 : vector<8x32xf32>
    %1089 = arith.addf %1087, %1088 : vector<8x32xf32>
    %1090 = math.tanh %1089 : vector<8x32xf32>
    %1091 = arith.mulf %1086, %1090 : vector<8x32xf32>
    %1092 = arith.index_cast %1067 : i32 to index
    %c0_467 = arith.constant 0 : index
    %1093 = vector.load %arg4[%1092, %c0_467] : memref<64x32xf32, #tpu.memory_space<vmem>>, vector<8x32xf32>
    tpu.vector_store %arg4[%1092, %c0_467], %1091 {strides = array<i32>} : memref<64x32xf32, #tpu.memory_space<vmem>>, vector<8x32xf32>,
    %c5_i32_468 = arith.constant 5 : i32
    %c8_i32_469 = arith.constant 8 : i32
    %1094 = arith.muli %c5_i32_468, %c8_i32_469 : i32
    %1095 = tpu.assume_multiple %1094, 8 : i32
    %1096 = arith.index_cast %1095 : i32 to index
    %c0_470 = arith.constant 0 : index
    %1097 = vector.load %arg5[%1096, %c0_470] : memref<64x128xf32, #tpu.memory_space<vmem>>, vector<8x128xf32>
    %cst_471 = arith.constant dense<0.000000e+00> : vector<8x128xf32>
    %1098 = tpu.matmul %1091, %945, %cst_471 {dimension_numbers = #tpu.dot_dimension_numbers<[1], [0], [0], [1], [0, 0, 1, 1], [], []>} : vector<8x32xf32>, vector<32x128xf32>, vector<8x128xf32> -> vector<8x128xf32>
    %1099 = arith.addf %1097, %1098 : vector<8x128xf32>
    %cst_472 = arith.constant 5.000000e-01 : f32
    %1100 = vector.broadcast %cst_472 : f32 to vector<8x128xf32>
    %1101 = arith.mulf %1100, %1099 : vector<8x128xf32>
    %1102 = math.tanh %1101 : vector<8x128xf32>
    %cst_473 = arith.constant 5.000000e-01 : f32
    %1103 = vector.broadcast %cst_473 : f32 to vector<8x128xf32>
    %1104 = arith.mulf %1103, %1102 : vector<8x128xf32>
    %cst_474 = arith.constant 5.000000e-01 : f32
    %1105 = vector.broadcast %cst_474 : f32 to vector<8x128xf32>
    %1106 = arith.addf %1104, %1105 : vector<8x128xf32>
    %1107 = math.tanh %1099 : vector<8x128xf32>
    %1108 = vector.extract_strided_slice %1106 {offsets = [0, 0], sizes = [8, 32], strides = [1, 1]} : vector<8x128xf32> to vector<8x32xf32>
    %c96_i32_475 = arith.constant 96 : i32
    %1109 = tpu.dynamic_rotate %1106 by %c96_i32_475 dim 1 : vector<8x128xf32>, i32 -> vector<8x128xf32>
    %1110 = vector.extract_strided_slice %1109 {offsets = [0, 0], sizes = [8, 32], strides = [1, 1]} : vector<8x128xf32> to vector<8x32xf32>
    %c64_i32_476 = arith.constant 64 : i32
    %1111 = tpu.dynamic_rotate %1107 by %c64_i32_476 dim 1 : vector<8x128xf32>, i32 -> vector<8x128xf32>
    %1112 = vector.extract_strided_slice %1111 {offsets = [0, 0], sizes = [8, 32], strides = [1, 1]} : vector<8x128xf32> to vector<8x32xf32>
    %c32_i32_477 = arith.constant 32 : i32
    %1113 = tpu.dynamic_rotate %1106 by %c32_i32_477 dim 1 : vector<8x128xf32>, i32 -> vector<8x128xf32>
    %1114 = vector.extract_strided_slice %1113 {offsets = [0, 0], sizes = [8, 32], strides = [1, 1]} : vector<8x128xf32> to vector<8x32xf32>
    %1115 = arith.mulf %1110, %1089 : vector<8x32xf32>
    %1116 = arith.mulf %1108, %1112 : vector<8x32xf32>
    %1117 = arith.addf %1115, %1116 : vector<8x32xf32>
    %1118 = math.tanh %1117 : vector<8x32xf32>
    %1119 = arith.mulf %1114, %1118 : vector<8x32xf32>
    %1120 = arith.index_cast %1095 : i32 to index
    %c0_478 = arith.constant 0 : index
    %1121 = vector.load %arg4[%1120, %c0_478] : memref<64x32xf32, #tpu.memory_space<vmem>>, vector<8x32xf32>
    tpu.vector_store %arg4[%1120, %c0_478], %1119 {strides = array<i32>} : memref<64x32xf32, #tpu.memory_space<vmem>>, vector<8x32xf32>,
    %c6_i32_479 = arith.constant 6 : i32
    %c8_i32_480 = arith.constant 8 : i32
    %1122 = arith.muli %c6_i32_479, %c8_i32_480 : i32
    %1123 = tpu.assume_multiple %1122, 8 : i32
    %1124 = arith.index_cast %1123 : i32 to index
    %c0_481 = arith.constant 0 : index
    %1125 = vector.load %arg5[%1124, %c0_481] : memref<64x128xf32, #tpu.memory_space<vmem>>, vector<8x128xf32>
    %cst_482 = arith.constant dense<0.000000e+00> : vector<8x128xf32>
    %1126 = tpu.matmul %1119, %945, %cst_482 {dimension_numbers = #tpu.dot_dimension_numbers<[1], [0], [0], [1], [0, 0, 1, 1], [], []>} : vector<8x32xf32>, vector<32x128xf32>, vector<8x128xf32> -> vector<8x128xf32>
    %1127 = arith.addf %1125, %1126 : vector<8x128xf32>
    %cst_483 = arith.constant 5.000000e-01 : f32
    %1128 = vector.broadcast %cst_483 : f32 to vector<8x128xf32>
    %1129 = arith.mulf %1128, %1127 : vector<8x128xf32>
    %1130 = math.tanh %1129 : vector<8x128xf32>
    %cst_484 = arith.constant 5.000000e-01 : f32
    %1131 = vector.broadcast %cst_484 : f32 to vector<8x128xf32>
    %1132 = arith.mulf %1131, %1130 : vector<8x128xf32>
    %cst_485 = arith.constant 5.000000e-01 : f32
    %1133 = vector.broadcast %cst_485 : f32 to vector<8x128xf32>
    %1134 = arith.addf %1132, %1133 : vector<8x128xf32>
    %1135 = math.tanh %1127 : vector<8x128xf32>
    %1136 = vector.extract_strided_slice %1134 {offsets = [0, 0], sizes = [8, 32], strides = [1, 1]} : vector<8x128xf32> to vector<8x32xf32>
    %c96_i32_486 = arith.constant 96 : i32
    %1137 = tpu.dynamic_rotate %1134 by %c96_i32_486 dim 1 : vector<8x128xf32>, i32 -> vector<8x128xf32>
    %1138 = vector.extract_strided_slice %1137 {offsets = [0, 0], sizes = [8, 32], strides = [1, 1]} : vector<8x128xf32> to vector<8x32xf32>
    %c64_i32_487 = arith.constant 64 : i32
    %1139 = tpu.dynamic_rotate %1135 by %c64_i32_487 dim 1 : vector<8x128xf32>, i32 -> vector<8x128xf32>
    %1140 = vector.extract_strided_slice %1139 {offsets = [0, 0], sizes = [8, 32], strides = [1, 1]} : vector<8x128xf32> to vector<8x32xf32>
    %c32_i32_488 = arith.constant 32 : i32
    %1141 = tpu.dynamic_rotate %1134 by %c32_i32_488 dim 1 : vector<8x128xf32>, i32 -> vector<8x128xf32>
    %1142 = vector.extract_strided_slice %1141 {offsets = [0, 0], sizes = [8, 32], strides = [1, 1]} : vector<8x128xf32> to vector<8x32xf32>
    %1143 = arith.mulf %1138, %1117 : vector<8x32xf32>
    %1144 = arith.mulf %1136, %1140 : vector<8x32xf32>
    %1145 = arith.addf %1143, %1144 : vector<8x32xf32>
    %1146 = math.tanh %1145 : vector<8x32xf32>
    %1147 = arith.mulf %1142, %1146 : vector<8x32xf32>
    %1148 = arith.index_cast %1123 : i32 to index
    %c0_489 = arith.constant 0 : index
    %1149 = vector.load %arg4[%1148, %c0_489] : memref<64x32xf32, #tpu.memory_space<vmem>>, vector<8x32xf32>
    tpu.vector_store %arg4[%1148, %c0_489], %1147 {strides = array<i32>} : memref<64x32xf32, #tpu.memory_space<vmem>>, vector<8x32xf32>,
    %c7_i32_490 = arith.constant 7 : i32
    %c8_i32_491 = arith.constant 8 : i32
    %1150 = arith.muli %c7_i32_490, %c8_i32_491 : i32
    %1151 = tpu.assume_multiple %1150, 8 : i32
    %1152 = arith.index_cast %1151 : i32 to index
    %c0_492 = arith.constant 0 : index
    %1153 = vector.load %arg5[%1152, %c0_492] : memref<64x128xf32, #tpu.memory_space<vmem>>, vector<8x128xf32>
    %cst_493 = arith.constant dense<0.000000e+00> : vector<8x128xf32>
    %1154 = tpu.matmul %1147, %945, %cst_493 {dimension_numbers = #tpu.dot_dimension_numbers<[1], [0], [0], [1], [0, 0, 1, 1], [], []>} : vector<8x32xf32>, vector<32x128xf32>, vector<8x128xf32> -> vector<8x128xf32>
    %1155 = arith.addf %1153, %1154 : vector<8x128xf32>
    %cst_494 = arith.constant 5.000000e-01 : f32
    %1156 = vector.broadcast %cst_494 : f32 to vector<8x128xf32>
    %1157 = arith.mulf %1156, %1155 : vector<8x128xf32>
    %1158 = math.tanh %1157 : vector<8x128xf32>
    %cst_495 = arith.constant 5.000000e-01 : f32
    %1159 = vector.broadcast %cst_495 : f32 to vector<8x128xf32>
    %1160 = arith.mulf %1159, %1158 : vector<8x128xf32>
    %cst_496 = arith.constant 5.000000e-01 : f32
    %1161 = vector.broadcast %cst_496 : f32 to vector<8x128xf32>
    %1162 = arith.addf %1160, %1161 : vector<8x128xf32>
    %1163 = math.tanh %1155 : vector<8x128xf32>
    %1164 = vector.extract_strided_slice %1162 {offsets = [0, 0], sizes = [8, 32], strides = [1, 1]} : vector<8x128xf32> to vector<8x32xf32>
    %c96_i32_497 = arith.constant 96 : i32
    %1165 = tpu.dynamic_rotate %1162 by %c96_i32_497 dim 1 : vector<8x128xf32>, i32 -> vector<8x128xf32>
    %1166 = vector.extract_strided_slice %1165 {offsets = [0, 0], sizes = [8, 32], strides = [1, 1]} : vector<8x128xf32> to vector<8x32xf32>
    %c64_i32_498 = arith.constant 64 : i32
    %1167 = tpu.dynamic_rotate %1163 by %c64_i32_498 dim 1 : vector<8x128xf32>, i32 -> vector<8x128xf32>
    %1168 = vector.extract_strided_slice %1167 {offsets = [0, 0], sizes = [8, 32], strides = [1, 1]} : vector<8x128xf32> to vector<8x32xf32>
    %c32_i32_499 = arith.constant 32 : i32
    %1169 = tpu.dynamic_rotate %1162 by %c32_i32_499 dim 1 : vector<8x128xf32>, i32 -> vector<8x128xf32>
    %1170 = vector.extract_strided_slice %1169 {offsets = [0, 0], sizes = [8, 32], strides = [1, 1]} : vector<8x128xf32> to vector<8x32xf32>
    %1171 = arith.mulf %1166, %1145 : vector<8x32xf32>
    %1172 = arith.mulf %1164, %1168 : vector<8x32xf32>
    %1173 = arith.addf %1171, %1172 : vector<8x32xf32>
    %1174 = math.tanh %1173 : vector<8x32xf32>
    %1175 = arith.mulf %1170, %1174 : vector<8x32xf32>
    %1176 = arith.index_cast %1151 : i32 to index
    %c0_500 = arith.constant 0 : index
    %1177 = vector.load %arg4[%1176, %c0_500] : memref<64x32xf32, #tpu.memory_space<vmem>>, vector<8x32xf32>
    tpu.vector_store %arg4[%1176, %c0_500], %1175 {strides = array<i32>} : memref<64x32xf32, #tpu.memory_space<vmem>>, vector<8x32xf32>,
    %c8_i32_501 = arith.constant 8 : i32
    %c32_502 = arith.constant 32 : index
    %c0_503 = arith.constant 0 : index
    %1178 = vector.load %arg3[%c32_502, %c0_503] : memref<88x32xf32, #tpu.memory_space<vmem>>, vector<8x32xf32>
    tpu.vector_store %arg3[%c32_502, %c0_503], %1175 {strides = array<i32>} : memref<88x32xf32, #tpu.memory_space<vmem>>, vector<8x32xf32>,
    %c72_504 = arith.constant 72 : index
    %c0_505 = arith.constant 0 : index
    %1179 = vector.load %arg3[%c72_504, %c0_505] : memref<88x32xf32, #tpu.memory_space<vmem>>, vector<8x32xf32>
    tpu.vector_store %arg3[%c72_504, %c0_505], %1173 {strides = array<i32>} : memref<88x32xf32, #tpu.memory_space<vmem>>, vector<8x32xf32>,
    %c360 = arith.constant 360 : index
    %c0_506 = arith.constant 0 : index
    %1180 = vector.load %arg1[%c360, %c0_506] : memref<368x128xf32, #tpu.memory_space<vmem>>, vector<1x32xf32>
    %c361 = arith.constant 361 : index
    %c0_507 = arith.constant 0 : index
    %1181 = vector.load %arg1[%c361, %c0_507] : memref<368x128xf32, #tpu.memory_space<vmem>>, vector<1x1xf32>
    %1182 = vector.broadcast %1180 : vector<1x32xf32> to vector<8x32xf32>
    %1183 = arith.mulf %1175, %1182 : vector<8x32xf32>
    %cst_508 = arith.constant dense<0.000000e+00> : vector<8xf32>
    %1184 = vector.multi_reduction <add>, %1183, %cst_508 [1] : vector<8x32xf32> to vector<8xf32>
    %1185 = vector.shape_cast %1184 : vector<8xf32> to vector<8x1xf32>
    %1186 = vector.broadcast %1181 : vector<1x1xf32> to vector<8x1xf32>
    %1187 = arith.addf %1185, %1186 : vector<8x1xf32>
    %1188 = vector.shape_cast %1187 : vector<8x1xf32> to vector<8x1xf32>
    %1189 = vector.broadcast %1188 : vector<8x1xf32> to vector<8x32xf32>
    %c80 = arith.constant 80 : index
    %c0_509 = arith.constant 0 : index
    %1190 = vector.load %arg3[%c80, %c0_509] : memref<88x32xf32, #tpu.memory_space<vmem>>, vector<8x32xf32>
    tpu.vector_store %arg3[%c80, %c0_509], %1189 {strides = array<i32>} : memref<88x32xf32, #tpu.memory_space<vmem>>, vector<8x32xf32>,
    return
  }
}

</mosaic_0001>

<bundles_post_ra>
// kernel: mv_lstm_forward.1
= control target key start
LH: loop header
LB: loop body
LE: loop exit
PB: predicated region body
PF: predicated region fallthrough
CT: control target
= control target key end

     0   :  { %v5960_v2 = vmov 0.0|0.0   ;;  %vm35_vm0 = vcmask 261120   ;;  %vm5961_vm1 = vmmov 0   ;;  %v5962_v4 = vmov 0.0   ;;  %s5963_s9 = smov 32   ;;  %s5964_s10 = smov 96   ;;  %s6870_s1 = inlined_call_operand.vmem [shape: f32[368,128], index: 1, kind: input, shape index: {}]   ;;  %s6871_s0 = inlined_call_operand.vmem [shape: f32[64,32], index: 0, kind: input, shape index: {}]   ;;  %s6872_s2 = inlined_call_operand.vmem [shape: f32[80,32], index: 2, kind: input, shape index: {}]   ;;  %s6873_s3 = inlined_call_operand.vmem [shape: f32[88,32], index: 3, kind: output, shape index: {}]  }
   0x1   :  { %v14_v0 = vld [vmem:[%s6870_s1] sm:$0xff]  ;;  %v15_v1 = vld [vmem:[%s6870_s1 + $0x8] sm:$0xff]  ;;  %5439 = vmatprep.subr.bf16.mxu1 %v5960_v2  ;;  %4919 = vmatprep.mubr.msk.f32.mxu1 %vm5961_vm1, %v5962_v4  ;;  %v16_v7 = vld [vmem:[%s6870_s1 + $0x10] sm:$0xff]  ;;  %s5965_s11 = smov 64  }
   0x2   :  { %v18_v3 = vld [vmem:[%s6870_s1 + $0x20] sm:$0xff]  ;;  %v5431_v5 = vpack.c.bf16 %v15_v1, %v14_v0  ;;  %v19_v6 = vld [vmem:[%s6870_s1 + $0x28] sm:$0xff]  ;;  %v17_v8 = vld [vmem:[%s6870_s1 + $0x18] sm:$0xff] }
   0x3   :  { %v6008_v9 = vpack.c.bf16 %v19_v6, %v18_v3  ;;  %v5435_v10 = vpack.c.bf16 %v17_v8, %v16_v7  ;;  %v23_v11 = vld [vmem:[%s6871_s0] sm:$0xff]  ;;  %v20_v12 = vld [vmem:[%s6870_s1 + $0x30] sm:$0xff]  ;;  %v21_v13 = vld [vmem:[%s6870_s1 + $0x38] sm:$0xff] }
   0x4   :  { %5432 = vmatprep.subr.bf16.mxu0 %v5431_v5  ;;  %4899 = vmatprep.mubr.msk.f32.mxu0 %vm35_vm0, %v23_v11  ;;  %v6021_v14 = vpack.c.bf16 %v21_v13, %v20_v12  ;;  %v24_v15 = vld [vmem:[%s6871_s0 + $0x8] sm:$0xff]  ;;  %v173_v16 = vld [vmem:[%s6872_s2] sm:$0xff]  ;;  %v25_v43 = vld [vmem:[%s6871_s0 + $0x10] sm:$0xff] }
   0x5   :  { %5434 = vmatpush3.bf16.msra.mxu0 %v5431_v5  ;;  %5441 = vmatpush3.bf16.msra.mxu1 %v6008_v9  ;;  %v6048_v17 = vld [vmem:[%s6870_s1 + $0x40] ss:$0 sm:$0xff]  ;;  %v174_v30 = vld [vmem:[%s6872_s2 + $0x28] sm:$0xff]  ;;  %v26_v44 = vld [vmem:[%s6871_s0 + $0x18] sm:$0xff] }
   0x6   :  { %5436 = vmatprep.subr.bf16.mxu0 %v5435_v10  ;;  %5442 = vmatprep.subr.bf16.mxu1 %v5960_v2  ;;  %v27_v46 = vld [vmem:[%s6871_s0 + $0x20] sm:$0xff]  ;;  %v28_v47 = vld [vmem:[%s6871_s0 + $0x28] sm:$0xff]  ;;  %v29_v50 = vld [vmem:[%s6871_s0 + $0x30] sm:$0xff] }
   0x7   :  { %v30_v52 = vld [vmem:[%s6871_s0 + $0x38] sm:$0xff] }
   0x9   :  { %5438 = vmatpush3.bf16.msra.mxu0 %v5435_v10  ;;  %5444 = vmatpush3.bf16.msra.mxu1 %v6021_v14 }
   0xa   :  { %5445 = vmatprep.subr.bf16.mxu1 %v5960_v2  ;;  %5451 = vmatprep.subr.bf16.mxu0 %v5960_v2 }
   0xc   :  { %4900 = vmatmul.mubr.msk.f32.vlgmr.msra.gmra.mrb[0].mxu0 %vm35_vm0, %v24_v15  ;;  %4920 = vmatmul.mubr.msk.f32.vlgmr.msra.gmra.mrb[0].mxu1 %vm35_vm0, %v173_v16 }
   0xd   :  { %5447 = vmatpush3.bf16.msra.mxu1 %v6008_v9  ;;  %4930 = vmatprep.mubr.msk.f32.mxu1 %vm5961_vm1, %v5962_v4 }
   0xe   :  { %5448 = vmatprep.subr.bf16.mxu1 %v5960_v2  ;;  %5453 = vmatpush3.bf16.msra.mxu0 %v6008_v9 }
   0xf   :  { %5454 = vmatprep.subr.bf16.mxu0 %v5960_v2  ;;  %4902 = vmatprep.mubr.msk.f32.mxu0 %vm35_vm0, %v25_v43 }
  0x10   :  { %4903 = vmatmul.mubr.msk.f32.gmra.mrb[2].mxu0 %vm35_vm0, %v26_v44 }
  0x11   :  { %5450 = vmatpush3.bf16.msra.mxu1 %v6021_v14  ;;  %4905 = vmatprep.mubr.msk.f32.mxu0 %vm35_vm0, %v27_v46 }
  0x12   :  { %5456 = vmatpush3.bf16.msra.mxu0 %v6021_v14  ;;  %5457 = vmatprep.subr.bf16.mxu1 %v5960_v2 }
  0x13   :  { %5463 = vmatprep.subr.bf16.mxu0 %v5960_v2 }
  0x14   :  { %4906 = vmatmul.mubr.msk.f32.gmra.mrb[4].mxu0 %vm35_vm0, %v28_v47 }
  0x15   :  { %4908 = vmatprep.mubr.msk.f32.mxu0 %vm35_vm0, %v29_v50 }
  0x18   :  { %4909 = vmatmul.mubr.msk.f32.gmra.mrb[6].mxu0 %vm35_vm0, %v30_v52 }
  0x19   :  { %4941 = vmatprep.mubr.msk.f32.mxu0 %vm5961_vm1, %v5962_v4 }
  0xdf   :  { %v4901_v18 = vpop.f32.mrb[0].mxu0  ;;  %v245_v19 = vpop.f32.mrb[0].mxu1 }
  0xe0   :  { %v126_v20 = vpop.f32.mrb[1].mxu0  ;;  %v4921_v21 = vpop.f32.mrb[1].mxu1  ;;  %v132_v38 = vadd.f32 %v4901_v18, %v6048_v17 }
  0xe1   :  { %v127_v22 = vadd.f32 %v6048_v17, %v126_v20 }
  0xe3   :  { %v249_v23 = vadd.f32 %v245_v19, %v127_v22  ;;  %v4904_v61 = vpop.f32.mrb[2].mxu0 }
  0xe4   :  { %v136_v62 = vpop.f32.mrb[3].mxu0 }
  0xe5   :  { %v250_v24 = vmul.f32 0.5, %v249_v23  ;;  %v137_v5 = vadd.f32 %v6048_v17, %v136_v62 }
  0xe7   :  { %5720 = vtanh.f32 %v250_v24  ;;  %v6103_v63 = vpop.f32.mrb[4].mxu0 }
  0xe8   :  { %5722 = vtanh.f32 %v249_v23  ;;  %v146_v0 = vpop.f32.mrb[5].mxu0 }
  0xeb   :  { %v6105_v1 = vpop.f32.mrb[6].mxu0 }
  0xec   :  { %v6107_v3 = vpop.f32.mrb[7].mxu0 }
  0xf1   :  { %v5721_v25 = vpop.eup %5720 }
  0xf2   :  { %v252_v26 = vmul.f32 0.5, %v5721_v25  ;;  %v5723_v28 = vpop.eup %5722  ;;  %v142_v25 = vadd.f32 %v4904_v61, %v6048_v17 }
  0xf4   :  { %v253_v27 = vadd.f32 0.5, %v252_v26 }
  0xf6   :  { %259 = vrot.lane.b32.xlu1 %v253_v27, %s5963_s9  ;;  %255 = vrot.lane.b32.xlu0 %v253_v27, %s5964_s10 }
  0xfa   :  { %257 = vrot.lane.b32.xlu0 %v5723_v28, %s5965_s11 }
 0x168   :  { %v256_v29 = vpop.permute.xlu0 %255  ;;  %v260_v36 = vpop.permute.xlu1 %259 }
 0x169   :  { %v261_v32 = vmul.f32 %v256_v29, %v174_v30 }
 0x16c   :  { %v258_v31 = vpop.permute.xlu0 %257 }
 0x16d   :  { %v262_v33 = vmul.f32 %v258_v31, %v253_v27 }
 0x16f   :  { %v263_v34 = vadd.f32 %v262_v33, %v261_v32 }
 0x171   :  { %5724 = vtanh.f32 %v263_v34 }
 0x17b   :  { %v5725_v35 = vpop.eup %5724 }
 0x17c   :  { %v265_v37 = vmul.f32 %v5725_v35, %v260_v36 }
 0x17e   :  { %266 = vst.msk [vmem:[#allocation2] sm:$0xff] %vm35_vm0, %v265_v37  ;;  %4931 = vmatmul.mubr.msk.f32.vlgmr.msra.gmra.mrb[2].mxu1 %vm35_vm0, %v265_v37 }
 0x17f   :  { %5459 = vmatpush3.bf16.msra.mxu1 %v6008_v9  ;;  %4952 = vmatprep.mubr.msk.f32.mxu1 %vm5961_vm1, %v5962_v4 }
 0x180   :  { %5460 = vmatprep.subr.bf16.mxu1 %v5960_v2 }
 0x183   :  { %5462 = vmatpush3.bf16.msra.mxu1 %v6021_v14 }
 0x184   :  { %5469 = vmatprep.subr.bf16.mxu1 %v5960_v2 }
 0x251   :  { %v338_v39 = vpop.f32.mrb[2].mxu1 }
 0x252   :  { %v342_v40 = vadd.f32 %v338_v39, %v132_v38  ;;  %v4932_v41 = vpop.f32.mrb[3].mxu1 }
 0x254   :  { %v343_v42 = vmul.f32 0.5, %v342_v40  ;;  %5726 = vtanh.f32 %v342_v40 }
 0x256   :  { %5728 = vtanh.f32 %v343_v42  ;;  %v147_v42 = vadd.f32 %v6048_v17, %v146_v0 }
 0x25e   :  { %v5727_v45 = vpop.eup %5726 }
 0x25f   :  { %350 = vrot.lane.b32.xlu0 %v5727_v45, %s5965_s11 }
 0x260   :  { %v5729_v48 = vpop.eup %5728 }
 0x261   :  { %v345_v49 = vmul.f32 0.5, %v5729_v48 }
 0x263   :  { %v346_v51 = vadd.f32 0.5, %v345_v49 }
 0x265   :  { %348 = vrot.lane.b32.xlu1 %v346_v51, %s5964_s10 }
 0x269   :  { %352 = vrot.lane.b32.xlu1 %v346_v51, %s5963_s9 }
 0x2d1   :  { %v351_v53 = vpop.permute.xlu0 %350 }
 0x2d2   :  { %v355_v55 = vmul.f32 %v351_v53, %v346_v51 }
 0x2d7   :  { %v349_v54 = vpop.permute.xlu1 %348 }
 0x2d8   :  { %v354_v56 = vmul.f32 %v349_v54, %v263_v34 }
 0x2da   :  { %v356_v57 = vadd.f32 %v355_v55, %v354_v56 }
 0x2db   :  { %v353_v59 = vpop.permute.xlu1 %352 }
 0x2dc   :  { %5730 = vtanh.f32 %v356_v57 }
 0x2e6   :  { %v5731_v58 = vpop.eup %5730 }
 0x2e7   :  { %v358_v60 = vmul.f32 %v5731_v58, %v353_v59  ;;  %v152_v59 = vadd.f32 %v6103_v63, %v6048_v17  ;;  %v928_v63 = vld [vmem:[%s6870_s1 + $0x50] sm:$0xff] }
 0x2e9   :  { %360 = vst.msk [vmem:[#allocation2 + $0x8] sm:$0xff] %vm35_vm0, %v358_v60  ;;  %4942 = vmatmul.mubr.msk.f32.vlgmr.msra.gmra.mrb[8].mxu0 %vm35_vm0, %v358_v60 }
 0x2ea   :  { %5465 = vmatpush3.bf16.msra.mxu0 %v6008_v9  ;;  %4963 = vmatprep.mubr.msk.f32.mxu0 %vm5961_vm1, %v5962_v4 }
 0x2eb   :  { %5466 = vmatprep.subr.bf16.mxu0 %v5960_v2 }
 0x2ee   :  { %5468 = vmatpush3.bf16.msra.mxu0 %v6021_v14 }
 0x2ef   :  { %5475 = vmatprep.subr.bf16.mxu0 %v5960_v2 }
 0x3bc   :  { %v432_v6 = vpop.f32.mrb[8].mxu0 }
 0x3bd   :  { %v436_v7 = vadd.f32 %v432_v6, %v137_v5  ;;  %v4943_v8 = vpop.f32.mrb[9].mxu0 }
 0x3bf   :  { %v437_v10 = vmul.f32 0.5, %v436_v7  ;;  %5732 = vtanh.f32 %v436_v7 }
 0x3c1   :  { %5734 = vtanh.f32 %v437_v10 }
 0x3c9   :  { %v5733_v11 = vpop.eup %5732 }
 0x3ca   :  { %444 = vrot.lane.b32.xlu1 %v5733_v11, %s5965_s11 }
 0x3cb   :  { %v5735_v12 = vpop.eup %5734 }
 0x3cc   :  { %v439_v13 = vmul.f32 0.5, %v5735_v12 }
 0x3ce   :  { %v440_v15 = vadd.f32 0.5, %v439_v13 }
 0x3d0   :  { %442 = vrot.lane.b32.xlu0 %v440_v15, %s5964_s10 }
 0x3d4   :  { %446 = vrot.lane.b32.xlu0 %v440_v15, %s5963_s9 }
 0x43c   :  { %v445_v16 = vpop.permute.xlu1 %444 }
 0x43d   :  { %v449_v19 = vmul.f32 %v445_v16, %v440_v15  ;;  %v929_v16 = vld [vmem:[%s6870_s1 + $0x58] sm:$0xff] }
 0x442   :  { %v443_v18 = vpop.permute.xlu0 %442 }
 0x443   :  { %v448_v20 = vmul.f32 %v443_v18, %v356_v57  ;;  %v930_v18 = vld [vmem:[%s6870_s1 + $0x60] sm:$0xff] }
 0x445   :  { %v450_v21 = vadd.f32 %v449_v19, %v448_v20 }
 0x446   :  { %v447_v23 = vpop.permute.xlu0 %446 }
 0x447   :  { %5736 = vtanh.f32 %v450_v21 }
 0x451   :  { %v5737_v22 = vpop.eup %5736 }
 0x452   :  { %v452_v24 = vmul.f32 %v5737_v22, %v447_v23  ;;  %v5491_v22 = vpack.c.bf16 %v930_v18, %v929_v16  ;;  %v936_v23 = vld [vmem:[#allocation2] sm:$0xff]  ;;  %v1086_v18 = vld [vmem:[%s6872_s2 + $0x30] sm:$0xff] }
 0x454   :  { %454 = vst.msk [vmem:[#allocation2 + $0x10] sm:$0xff] %vm35_vm0, %v452_v24  ;;  %4953 = vmatmul.mubr.msk.f32.vlgmr.msra.gmra.mrb[4].mxu1 %vm35_vm0, %v452_v24  ;;  %v937_v24 = vld [vmem:[#allocation2 + $0x8] sm:$0xff] }
 0x455   :  { %5471 = vmatpush3.bf16.msra.mxu1 %v6008_v9  ;;  %4974 = vmatprep.mubr.msk.f32.mxu1 %vm5961_vm1, %v5962_v4 }
 0x456   :  { %5472 = vmatprep.subr.bf16.mxu1 %v5960_v2 }
 0x459   :  { %5474 = vmatpush3.bf16.msra.mxu1 %v6021_v14 }
 0x45a   :  { %5481 = vmatprep.subr.bf16.mxu1 %v5960_v2 }
 0x527   :  { %v526_v26 = vpop.f32.mrb[4].mxu1 }
 0x528   :  { %v530_v27 = vadd.f32 %v526_v26, %v142_v25  ;;  %v4954_v28 = vpop.f32.mrb[5].mxu1  ;;  %v938_v25 = vld [vmem:[#allocation2 + $0x10] sm:$0xff] }
 0x52a   :  { %v531_v29 = vmul.f32 0.5, %v530_v27  ;;  %5738 = vtanh.f32 %v530_v27 }
 0x52c   :  { %5740 = vtanh.f32 %v531_v29  ;;  %v157_v29 = vadd.f32 %v6048_v17, %v6107_v3 }
 0x534   :  { %v5739_v30 = vpop.eup %5738 }
 0x535   :  { %538 = vrot.lane.b32.xlu0 %v5739_v30, %s5965_s11 }
 0x536   :  { %v5741_v31 = vpop.eup %5740 }
 0x537   :  { %v533_v32 = vmul.f32 0.5, %v5741_v31 }
 0x539   :  { %v534_v33 = vadd.f32 0.5, %v533_v32 }
 0x53b   :  { %536 = vrot.lane.b32.xlu1 %v534_v33, %s5964_s10 }
 0x53f   :  { %540 = vrot.lane.b32.xlu1 %v534_v33, %s5963_s9 }
 0x5a7   :  { %v539_v34 = vpop.permute.xlu0 %538 }
 0x5a8   :  { %v543_v36 = vmul.f32 %v539_v34, %v534_v33 }
 0x5ad   :  { %v537_v35 = vpop.permute.xlu1 %536 }
 0x5ae   :  { %v542_v37 = vmul.f32 %v537_v35, %v450_v21 }
 0x5b0   :  { %v544_v38 = vadd.f32 %v543_v36, %v542_v37 }
 0x5b1   :  { %v541_v40 = vpop.permute.xlu1 %540 }
 0x5b2   :  { %5742 = vtanh.f32 %v544_v38 }
 0x5bc   :  { %v5743_v39 = vpop.eup %5742 }
 0x5bd   :  { %v546_v41 = vmul.f32 %v5743_v39, %v541_v40 }
 0x5bf   :  { %548 = vst.msk [vmem:[#allocation2 + $0x18] sm:$0xff] %vm35_vm0, %v546_v41  ;;  %4964 = vmatmul.mubr.msk.f32.vlgmr.msra.gmra.mrb[10].mxu0 %vm35_vm0, %v546_v41 }
 0x5c0   :  { %5477 = vmatpush3.bf16.msra.mxu0 %v6008_v9  ;;  %4985 = vmatprep.mubr.msk.f32.mxu0 %vm5961_vm1, %v5962_v4 }
 0x5c1   :  { %5478 = vmatprep.subr.bf16.mxu0 %v5960_v2 }
 0x5c4   :  { %5480 = vmatpush3.bf16.msra.mxu0 %v6021_v14 }
 0x5c6   :  { %v939_v26 = vld [vmem:[#allocation2 + $0x18] sm:$0xff] }
 0x692   :  { %v620_v43 = vpop.f32.mrb[10].mxu0 }
 0x693   :  { %v624_v44 = vadd.f32 %v620_v43, %v147_v42  ;;  %v4965_v45 = vpop.f32.mrb[11].mxu0  ;;  %v931_v43 = vld [vmem:[%s6870_s1 + $0x68] sm:$0xff] }
 0x695   :  { %v625_v46 = vmul.f32 0.5, %v624_v44  ;;  %5744 = vtanh.f32 %v624_v44  ;;  %v932_v44 = vld [vmem:[%s6870_s1 + $0x70] sm:$0xff] }
 0x696   :  { %v6190_v45 = vpack.c.bf16 %v932_v44, %v931_v43 }
 0x697   :  { %5746 = vtanh.f32 %v625_v46  ;;  %v933_v46 = vld [vmem:[%s6870_s1 + $0x78] sm:$0xff] }
 0x69f   :  { %v5745_v47 = vpop.eup %5744 }
 0x6a0   :  { %632 = vrot.lane.b32.xlu1 %v5745_v47, %s5965_s11  ;;  %v934_v47 = vld [vmem:[%s6870_s1 + $0x80] sm:$0xff] }
 0x6a1   :  { %v5747_v48 = vpop.eup %5746 }
 0x6a2   :  { %v627_v49 = vmul.f32 0.5, %v5747_v48  ;;  %v6201_v48 = vpack.c.bf16 %v934_v47, %v933_v46 }
 0x6a4   :  { %v628_v50 = vadd.f32 0.5, %v627_v49 }
 0x6a6   :  { %630 = vrot.lane.b32.xlu0 %v628_v50, %s5964_s10 }
 0x6aa   :  { %634 = vrot.lane.b32.xlu0 %v628_v50, %s5963_s9 }
 0x712   :  { %v633_v51 = vpop.permute.xlu1 %632 }
 0x713   :  { %v637_v53 = vmul.f32 %v633_v51, %v628_v50 }
 0x718   :  { %v631_v52 = vpop.permute.xlu0 %630 }
 0x719   :  { %v636_v54 = vmul.f32 %v631_v52, %v544_v38 }
 0x71b   :  { %v638_v55 = vadd.f32 %v637_v53, %v636_v54 }
 0x71c   :  { %v635_v57 = vpop.permute.xlu0 %634 }
 0x71d   :  { %5748 = vtanh.f32 %v638_v55 }
 0x727   :  { %v5749_v56 = vpop.eup %5748 }
 0x728   :  { %v640_v58 = vmul.f32 %v5749_v56, %v635_v57  ;;  %v1085_v57 = vld [vmem:[%s6872_s2 + $0x8] sm:$0xff] }
 0x72a   :  { %642 = vst.msk [vmem:[#allocation2 + $0x20] sm:$0xff] %vm35_vm0, %v640_v58  ;;  %4975 = vmatmul.mubr.msk.f32.vlgmr.msra.gmra.mrb[6].mxu1 %vm35_vm0, %v640_v58 }
 0x72b   :  { %5483 = vmatpush3.bf16.msra.mxu1 %v6008_v9  ;;  %4996 = vmatprep.mubr.msk.f32.mxu1 %vm5961_vm1, %v5962_v4 }
 0x72c   :  { %5484 = vmatprep.subr.bf16.mxu1 %v5960_v2 }
 0x72f   :  { %5486 = vmatpush3.bf16.msra.mxu1 %v6021_v14  ;;  %v927_v14 = vld [vmem:[%s6870_s1 + $0x48] sm:$0xff] }
 0x730   :  { %5495 = vmatprep.subr.bf16.mxu1 %v5960_v2  ;;  %v5487_v8 = vpack.c.bf16 %v928_v63, %v927_v14 }
 0x731   :  { %v940_v27 = vld [vmem:[#allocation2 + $0x20] sm:$0xff] }
 0x732   :  { %5488 = vmatprep.subr.bf16.mxu0 %v5487_v8 }
 0x7fd   :  { %v714_v60 = vpop.f32.mrb[6].mxu1 }
 0x7fe   :  { %v718_v61 = vadd.f32 %v714_v60, %v152_v59  ;;  %v4976_v62 = vpop.f32.mrb[7].mxu1  ;;  %v162_v59 = vadd.f32 %v6105_v1, %v6048_v17 }
 0x800   :  { %v719_v0 = vmul.f32 0.5, %v718_v61  ;;  %5750 = vtanh.f32 %v718_v61 }
 0x802   :  { %5752 = vtanh.f32 %v719_v0 }
 0x80a   :  { %v5751_v5 = vpop.eup %5750 }
 0x80b   :  { %726 = vrot.lane.b32.xlu0 %v5751_v5, %s5965_s11  ;;  %v6229_v5 = vld [vmem:[%s6870_s1 + $0x88] ss:$0 sm:$0xff] }
 0x80c   :  { %v5753_v9 = vpop.eup %5752 }
 0x80d   :  { %v721_v6 = vmul.f32 0.5, %v5753_v9 }
 0x80f   :  { %v722_v7 = vadd.f32 0.5, %v721_v6 }
 0x811   :  { %724 = vrot.lane.b32.xlu1 %v722_v7, %s5964_s10 }
 0x815   :  { %728 = vrot.lane.b32.xlu1 %v722_v7, %s5963_s9 }
 0x87d   :  { %v727_v10 = vpop.permute.xlu0 %726 }
 0x87e   :  { %v731_v12 = vmul.f32 %v727_v10, %v722_v7 }
 0x883   :  { %v725_v11 = vpop.permute.xlu1 %724 }
 0x884   :  { %v730_v13 = vmul.f32 %v725_v11, %v638_v55 }
 0x886   :  { %v732_v15 = vadd.f32 %v731_v12, %v730_v13 }
 0x887   :  { %v729_v20 = vpop.permute.xlu1 %728 }
 0x888   :  { %5754 = vtanh.f32 %v732_v15 }
 0x892   :  { %v5755_v19 = vpop.eup %5754 }
 0x893   :  { %v734_v21 = vmul.f32 %v5755_v19, %v729_v20 }
 0x895   :  { %736 = vst.msk [vmem:[#allocation2 + $0x28] sm:$0xff] %vm35_vm0, %v734_v21  ;;  %4986 = vmatmul.mubr.msk.f32.vlgmr.msra.gmra.mrb[12].mxu0 %vm35_vm0, %v734_v21 }
 0x896   :  { %5490 = vmatpush3.bf16.msra.mxu0 %v5487_v8  ;;  %5007 = vmatprep.mubr.msk.f32.mxu0 %vm35_vm0, %v936_v23 }
 0x897   :  { %5492 = vmatprep.subr.bf16.mxu0 %v5491_v22 }
 0x89a   :  { %5494 = vmatpush3.bf16.msra.mxu0 %v5491_v22 }
 0x89b   :  { %5507 = vmatprep.subr.bf16.mxu0 %v5960_v2 }
 0x89c   :  { %v941_v28 = vld [vmem:[#allocation2 + $0x28] sm:$0xff] }
 0x89d   :  { %5008 = vmatmul.mubr.msk.f32.vlgmr.msra.gmra.mrb[14].mxu0 %vm35_vm0, %v937_v24 }
 0x89e   :  { %5010 = vmatprep.mubr.msk.f32.mxu0 %vm35_vm0, %v938_v25  ;;  %5509 = vmatpush3.bf16.msra.mxu0 %v6190_v45 }
 0x89f   :  { %5510 = vmatprep.subr.bf16.mxu0 %v5960_v2 }
 0x8a1   :  { %5011 = vmatmul.mubr.msk.f32.gmra.mrb[16].mxu0 %vm35_vm0, %v939_v26 }
 0x8a2   :  { %5013 = vmatprep.mubr.msk.f32.mxu0 %vm35_vm0, %v940_v27  ;;  %5512 = vmatpush3.bf16.msra.mxu0 %v6201_v48 }
 0x8a3   :  { %5519 = vmatprep.subr.bf16.mxu0 %v5960_v2 }
 0x8a5   :  { %5014 = vmatmul.mubr.msk.f32.gmra.mrb[18].mxu0 %vm35_vm0, %v941_v28 }
 0x968   :  { %v808_v30 = vpop.f32.mrb[12].mxu0 }
 0x969   :  { %v812_v31 = vadd.f32 %v808_v30, %v157_v29  ;;  %v4987_v32 = vpop.f32.mrb[13].mxu0 }
 0x96b   :  { %v813_v33 = vmul.f32 0.5, %v812_v31  ;;  %5756 = vtanh.f32 %v812_v31 }
 0x96d   :  { %5758 = vtanh.f32 %v813_v33 }
 0x970   :  { %v6172_v34 = vpop.f32.mrb[14].mxu0 }
 0x971   :  { %v1038_v35 = vpop.f32.mrb[15].mxu0  ;;  %v1044_v31 = vadd.f32 %v6172_v34, %v6229_v5 }
 0x972   :  { %v1039_v9 = vadd.f32 %v6229_v5, %v1038_v35 }
 0x974   :  { %v6174_v36 = vpop.f32.mrb[16].mxu0 }
 0x975   :  { %v5757_v37 = vpop.eup %5756  ;;  %v6176_v38 = vpop.f32.mrb[17].mxu0 }
 0x976   :  { %820 = vrot.lane.b32.xlu1 %v5757_v37, %s5965_s11 }
 0x977   :  { %v5759_v39 = vpop.eup %5758 }
 0x978   :  { %v6179_v40 = vpop.f32.mrb[18].mxu0  ;;  %v815_v3 = vmul.f32 0.5, %v5759_v39 }
 0x979   :  { %v6181_v41 = vpop.f32.mrb[19].mxu0 }
 0x97a   :  { %v816_v42 = vadd.f32 0.5, %v815_v3 }
 0x97c   :  { %818 = vrot.lane.b32.xlu0 %v816_v42, %s5964_s10 }
 0x980   :  { %822 = vrot.lane.b32.xlu0 %v816_v42, %s5963_s9 }
 0x9e8   :  { %v821_v49 = vpop.permute.xlu1 %820 }
 0x9e9   :  { %v825_v51 = vmul.f32 %v821_v49, %v816_v42 }
 0x9ee   :  { %v819_v50 = vpop.permute.xlu0 %818 }
 0x9ef   :  { %v824_v52 = vmul.f32 %v819_v50, %v732_v15 }
 0x9f1   :  { %v826_v53 = vadd.f32 %v825_v51, %v824_v52 }
 0x9f2   :  { %v823_v55 = vpop.permute.xlu0 %822 }
 0x9f3   :  { %5760 = vtanh.f32 %v826_v53 }
 0x9fd   :  { %v5761_v54 = vpop.eup %5760 }
 0x9fe   :  { %v828_v56 = vmul.f32 %v5761_v54, %v823_v55 }
 0xa00   :  { %830 = vst.msk [vmem:[#allocation2 + $0x30] sm:$0xff] %vm35_vm0, %v828_v56  ;;  %4997 = vmatmul.mubr.msk.f32.vlgmr.msra.gmra.mrb[8].mxu1 %vm35_vm0, %v828_v56 }
 0xa01   :  { %5497 = vmatpush3.bf16.msra.mxu1 %v6190_v45  ;;  %5027 = vmatprep.mubr.msk.f32.mxu1 %vm5961_vm1, %v5962_v4 }
 0xa02   :  { %5498 = vmatprep.subr.bf16.mxu1 %v5960_v2 }
 0xa05   :  { %5500 = vmatpush3.bf16.msra.mxu1 %v6201_v48 }
 0xa06   :  { %5501 = vmatprep.subr.bf16.mxu1 %v5960_v2 }
 0xa07   :  { %v942_v58 = vld [vmem:[#allocation2 + $0x30] sm:$0xff] }
 0xa08   :  { %5028 = vmatmul.mubr.msk.f32.vlgmr.msra.gmra.mrb[10].mxu1 %vm35_vm0, %v1085_v57  ;;  %5016 = vmatprep.mubr.msk.f32.mxu0 %vm35_vm0, %v942_v58 }
 0xa09   :  { %5503 = vmatpush3.bf16.msra.mxu1 %v6190_v45  ;;  %5038 = vmatprep.mubr.msk.f32.mxu1 %vm5961_vm1, %v5962_v4 }
 0xa0a   :  { %5504 = vmatprep.subr.bf16.mxu1 %v5960_v2 }
 0xa0d   :  { %5506 = vmatpush3.bf16.msra.mxu1 %v6201_v48 }
 0xa0e   :  { %5513 = vmatprep.subr.bf16.mxu1 %v5960_v2 }
 0xad3   :  { %v902_v60 = vpop.f32.mrb[8].mxu1 }
 0xad4   :  { %v906_v61 = vadd.f32 %v902_v60, %v162_v59  ;;  %v4998_v62 = vpop.f32.mrb[9].mxu1  ;;  %v1049_v59 = vadd.f32 %v6229_v5, %v6176_v38 }
 0xad6   :  { %v907_v0 = vmul.f32 0.5, %v906_v61 }
 0xad8   :  { %5762 = vtanh.f32 %v907_v0 }
 0xadb   :  { %v1157_v6 = vpop.f32.mrb[10].mxu1 }
 0xadc   :  { %v1161_v7 = vadd.f32 %v1157_v6, %v1039_v9  ;;  %v5029_v14 = vpop.f32.mrb[11].mxu1 }
 0xade   :  { %v1162_v63 = vmul.f32 0.5, %v1161_v7  ;;  %5764 = vtanh.f32 %v1161_v7 }
 0xae0   :  { %5766 = vtanh.f32 %v1162_v63 }
 0xae1   :  { %5768 = vtanh.f32 %v906_v61 }
 0xae2   :  { %v5763_v8 = vpop.eup %5762 }
 0xae3   :  { %v909_v17 = vmul.f32 0.5, %v5763_v8 }
 0xae5   :  { %v910_v11 = vadd.f32 0.5, %v909_v17 }
 0xae8   :  { %v5765_v1 = vpop.eup %5764 }
 0xae9   :  { %1169 = vrot.lane.b32.xlu0 %v5765_v1, %s5965_s11 }
 0xaea   :  { %v5767_v10 = vpop.eup %5766 }
 0xaeb   :  { %v1164_v12 = vmul.f32 0.5, %v5767_v10  ;;  %v5769_v15 = vpop.eup %5768 }
 0xaed   :  { %912 = vrot.lane.b32.xlu0 %v910_v11, %s5964_s10  ;;  %v1165_v13 = vadd.f32 0.5, %v1164_v12 }
 0xaef   :  { %1167 = vrot.lane.b32.xlu1 %v1165_v13, %s5964_s10 }
 0xaf3   :  { %1171 = vrot.lane.b32.xlu1 %v1165_v13, %s5963_s9 }
 0xaf7   :  { %914 = vrot.lane.b32.xlu1 %v5769_v15, %s5965_s11 }
 0xb5b   :  { %v1170_v16 = vpop.permute.xlu0 %1169 }
 0xb5c   :  { %v1174_v20 = vmul.f32 %v1170_v16, %v1165_v13  ;;  %v1054_v13 = vadd.f32 %v6174_v36, %v6229_v5 }
 0xb5f   :  { %v913_v24 = vpop.permute.xlu0 %912 }
 0xb60   :  { %v918_v26 = vmul.f32 %v913_v24, %v826_v53 }
 0xb61   :  { %v1168_v19 = vpop.permute.xlu1 %1167 }
 0xb62   :  { %v1173_v21 = vmul.f32 %v1168_v19, %v1086_v18 }
 0xb64   :  { %v1175_v22 = vadd.f32 %v1174_v20, %v1173_v21 }
 0xb65   :  { %v1172_v23 = vpop.permute.xlu1 %1171 }
 0xb66   :  { %5770 = vtanh.f32 %v1175_v22 }
 0xb69   :  { %v915_v25 = vpop.permute.xlu1 %914 }
 0xb6a   :  { %v919_v27 = vmul.f32 %v915_v25, %v910_v11 }
 0xb6c   :  { %v920_v28 = vadd.f32 %v919_v27, %v918_v26 }
 0xb6e   :  { %926 = vst.msk [vmem:[%s6873_s3 + $0x28] sm:$0xff] %vm35_vm0, %v920_v28 }
 0xb70   :  { %v5771_v29 = vpop.eup %5770 }
 0xb71   :  { %v1177_v30 = vmul.f32 %v5771_v29, %v1172_v23 }
 0xb73   :  { %1178 = vst.msk [vmem:[#allocation2] sm:$0xff] %vm35_vm0, %v1177_v30  ;;  %5039 = vmatmul.mubr.msk.f32.vlgmr.msra.gmra.mrb[12].mxu1 %vm35_vm0, %v1177_v30 }
 0xb74   :  { %5515 = vmatpush3.bf16.msra.mxu1 %v6190_v45  ;;  %5060 = vmatprep.mubr.msk.f32.mxu1 %vm5961_vm1, %v5962_v4 }
 0xb75   :  { %5516 = vmatprep.subr.bf16.mxu1 %v5960_v2 }
 0xb78   :  { %5518 = vmatpush3.bf16.msra.mxu1 %v6201_v48 }
 0xb79   :  { %5525 = vmatprep.subr.bf16.mxu1 %v5960_v2 }
 0xc46   :  { %v1249_v32 = vpop.f32.mrb[12].mxu1 }
 0xc47   :  { %v1253_v33 = vadd.f32 %v1249_v32, %v1044_v31  ;;  %v5040_v35 = vpop.f32.mrb[13].mxu1  ;;  %v1059_v31 = vadd.f32 %v6229_v5, %v6181_v41 }
 0xc49   :  { %v1254_v37 = vmul.f32 0.5, %v1253_v33  ;;  %5772 = vtanh.f32 %v1253_v33 }
 0xc4b   :  { %5774 = vtanh.f32 %v1254_v37 }
 0xc4c   :  { %5776 = vtanh.f32 %v920_v28 }
 0xc53   :  { %v5773_v39 = vpop.eup %5772 }
 0xc54   :  { %1261 = vrot.lane.b32.xlu1 %v5773_v39, %s5965_s11 }
 0xc55   :  { %v5775_v3 = vpop.eup %5774 }
 0xc56   :  { %v1256_v42 = vmul.f32 0.5, %v5775_v3  ;;  %v5777_v50 = vpop.eup %5776 }
 0xc58   :  { %v1257_v43 = vadd.f32 0.5, %v1256_v42 }
 0xc5a   :  { %1263 = vrot.lane.b32.xlu1 %v1257_v43, %s5963_s9  ;;  %1259 = vrot.lane.b32.xlu0 %v1257_v43, %s5964_s10 }
 0xc5e   :  { %916 = vrot.lane.b32.xlu0 %v910_v11, %s5963_s9 }
 0xcc6   :  { %v1262_v34 = vpop.permute.xlu1 %1261 }
 0xcc7   :  { %v1266_v46 = vmul.f32 %v1262_v34, %v1257_v43 }
 0xccc   :  { %v1260_v44 = vpop.permute.xlu0 %1259  ;;  %v1264_v55 = vpop.permute.xlu1 %1263 }
 0xccd   :  { %v1265_v47 = vmul.f32 %v1260_v44, %v1175_v22 }
 0xccf   :  { %v1267_v49 = vadd.f32 %v1266_v46, %v1265_v47 }
 0xcd0   :  { %v917_v51 = vpop.permute.xlu0 %916 }
 0xcd1   :  { %5778 = vtanh.f32 %v1267_v49  ;;  %v922_v52 = vmul.f32 %v5777_v50, %v917_v51 }
 0xcd3   :  { %924 = vst.msk [vmem:[#allocation2 + $0x38] sm:$0xff] %vm35_vm0, %v922_v52  ;;  %925 = vst.msk [vmem:[%s6873_s3] sm:$0xff] %vm35_vm0, %v922_v52  ;;  %v1064_v52 = vadd.f32 %v6179_v40, %v6229_v5  ;;  %v1826_v40 = vld [vmem:[%s6870_s1 + $0x98] sm:$0xff] }
 0xcda   :  { %v943_v53 = vld [vmem:[#allocation2 + $0x38] sm:$0xff] }
 0xcdb   :  { %v5779_v54 = vpop.eup %5778  ;;  %5017 = vmatmul.mubr.msk.f32.gmra.mrb[20].mxu0 %vm35_vm0, %v943_v53 }
 0xcdc   :  { %v1269_v56 = vmul.f32 %v5779_v54, %v1264_v55  ;;  %5049 = vmatprep.mubr.msk.f32.mxu0 %vm5961_vm1, %v5962_v4 }
 0xcde   :  { %1270 = vst.msk [vmem:[#allocation2 + $0x8] sm:$0xff] %vm35_vm0, %v1269_v56 }
 0xcdf   :  { %5050 = vmatmul.mubr.msk.f32.vlgmr.msra.gmra.mrb[22].mxu0 %vm35_vm0, %v1269_v56 }
 0xce0   :  { %5521 = vmatpush3.bf16.msra.mxu0 %v6190_v45  ;;  %5071 = vmatprep.mubr.msk.f32.mxu0 %vm5961_vm1, %v5962_v4 }
 0xce1   :  { %5522 = vmatprep.subr.bf16.mxu0 %v5960_v2 }
 0xce4   :  { %5524 = vmatpush3.bf16.msra.mxu0 %v6201_v48 }
 0xce5   :  { %5531 = vmatprep.subr.bf16.mxu0 %v5960_v2 }
 0xdae   :  { %v6274_v57 = vpop.f32.mrb[20].mxu0 }
 0xdaf   :  { %v6276_v58 = vpop.f32.mrb[21].mxu0 }
 0xdb2   :  { %v1341_v60 = vpop.f32.mrb[22].mxu0 }
 0xdb3   :  { %v1345_v61 = vadd.f32 %v1341_v60, %v1049_v59  ;;  %v5051_v62 = vpop.f32.mrb[23].mxu0 }
 0xdb5   :  { %v1346_v0 = vmul.f32 0.5, %v1345_v61  ;;  %5780 = vtanh.f32 %v1345_v61 }
 0xdb7   :  { %5782 = vtanh.f32 %v1346_v0 }
 0xdbf   :  { %v5781_v9 = vpop.eup %5780 }
 0xdc0   :  { %1353 = vrot.lane.b32.xlu1 %v5781_v9, %s5965_s11 }
 0xdc1   :  { %v5783_v6 = vpop.eup %5782 }
 0xdc2   :  { %v1348_v7 = vmul.f32 0.5, %v5783_v6 }
 0xdc4   :  { %v1349_v14 = vadd.f32 0.5, %v1348_v7 }
 0xdc6   :  { %1351 = vrot.lane.b32.xlu0 %v1349_v14, %s5964_s10 }
 0xdca   :  { %1355 = vrot.lane.b32.xlu0 %v1349_v14, %s5963_s9 }
 0xe32   :  { %v1354_v63 = vpop.permute.xlu1 %1353 }
 0xe33   :  { %v1358_v17 = vmul.f32 %v1354_v63, %v1349_v14  ;;  %v1827_v63 = vld [vmem:[%s6870_s1 + $0xa0] sm:$0xff] }
 0xe38   :  { %v1352_v8 = vpop.permute.xlu0 %1351 }
 0xe39   :  { %v1357_v38 = vmul.f32 %v1352_v8, %v1267_v49  ;;  %v1828_v8 = vld [vmem:[%s6870_s1 + $0xa8] sm:$0xff] }
 0xe3b   :  { %v1359_v1 = vadd.f32 %v1358_v17, %v1357_v38 }
 0xe3c   :  { %v1356_v11 = vpop.permute.xlu0 %1355 }
 0xe3d   :  { %5784 = vtanh.f32 %v1359_v1 }
 0xe47   :  { %v5785_v10 = vpop.eup %5784 }
 0xe48   :  { %v1361_v12 = vmul.f32 %v5785_v10, %v1356_v11  ;;  %v5547_v10 = vpack.c.bf16 %v1828_v8, %v1827_v63  ;;  %v1834_v11 = vld [vmem:[#allocation2] sm:$0xff]  ;;  %v1984_v8 = vld [vmem:[%s6872_s2 + $0x38] sm:$0xff] }
 0xe4a   :  { %1362 = vst.msk [vmem:[#allocation2 + $0x10] sm:$0xff] %vm35_vm0, %v1361_v12  ;;  %5061 = vmatmul.mubr.msk.f32.vlgmr.msra.gmra.mrb[14].mxu1 %vm35_vm0, %v1361_v12  ;;  %v1835_v12 = vld [vmem:[#allocation2 + $0x8] sm:$0xff] }
 0xe4b   :  { %5527 = vmatpush3.bf16.msra.mxu1 %v6190_v45  ;;  %5082 = vmatprep.mubr.msk.f32.mxu1 %vm5961_vm1, %v5962_v4 }
 0xe4c   :  { %5528 = vmatprep.subr.bf16.mxu1 %v5960_v2 }
 0xe4f   :  { %5530 = vmatpush3.bf16.msra.mxu1 %v6201_v48 }
 0xe50   :  { %5537 = vmatprep.subr.bf16.mxu1 %v5960_v2 }
 0xf1d   :  { %v1433_v15 = vpop.f32.mrb[14].mxu1 }
 0xf1e   :  { %v1437_v16 = vadd.f32 %v1433_v15, %v1054_v13  ;;  %v5062_v18 = vpop.f32.mrb[15].mxu1  ;;  %v1836_v13 = vld [vmem:[#allocation2 + $0x10] sm:$0xff] }
 0xf20   :  { %v1438_v19 = vmul.f32 0.5, %v1437_v16  ;;  %5786 = vtanh.f32 %v1437_v16 }
 0xf22   :  { %5788 = vtanh.f32 %v1438_v19  ;;  %v1069_v19 = vadd.f32 %v6229_v5, %v6276_v58 }
 0xf2a   :  { %v5787_v20 = vpop.eup %5786 }
 0xf2b   :  { %1445 = vrot.lane.b32.xlu0 %v5787_v20, %s5965_s11 }
 0xf2c   :  { %v5789_v21 = vpop.eup %5788 }
 0xf2d   :  { %v1440_v22 = vmul.f32 0.5, %v5789_v21 }
 0xf2f   :  { %v1441_v23 = vadd.f32 0.5, %v1440_v22 }
 0xf31   :  { %1443 = vrot.lane.b32.xlu1 %v1441_v23, %s5964_s10 }
 0xf35   :  { %1447 = vrot.lane.b32.xlu1 %v1441_v23, %s5963_s9 }
 0xf9d   :  { %v1446_v24 = vpop.permute.xlu0 %1445 }
 0xf9e   :  { %v1450_v26 = vmul.f32 %v1446_v24, %v1441_v23 }
 0xfa3   :  { %v1444_v25 = vpop.permute.xlu1 %1443 }
 0xfa4   :  { %v1449_v36 = vmul.f32 %v1444_v25, %v1359_v1 }
 0xfa6   :  { %v1451_v27 = vadd.f32 %v1450_v26, %v1449_v36 }
 0xfa7   :  { %v1448_v29 = vpop.permute.xlu1 %1447 }
 0xfa8   :  { %5790 = vtanh.f32 %v1451_v27 }
 0xfb2   :  { %v5791_v28 = vpop.eup %5790 }
 0xfb3   :  { %v1453_v30 = vmul.f32 %v5791_v28, %v1448_v29 }
 0xfb5   :  { %1454 = vst.msk [vmem:[#allocation2 + $0x18] sm:$0xff] %vm35_vm0, %v1453_v30  ;;  %5072 = vmatmul.mubr.msk.f32.vlgmr.msra.gmra.mrb[24].mxu0 %vm35_vm0, %v1453_v30 }
 0xfb6   :  { %5533 = vmatpush3.bf16.msra.mxu0 %v6190_v45  ;;  %5093 = vmatprep.mubr.msk.f32.mxu0 %vm5961_vm1, %v5962_v4 }
 0xfb7   :  { %5534 = vmatprep.subr.bf16.mxu0 %v5960_v2 }
 0xfba   :  { %5536 = vmatpush3.bf16.msra.mxu0 %v6201_v48 }
 0xfbc   :  { %v1837_v15 = vld [vmem:[#allocation2 + $0x18] sm:$0xff] }
0x1088   :  { %v1525_v32 = vpop.f32.mrb[24].mxu0 }
0x1089   :  { %v1529_v33 = vadd.f32 %v1525_v32, %v1059_v31  ;;  %v5073_v35 = vpop.f32.mrb[25].mxu0  ;;  %v1829_v32 = vld [vmem:[%s6870_s1 + $0xb0] sm:$0xff] }
0x108b   :  { %v1530_v37 = vmul.f32 0.5, %v1529_v33  ;;  %5792 = vtanh.f32 %v1529_v33  ;;  %v1830_v33 = vld [vmem:[%s6870_s1 + $0xb8] sm:$0xff] }
0x108c   :  { %v6362_v35 = vpack.c.bf16 %v1830_v33, %v1829_v32 }
0x108d   :  { %5794 = vtanh.f32 %v1530_v37  ;;  %v1831_v37 = vld [vmem:[%s6870_s1 + $0xc0] sm:$0xff] }
0x1095   :  { %v5793_v39 = vpop.eup %5792 }
0x1096   :  { %1537 = vrot.lane.b32.xlu1 %v5793_v39, %s5965_s11  ;;  %v1832_v39 = vld [vmem:[%s6870_s1 + $0xc8] sm:$0xff] }
0x1097   :  { %v5795_v3 = vpop.eup %5794 }
0x1098   :  { %v1532_v42 = vmul.f32 0.5, %v5795_v3  ;;  %v6373_v3 = vpack.c.bf16 %v1832_v39, %v1831_v37 }
0x109a   :  { %v1533_v43 = vadd.f32 0.5, %v1532_v42 }
0x109c   :  { %1535 = vrot.lane.b32.xlu0 %v1533_v43, %s5964_s10 }
0x10a0   :  { %1539 = vrot.lane.b32.xlu0 %v1533_v43, %s5963_s9 }
0x1108   :  { %v1538_v34 = vpop.permute.xlu1 %1537 }
0x1109   :  { %v1542_v46 = vmul.f32 %v1538_v34, %v1533_v43 }
0x110e   :  { %v1536_v44 = vpop.permute.xlu0 %1535 }
0x110f   :  { %v1541_v41 = vmul.f32 %v1536_v44, %v1451_v27 }
0x1111   :  { %v1543_v47 = vadd.f32 %v1542_v46, %v1541_v41 }
0x1112   :  { %v1540_v50 = vpop.permute.xlu0 %1539 }
0x1113   :  { %5796 = vtanh.f32 %v1543_v47 }
0x111d   :  { %v5797_v49 = vpop.eup %5796 }
0x111e   :  { %v1545_v51 = vmul.f32 %v5797_v49, %v1540_v50  ;;  %v1983_v50 = vld [vmem:[%s6872_s2 + $0x10] sm:$0xff] }
0x1120   :  { %1546 = vst.msk [vmem:[#allocation2 + $0x20] sm:$0xff] %vm35_vm0, %v1545_v51  ;;  %5083 = vmatmul.mubr.msk.f32.vlgmr.msra.gmra.mrb[16].mxu1 %vm35_vm0, %v1545_v51 }
0x1121   :  { %5539 = vmatpush3.bf16.msra.mxu1 %v6190_v45  ;;  %5104 = vmatprep.mubr.msk.f32.mxu1 %vm5961_vm1, %v5962_v4 }
0x1122   :  { %5540 = vmatprep.subr.bf16.mxu1 %v5960_v2 }
0x1125   :  { %5542 = vmatpush3.bf16.msra.mxu1 %v6201_v48  ;;  %v1825_v48 = vld [vmem:[%s6870_s1 + $0x90] sm:$0xff] }
0x1126   :  { %5551 = vmatprep.subr.bf16.mxu1 %v5960_v2  ;;  %v5543_v62 = vpack.c.bf16 %v1826_v40, %v1825_v48 }
0x1127   :  { %v1838_v16 = vld [vmem:[#allocation2 + $0x20] sm:$0xff] }
0x1128   :  { %5544 = vmatprep.subr.bf16.mxu0 %v5543_v62 }
0x11f3   :  { %v1617_v53 = vpop.f32.mrb[16].mxu1 }
0x11f4   :  { %v1621_v54 = vadd.f32 %v1617_v53, %v1064_v52  ;;  %v5084_v55 = vpop.f32.mrb[17].mxu1  ;;  %v1074_v52 = vadd.f32 %v6274_v57, %v6229_v5 }
0x11f6   :  { %v1622_v56 = vmul.f32 0.5, %v1621_v54  ;;  %5798 = vtanh.f32 %v1621_v54 }
0x11f8   :  { %5800 = vtanh.f32 %v1622_v56 }
0x1200   :  { %v5799_v59 = vpop.eup %5798 }
0x1201   :  { %1629 = vrot.lane.b32.xlu0 %v5799_v59, %s5965_s11  ;;  %v6401_v59 = vld [vmem:[%s6870_s1 + $0xd0] ss:$0 sm:$0xff] }
0x1202   :  { %v5801_v45 = vpop.eup %5800 }
0x1203   :  { %v1624_v60 = vmul.f32 0.5, %v5801_v45 }
0x1205   :  { %v1625_v61 = vadd.f32 0.5, %v1624_v60 }
0x1207   :  { %1627 = vrot.lane.b32.xlu1 %v1625_v61, %s5964_s10 }
0x120b   :  { %1631 = vrot.lane.b32.xlu1 %v1625_v61, %s5963_s9 }
0x1273   :  { %v1630_v0 = vpop.permute.xlu0 %1629 }
0x1274   :  { %v1634_v6 = vmul.f32 %v1630_v0, %v1625_v61 }
0x1279   :  { %v1628_v9 = vpop.permute.xlu1 %1627 }
0x127a   :  { %v1633_v7 = vmul.f32 %v1628_v9, %v1543_v47 }
0x127c   :  { %v1635_v14 = vadd.f32 %v1634_v6, %v1633_v7 }
0x127d   :  { %v1632_v38 = vpop.permute.xlu1 %1631 }
0x127e   :  { %5802 = vtanh.f32 %v1635_v14 }
0x1288   :  { %v5803_v17 = vpop.eup %5802 }
0x1289   :  { %v1637_v1 = vmul.f32 %v5803_v17, %v1632_v38 }
0x128b   :  { %1638 = vst.msk [vmem:[#allocation2 + $0x28] sm:$0xff] %vm35_vm0, %v1637_v1  ;;  %5094 = vmatmul.mubr.msk.f32.vlgmr.msra.gmra.mrb[26].mxu0 %vm35_vm0, %v1637_v1 }
0x128c   :  { %5546 = vmatpush3.bf16.msra.mxu0 %v5543_v62  ;;  %5115 = vmatprep.mubr.msk.f32.mxu0 %vm35_vm0, %v1834_v11 }
0x128d   :  { %5548 = vmatprep.subr.bf16.mxu0 %v5547_v10 }
0x1290   :  { %5550 = vmatpush3.bf16.msra.mxu0 %v5547_v10 }
0x1291   :  { %5563 = vmatprep.subr.bf16.mxu0 %v5960_v2 }
0x1292   :  { %v1839_v18 = vld [vmem:[#allocation2 + $0x28] sm:$0xff] }
0x1293   :  { %5116 = vmatmul.mubr.msk.f32.vlgmr.msra.gmra.mrb[28].mxu0 %vm35_vm0, %v1835_v12 }
0x1294   :  { %5118 = vmatprep.mubr.msk.f32.mxu0 %vm35_vm0, %v1836_v13  ;;  %5565 = vmatpush3.bf16.msra.mxu0 %v6362_v35 }
0x1295   :  { %5566 = vmatprep.subr.bf16.mxu0 %v5960_v2 }
0x1297   :  { %5119 = vmatmul.mubr.msk.f32.gmra.mrb[30].mxu0 %vm35_vm0, %v1837_v15 }
0x1298   :  { %5121 = vmatprep.mubr.msk.f32.mxu0 %vm35_vm0, %v1838_v16  ;;  %5568 = vmatpush3.bf16.msra.mxu0 %v6373_v3 }
0x1299   :  { %5575 = vmatprep.subr.bf16.mxu0 %v5960_v2 }
0x129b   :  { %5122 = vmatmul.mubr.msk.f32.gmra.mrb[32].mxu0 %vm35_vm0, %v1839_v18 }
0x135e   :  { %v1709_v20 = vpop.f32.mrb[26].mxu0 }
0x135f   :  { %v1713_v21 = vadd.f32 %v1709_v20, %v1069_v19  ;;  %v5095_v22 = vpop.f32.mrb[27].mxu0 }
0x1361   :  { %v1714_v23 = vmul.f32 0.5, %v1713_v21  ;;  %5804 = vtanh.f32 %v1713_v21 }
0x1363   :  { %5806 = vtanh.f32 %v1714_v23 }
0x1366   :  { %v6344_v24 = vpop.f32.mrb[28].mxu0 }
0x1367   :  { %v1936_v25 = vpop.f32.mrb[29].mxu0  ;;  %v1942_v21 = vadd.f32 %v6344_v24, %v6401_v59 }
0x1368   :  { %v1937_v45 = vadd.f32 %v6401_v59, %v1936_v25 }
0x136a   :  { %v6346_v26 = vpop.f32.mrb[30].mxu0 }
0x136b   :  { %v5805_v36 = vpop.eup %5804  ;;  %v6348_v27 = vpop.f32.mrb[31].mxu0 }
0x136c   :  { %1721 = vrot.lane.b32.xlu1 %v5805_v36, %s5965_s11 }
0x136d   :  { %v5807_v28 = vpop.eup %5806 }
0x136e   :  { %v6351_v29 = vpop.f32.mrb[32].mxu0  ;;  %v1716_v58 = vmul.f32 0.5, %v5807_v28 }
0x136f   :  { %v6353_v30 = vpop.f32.mrb[33].mxu0 }
0x1370   :  { %v1717_v31 = vadd.f32 0.5, %v1716_v58 }
0x1372   :  { %1719 = vrot.lane.b32.xlu0 %v1717_v31, %s5964_s10 }
0x1376   :  { %1723 = vrot.lane.b32.xlu0 %v1717_v31, %s5963_s9 }
0x13de   :  { %v1722_v42 = vpop.permute.xlu1 %1721 }
0x13df   :  { %v1726_v34 = vmul.f32 %v1722_v42, %v1717_v31 }
0x13e4   :  { %v1720_v43 = vpop.permute.xlu0 %1719 }
0x13e5   :  { %v1725_v44 = vmul.f32 %v1720_v43, %v1635_v14 }
0x13e7   :  { %v1727_v46 = vadd.f32 %v1726_v34, %v1725_v44 }
0x13e8   :  { %v1724_v47 = vpop.permute.xlu0 %1723 }
0x13e9   :  { %5808 = vtanh.f32 %v1727_v46 }
0x13f3   :  { %v5809_v41 = vpop.eup %5808 }
0x13f4   :  { %v1729_v49 = vmul.f32 %v5809_v41, %v1724_v47 }
0x13f6   :  { %1730 = vst.msk [vmem:[#allocation2 + $0x30] sm:$0xff] %vm35_vm0, %v1729_v49  ;;  %5105 = vmatmul.mubr.msk.f32.vlgmr.msra.gmra.mrb[18].mxu1 %vm35_vm0, %v1729_v49 }
0x13f7   :  { %5553 = vmatpush3.bf16.msra.mxu1 %v6362_v35  ;;  %5135 = vmatprep.mubr.msk.f32.mxu1 %vm5961_vm1, %v5962_v4 }
0x13f8   :  { %5554 = vmatprep.subr.bf16.mxu1 %v5960_v2 }
0x13fb   :  { %5556 = vmatpush3.bf16.msra.mxu1 %v6373_v3 }
0x13fc   :  { %5557 = vmatprep.subr.bf16.mxu1 %v5960_v2 }
0x13fd   :  { %v1840_v51 = vld [vmem:[#allocation2 + $0x30] sm:$0xff] }
0x13fe   :  { %5136 = vmatmul.mubr.msk.f32.vlgmr.msra.gmra.mrb[20].mxu1 %vm35_vm0, %v1983_v50  ;;  %5124 = vmatprep.mubr.msk.f32.mxu0 %vm35_vm0, %v1840_v51 }
0x13ff   :  { %5559 = vmatpush3.bf16.msra.mxu1 %v6362_v35  ;;  %5146 = vmatprep.mubr.msk.f32.mxu1 %vm5961_vm1, %v5962_v4 }
0x1400   :  { %5560 = vmatprep.subr.bf16.mxu1 %v5960_v2 }
0x1403   :  { %5562 = vmatpush3.bf16.msra.mxu1 %v6373_v3 }
0x1404   :  { %5569 = vmatprep.subr.bf16.mxu1 %v5960_v2 }
0x14c9   :  { %v1801_v53 = vpop.f32.mrb[18].mxu1 }
0x14ca   :  { %v1805_v54 = vadd.f32 %v1801_v53, %v1074_v52  ;;  %v5106_v55 = vpop.f32.mrb[19].mxu1  ;;  %v1947_v52 = vadd.f32 %v6401_v59, %v6348_v27 }
0x14cc   :  { %v1806_v56 = vmul.f32 0.5, %v1805_v54 }
0x14ce   :  { %5810 = vtanh.f32 %v1806_v56 }
0x14d1   :  { %v2055_v60 = vpop.f32.mrb[20].mxu1 }
0x14d2   :  { %v2059_v61 = vadd.f32 %v2055_v60, %v1937_v45  ;;  %v5137_v48 = vpop.f32.mrb[21].mxu1 }
0x14d4   :  { %v2060_v40 = vmul.f32 0.5, %v2059_v61  ;;  %5812 = vtanh.f32 %v2059_v61 }
0x14d6   :  { %5814 = vtanh.f32 %v2060_v40 }
0x14d7   :  { %5816 = vtanh.f32 %v1805_v54 }
0x14d8   :  { %v5811_v62 = vpop.eup %5810 }
0x14d9   :  { %v1808_v5 = vmul.f32 0.5, %v5811_v62 }
0x14db   :  { %v1809_v9 = vadd.f32 0.5, %v1808_v5 }
0x14de   :  { %v5813_v57 = vpop.eup %5812 }
0x14df   :  { %2067 = vrot.lane.b32.xlu0 %v5813_v57, %s5965_s11 }
0x14e0   :  { %v5815_v0 = vpop.eup %5814 }
0x14e1   :  { %v2062_v6 = vmul.f32 0.5, %v5815_v0  ;;  %v5817_v14 = vpop.eup %5816 }
0x14e3   :  { %1811 = vrot.lane.b32.xlu0 %v1809_v9, %s5964_s10  ;;  %v2063_v7 = vadd.f32 0.5, %v2062_v6 }
0x14e5   :  { %2065 = vrot.lane.b32.xlu1 %v2063_v7, %s5964_s10 }
0x14e9   :  { %2069 = vrot.lane.b32.xlu1 %v2063_v7, %s5963_s9 }
0x14ed   :  { %1813 = vrot.lane.b32.xlu1 %v5817_v14, %s5965_s11 }
0x1551   :  { %v2068_v63 = vpop.permute.xlu0 %2067 }
0x1552   :  { %v2072_v38 = vmul.f32 %v2068_v63, %v2063_v7  ;;  %v1952_v7 = vadd.f32 %v6346_v26, %v6401_v59 }
0x1555   :  { %v1812_v12 = vpop.permute.xlu0 %1811 }
0x1556   :  { %v1817_v15 = vmul.f32 %v1812_v12, %v1727_v46 }
0x1557   :  { %v2066_v17 = vpop.permute.xlu1 %2065 }
0x1558   :  { %v2071_v1 = vmul.f32 %v2066_v17, %v1984_v8 }
0x155a   :  { %v2073_v10 = vadd.f32 %v2072_v38, %v2071_v1 }
0x155b   :  { %v2070_v11 = vpop.permute.xlu1 %2069 }
0x155c   :  { %5818 = vtanh.f32 %v2073_v10 }
0x155f   :  { %v1814_v13 = vpop.permute.xlu1 %1813 }
0x1560   :  { %v1818_v16 = vmul.f32 %v1814_v13, %v1809_v9 }
0x1562   :  { %v1819_v18 = vadd.f32 %v1818_v16, %v1817_v15 }
0x1564   :  { %1824 = vst.msk [vmem:[%s6873_s3 + $0x30] sm:$0xff] %vm35_vm0, %v1819_v18 }
0x1566   :  { %v5819_v19 = vpop.eup %5818 }
0x1567   :  { %v2075_v20 = vmul.f32 %v5819_v19, %v2070_v11 }
0x1569   :  { %2076 = vst.msk [vmem:[#allocation2] sm:$0xff] %vm35_vm0, %v2075_v20  ;;  %5147 = vmatmul.mubr.msk.f32.vlgmr.msra.gmra.mrb[22].mxu1 %vm35_vm0, %v2075_v20 }
0x156a   :  { %5571 = vmatpush3.bf16.msra.mxu1 %v6362_v35  ;;  %5168 = vmatprep.mubr.msk.f32.mxu1 %vm5961_vm1, %v5962_v4 }
0x156b   :  { %5572 = vmatprep.subr.bf16.mxu1 %v5960_v2 }
0x156e   :  { %5574 = vmatpush3.bf16.msra.mxu1 %v6373_v3 }
0x156f   :  { %5581 = vmatprep.subr.bf16.mxu1 %v5960_v2 }
0x163c   :  { %v2147_v22 = vpop.f32.mrb[22].mxu1 }
0x163d   :  { %v2151_v23 = vadd.f32 %v2147_v22, %v1942_v21  ;;  %v5148_v25 = vpop.f32.mrb[23].mxu1  ;;  %v1957_v21 = vadd.f32 %v6401_v59, %v6353_v30 }
0x163f   :  { %v2152_v36 = vmul.f32 0.5, %v2151_v23  ;;  %5820 = vtanh.f32 %v2151_v23 }
0x1641   :  { %5822 = vtanh.f32 %v2152_v36 }
0x1642   :  { %5824 = vtanh.f32 %v1819_v18 }
0x1649   :  { %v5821_v28 = vpop.eup %5820 }
0x164a   :  { %2159 = vrot.lane.b32.xlu1 %v5821_v28, %s5965_s11 }
0x164b   :  { %v5823_v58 = vpop.eup %5822 }
0x164c   :  { %v2154_v31 = vmul.f32 0.5, %v5823_v58  ;;  %v5825_v43 = vpop.eup %5824 }
0x164e   :  { %v2155_v32 = vadd.f32 0.5, %v2154_v31 }
0x1650   :  { %2161 = vrot.lane.b32.xlu1 %v2155_v32, %s5963_s9  ;;  %2157 = vrot.lane.b32.xlu0 %v2155_v32, %s5964_s10 }
0x1654   :  { %1815 = vrot.lane.b32.xlu0 %v1809_v9, %s5963_s9 }
0x16bc   :  { %v2160_v24 = vpop.permute.xlu1 %2159 }
0x16bd   :  { %v2164_v37 = vmul.f32 %v2160_v24, %v2155_v32 }
0x16c2   :  { %v2158_v33 = vpop.permute.xlu0 %2157  ;;  %v2162_v47 = vpop.permute.xlu1 %2161 }
0x16c3   :  { %v2163_v39 = vmul.f32 %v2158_v33, %v2073_v10 }
0x16c5   :  { %v2165_v42 = vadd.f32 %v2164_v37, %v2163_v39 }
0x16c6   :  { %v1816_v34 = vpop.permute.xlu0 %1815 }
0x16c7   :  { %5826 = vtanh.f32 %v2165_v42  ;;  %v1821_v44 = vmul.f32 %v5825_v43, %v1816_v34 }
0x16c9   :  { %1822 = vst.msk [vmem:[#allocation2 + $0x38] sm:$0xff] %vm35_vm0, %v1821_v44  ;;  %1823 = vst.msk [vmem:[%s6873_s3 + $0x8] sm:$0xff] %vm35_vm0, %v1821_v44  ;;  %v1962_v44 = vadd.f32 %v6351_v29, %v6401_v59  ;;  %v2724_v29 = vld [vmem:[%s6870_s1 + $0xe0] sm:$0xff] }
0x16d0   :  { %v1841_v46 = vld [vmem:[#allocation2 + $0x38] sm:$0xff] }
0x16d1   :  { %v5827_v41 = vpop.eup %5826  ;;  %5125 = vmatmul.mubr.msk.f32.gmra.mrb[34].mxu0 %vm35_vm0, %v1841_v46 }
0x16d2   :  { %v2167_v49 = vmul.f32 %v5827_v41, %v2162_v47  ;;  %5157 = vmatprep.mubr.msk.f32.mxu0 %vm5961_vm1, %v5962_v4 }
0x16d4   :  { %2168 = vst.msk [vmem:[#allocation2 + $0x8] sm:$0xff] %vm35_vm0, %v2167_v49 }
0x16d5   :  { %5158 = vmatmul.mubr.msk.f32.vlgmr.msra.gmra.mrb[36].mxu0 %vm35_vm0, %v2167_v49 }
0x16d6   :  { %5577 = vmatpush3.bf16.msra.mxu0 %v6362_v35  ;;  %5179 = vmatprep.mubr.msk.f32.mxu0 %vm5961_vm1, %v5962_v4 }
0x16d7   :  { %5578 = vmatprep.subr.bf16.mxu0 %v5960_v2 }
0x16da   :  { %5580 = vmatpush3.bf16.msra.mxu0 %v6373_v3 }
0x16db   :  { %5587 = vmatprep.subr.bf16.mxu0 %v5960_v2 }
0x17a4   :  { %v6446_v50 = vpop.f32.mrb[34].mxu0 }
0x17a5   :  { %v6448_v51 = vpop.f32.mrb[35].mxu0 }
0x17a8   :  { %v2239_v53 = vpop.f32.mrb[36].mxu0 }
0x17a9   :  { %v2243_v54 = vadd.f32 %v2239_v53, %v1947_v52  ;;  %v5159_v55 = vpop.f32.mrb[37].mxu0 }
0x17ab   :  { %v2244_v56 = vmul.f32 0.5, %v2243_v54  ;;  %5828 = vtanh.f32 %v2243_v54 }
0x17ad   :  { %5830 = vtanh.f32 %v2244_v56 }
0x17b5   :  { %v5829_v45 = vpop.eup %5828 }
0x17b6   :  { %2251 = vrot.lane.b32.xlu1 %v5829_v45, %s5965_s11 }
0x17b7   :  { %v5831_v60 = vpop.eup %5830 }
0x17b8   :  { %v2246_v61 = vmul.f32 0.5, %v5831_v60 }
0x17ba   :  { %v2247_v48 = vadd.f32 0.5, %v2246_v61 }
0x17bc   :  { %2249 = vrot.lane.b32.xlu0 %v2247_v48, %s5964_s10 }
0x17c0   :  { %2253 = vrot.lane.b32.xlu0 %v2247_v48, %s5963_s9 }
0x1828   :  { %v2252_v40 = vpop.permute.xlu1 %2251 }
0x1829   :  { %v2256_v5 = vmul.f32 %v2252_v40, %v2247_v48  ;;  %v2725_v40 = vld [vmem:[%s6870_s1 + $0xe8] sm:$0xff] }
0x182e   :  { %v2250_v62 = vpop.permute.xlu0 %2249 }
0x182f   :  { %v2255_v27 = vmul.f32 %v2250_v62, %v2165_v42  ;;  %v2726_v62 = vld [vmem:[%s6870_s1 + $0xf0] sm:$0xff] }
0x1831   :  { %v2257_v57 = vadd.f32 %v2256_v5, %v2255_v27 }
0x1832   :  { %v2254_v9 = vpop.permute.xlu0 %2253 }
0x1833   :  { %5832 = vtanh.f32 %v2257_v57 }
0x183d   :  { %v5833_v0 = vpop.eup %5832 }
0x183e   :  { %v2259_v6 = vmul.f32 %v5833_v0, %v2254_v9  ;;  %v5603_v0 = vpack.c.bf16 %v2726_v62, %v2725_v40  ;;  %v2732_v9 = vld [vmem:[#allocation2] sm:$0xff] }
0x183f   :  { %v2882_v62 = vld [vmem:[%s6872_s2 + $0x40] sm:$0xff] }
0x1840   :  { %2260 = vst.msk [vmem:[#allocation2 + $0x10] sm:$0xff] %vm35_vm0, %v2259_v6  ;;  %5169 = vmatmul.mubr.msk.f32.vlgmr.msra.gmra.mrb[24].mxu1 %vm35_vm0, %v2259_v6  ;;  %v2733_v6 = vld [vmem:[#allocation2 + $0x8] sm:$0xff] }
0x1841   :  { %5583 = vmatpush3.bf16.msra.mxu1 %v6362_v35  ;;  %5190 = vmatprep.mubr.msk.f32.mxu1 %vm5961_vm1, %v5962_v4 }
0x1842   :  { %5584 = vmatprep.subr.bf16.mxu1 %v5960_v2 }
0x1845   :  { %5586 = vmatpush3.bf16.msra.mxu1 %v6373_v3 }
0x1846   :  { %5593 = vmatprep.subr.bf16.mxu1 %v5960_v2 }
0x1913   :  { %v2331_v14 = vpop.f32.mrb[24].mxu1 }
0x1914   :  { %v2335_v63 = vadd.f32 %v2331_v14, %v1952_v7  ;;  %v5170_v8 = vpop.f32.mrb[25].mxu1  ;;  %v2734_v7 = vld [vmem:[#allocation2 + $0x10] sm:$0xff] }
0x1916   :  { %v2336_v17 = vmul.f32 0.5, %v2335_v63  ;;  %5834 = vtanh.f32 %v2335_v63 }
0x1918   :  { %5836 = vtanh.f32 %v2336_v17  ;;  %v1967_v17 = vadd.f32 %v6401_v59, %v6448_v51 }
0x1920   :  { %v5835_v38 = vpop.eup %5834 }
0x1921   :  { %2343 = vrot.lane.b32.xlu0 %v5835_v38, %s5965_s11 }
0x1922   :  { %v5837_v1 = vpop.eup %5836 }
0x1923   :  { %v2338_v10 = vmul.f32 0.5, %v5837_v1 }
0x1925   :  { %v2339_v11 = vadd.f32 0.5, %v2338_v10 }
0x1927   :  { %2341 = vrot.lane.b32.xlu1 %v2339_v11, %s5964_s10 }
0x192b   :  { %2345 = vrot.lane.b32.xlu1 %v2339_v11, %s5963_s9 }
0x1993   :  { %v2344_v12 = vpop.permute.xlu0 %2343 }
0x1994   :  { %v2348_v15 = vmul.f32 %v2344_v12, %v2339_v11 }
0x1999   :  { %v2342_v13 = vpop.permute.xlu1 %2341 }
0x199a   :  { %v2347_v26 = vmul.f32 %v2342_v13, %v2257_v57 }
0x199c   :  { %v2349_v16 = vadd.f32 %v2348_v15, %v2347_v26 }
0x199d   :  { %v2346_v19 = vpop.permute.xlu1 %2345 }
0x199e   :  { %5838 = vtanh.f32 %v2349_v16 }
0x19a8   :  { %v5839_v18 = vpop.eup %5838 }
0x19a9   :  { %v2351_v20 = vmul.f32 %v5839_v18, %v2346_v19 }
0x19ab   :  { %2352 = vst.msk [vmem:[#allocation2 + $0x18] sm:$0xff] %vm35_vm0, %v2351_v20  ;;  %5180 = vmatmul.mubr.msk.f32.vlgmr.msra.gmra.mrb[38].mxu0 %vm35_vm0, %v2351_v20 }
0x19ac   :  { %5589 = vmatpush3.bf16.msra.mxu0 %v6362_v35  ;;  %5201 = vmatprep.mubr.msk.f32.mxu0 %vm5961_vm1, %v5962_v4 }
0x19ad   :  { %5590 = vmatprep.subr.bf16.mxu0 %v5960_v2 }
0x19b0   :  { %5592 = vmatpush3.bf16.msra.mxu0 %v6373_v3 }
0x19b2   :  { %v2735_v14 = vld [vmem:[#allocation2 + $0x18] sm:$0xff] }
0x1a7e   :  { %v2423_v22 = vpop.f32.mrb[38].mxu0 }
0x1a7f   :  { %v2427_v23 = vadd.f32 %v2423_v22, %v1957_v21  ;;  %v5181_v25 = vpop.f32.mrb[39].mxu0  ;;  %v2727_v22 = vld [vmem:[%s6870_s1 + $0xf8] sm:$0xff] }
0x1a81   :  { %v2428_v36 = vmul.f32 0.5, %v2427_v23  ;;  %5840 = vtanh.f32 %v2427_v23  ;;  %v2728_v23 = vld [vmem:[%s6870_s1 + $0x100] sm:$0xff] }
0x1a82   :  { %v6534_v25 = vpack.c.bf16 %v2728_v23, %v2727_v22 }
0x1a83   :  { %5842 = vtanh.f32 %v2428_v36  ;;  %v2729_v36 = vld [vmem:[%s6870_s1 + $0x108] sm:$0xff] }
0x1a8b   :  { %v5841_v28 = vpop.eup %5840 }
0x1a8c   :  { %2435 = vrot.lane.b32.xlu1 %v5841_v28, %s5965_s11  ;;  %v2730_v28 = vld [vmem:[%s6870_s1 + $0x110] sm:$0xff] }
0x1a8d   :  { %v5843_v58 = vpop.eup %5842 }
0x1a8e   :  { %v2430_v31 = vmul.f32 0.5, %v5843_v58  ;;  %v6545_v58 = vpack.c.bf16 %v2730_v28, %v2729_v36 }
0x1a90   :  { %v2431_v32 = vadd.f32 0.5, %v2430_v31 }
0x1a92   :  { %2433 = vrot.lane.b32.xlu0 %v2431_v32, %s5964_s10 }
0x1a96   :  { %2437 = vrot.lane.b32.xlu0 %v2431_v32, %s5963_s9 }
0x1afe   :  { %v2436_v24 = vpop.permute.xlu1 %2435 }
0x1aff   :  { %v2440_v37 = vmul.f32 %v2436_v24, %v2431_v32 }
0x1b04   :  { %v2434_v33 = vpop.permute.xlu0 %2433 }
0x1b05   :  { %v2439_v30 = vmul.f32 %v2434_v33, %v2349_v16 }
0x1b07   :  { %v2441_v39 = vadd.f32 %v2440_v37, %v2439_v30 }
0x1b08   :  { %v2438_v43 = vpop.permute.xlu0 %2437 }
0x1b09   :  { %5844 = vtanh.f32 %v2441_v39 }
0x1b13   :  { %v5845_v42 = vpop.eup %5844 }
0x1b14   :  { %v2443_v34 = vmul.f32 %v5845_v42, %v2438_v43  ;;  %v2881_v43 = vld [vmem:[%s6872_s2 + $0x18] sm:$0xff] }
0x1b16   :  { %2444 = vst.msk [vmem:[#allocation2 + $0x20] sm:$0xff] %vm35_vm0, %v2443_v34  ;;  %5191 = vmatmul.mubr.msk.f32.vlgmr.msra.gmra.mrb[26].mxu1 %vm35_vm0, %v2443_v34 }
0x1b17   :  { %5595 = vmatpush3.bf16.msra.mxu1 %v6362_v35  ;;  %5212 = vmatprep.mubr.msk.f32.mxu1 %vm5961_vm1, %v5962_v4 }
0x1b18   :  { %5596 = vmatprep.subr.bf16.mxu1 %v5960_v2 }
0x1b1b   :  { %5598 = vmatpush3.bf16.msra.mxu1 %v6373_v3  ;;  %v2723_v3 = vld [vmem:[%s6870_s1 + $0xd8] sm:$0xff] }
0x1b1c   :  { %5607 = vmatprep.subr.bf16.mxu1 %v5960_v2  ;;  %v5599_v55 = vpack.c.bf16 %v2724_v29, %v2723_v3 }
0x1b1d   :  { %v2736_v63 = vld [vmem:[#allocation2 + $0x20] sm:$0xff] }
0x1b1e   :  { %5600 = vmatprep.subr.bf16.mxu0 %v5599_v55 }
0x1be9   :  { %v2515_v46 = vpop.f32.mrb[26].mxu1 }
0x1bea   :  { %v2519_v41 = vadd.f32 %v2515_v46, %v1962_v44  ;;  %v5192_v47 = vpop.f32.mrb[27].mxu1  ;;  %v1972_v44 = vadd.f32 %v6446_v50, %v6401_v59 }
0x1bec   :  { %v2520_v49 = vmul.f32 0.5, %v2519_v41  ;;  %5846 = vtanh.f32 %v2519_v41 }
0x1bee   :  { %5848 = vtanh.f32 %v2520_v49 }
0x1bf6   :  { %v5847_v52 = vpop.eup %5846 }
0x1bf7   :  { %2527 = vrot.lane.b32.xlu0 %v5847_v52, %s5965_s11  ;;  %v6573_v52 = vld [vmem:[%s6870_s1 + $0x118] ss:$0 sm:$0xff] }
0x1bf8   :  { %v5849_v35 = vpop.eup %5848 }
0x1bf9   :  { %v2522_v53 = vmul.f32 0.5, %v5849_v35 }
0x1bfb   :  { %v2523_v54 = vadd.f32 0.5, %v2522_v53 }
0x1bfd   :  { %2525 = vrot.lane.b32.xlu1 %v2523_v54, %s5964_s10 }
0x1c01   :  { %2529 = vrot.lane.b32.xlu1 %v2523_v54, %s5963_s9 }
0x1c69   :  { %v2528_v56 = vpop.permute.xlu0 %2527 }
0x1c6a   :  { %v2532_v60 = vmul.f32 %v2528_v56, %v2523_v54 }
0x1c6f   :  { %v2526_v45 = vpop.permute.xlu1 %2525 }
0x1c70   :  { %v2531_v61 = vmul.f32 %v2526_v45, %v2441_v39 }
0x1c72   :  { %v2533_v48 = vadd.f32 %v2532_v60, %v2531_v61 }
0x1c73   :  { %v2530_v27 = vpop.permute.xlu1 %2529 }
0x1c74   :  { %5850 = vtanh.f32 %v2533_v48 }
0x1c7e   :  { %v5851_v5 = vpop.eup %5850 }
0x1c7f   :  { %v2535_v57 = vmul.f32 %v5851_v5, %v2530_v27 }
0x1c81   :  { %2536 = vst.msk [vmem:[#allocation2 + $0x28] sm:$0xff] %vm35_vm0, %v2535_v57  ;;  %5202 = vmatmul.mubr.msk.f32.vlgmr.msra.gmra.mrb[40].mxu0 %vm35_vm0, %v2535_v57 }
0x1c82   :  { %5602 = vmatpush3.bf16.msra.mxu0 %v5599_v55  ;;  %5223 = vmatprep.mubr.msk.f32.mxu0 %vm35_vm0, %v2732_v9 }
0x1c83   :  { %5604 = vmatprep.subr.bf16.mxu0 %v5603_v0 }
0x1c86   :  { %5606 = vmatpush3.bf16.msra.mxu0 %v5603_v0 }
0x1c87   :  { %5619 = vmatprep.subr.bf16.mxu0 %v5960_v2 }
0x1c88   :  { %v2737_v8 = vld [vmem:[#allocation2 + $0x28] sm:$0xff] }
0x1c89   :  { %5224 = vmatmul.mubr.msk.f32.vlgmr.msra.gmra.mrb[42].mxu0 %vm35_vm0, %v2733_v6 }
0x1c8a   :  { %5226 = vmatprep.mubr.msk.f32.mxu0 %vm35_vm0, %v2734_v7  ;;  %5621 = vmatpush3.bf16.msra.mxu0 %v6534_v25 }
0x1c8b   :  { %5622 = vmatprep.subr.bf16.mxu0 %v5960_v2 }
0x1c8d   :  { %5227 = vmatmul.mubr.msk.f32.gmra.mrb[44].mxu0 %vm35_vm0, %v2735_v14 }
0x1c8e   :  { %5229 = vmatprep.mubr.msk.f32.mxu0 %vm35_vm0, %v2736_v63  ;;  %5624 = vmatpush3.bf16.msra.mxu0 %v6545_v58 }
0x1c8f   :  { %5631 = vmatprep.subr.bf16.mxu0 %v5960_v2 }
0x1c91   :  { %5230 = vmatmul.mubr.msk.f32.gmra.mrb[46].mxu0 %vm35_vm0, %v2737_v8 }
0x1d54   :  { %v2607_v38 = vpop.f32.mrb[40].mxu0 }
0x1d55   :  { %v2611_v1 = vadd.f32 %v2607_v38, %v1967_v17  ;;  %v5203_v10 = vpop.f32.mrb[41].mxu0 }
0x1d57   :  { %v2612_v11 = vmul.f32 0.5, %v2611_v1  ;;  %5852 = vtanh.f32 %v2611_v1 }
0x1d59   :  { %5854 = vtanh.f32 %v2612_v11 }
0x1d5c   :  { %v6516_v12 = vpop.f32.mrb[42].mxu0 }
0x1d5d   :  { %v2834_v13 = vpop.f32.mrb[43].mxu0  ;;  %v2840_v1 = vadd.f32 %v6516_v12, %v6573_v52 }
0x1d5e   :  { %v2835_v35 = vadd.f32 %v6573_v52, %v2834_v13 }
0x1d60   :  { %v6518_v15 = vpop.f32.mrb[44].mxu0 }
0x1d61   :  { %v5853_v26 = vpop.eup %5852  ;;  %v6520_v16 = vpop.f32.mrb[45].mxu0 }
0x1d62   :  { %2619 = vrot.lane.b32.xlu1 %v5853_v26, %s5965_s11 }
0x1d63   :  { %v5855_v18 = vpop.eup %5854 }
0x1d64   :  { %v6523_v19 = vpop.f32.mrb[46].mxu0  ;;  %v2614_v51 = vmul.f32 0.5, %v5855_v18 }
0x1d65   :  { %v6525_v20 = vpop.f32.mrb[47].mxu0 }
0x1d66   :  { %v2615_v21 = vadd.f32 0.5, %v2614_v51 }
0x1d68   :  { %2617 = vrot.lane.b32.xlu0 %v2615_v21, %s5964_s10 }
0x1d6c   :  { %2621 = vrot.lane.b32.xlu0 %v2615_v21, %s5963_s9 }
0x1dd4   :  { %v2620_v31 = vpop.permute.xlu1 %2619 }
0x1dd5   :  { %v2624_v24 = vmul.f32 %v2620_v31, %v2615_v21 }
0x1dda   :  { %v2618_v32 = vpop.permute.xlu0 %2617 }
0x1ddb   :  { %v2623_v33 = vmul.f32 %v2618_v32, %v2533_v48 }
0x1ddd   :  { %v2625_v37 = vadd.f32 %v2624_v24, %v2623_v33 }
0x1dde   :  { %v2622_v39 = vpop.permute.xlu0 %2621 }
0x1ddf   :  { %5856 = vtanh.f32 %v2625_v37 }
0x1de9   :  { %v5857_v30 = vpop.eup %5856 }
0x1dea   :  { %v2627_v42 = vmul.f32 %v5857_v30, %v2622_v39 }
0x1dec   :  { %2628 = vst.msk [vmem:[#allocation2 + $0x30] sm:$0xff] %vm35_vm0, %v2627_v42  ;;  %5213 = vmatmul.mubr.msk.f32.vlgmr.msra.gmra.mrb[28].mxu1 %vm35_vm0, %v2627_v42 }
0x1ded   :  { %5609 = vmatpush3.bf16.msra.mxu1 %v6534_v25  ;;  %5243 = vmatprep.mubr.msk.f32.mxu1 %vm5961_vm1, %v5962_v4 }
0x1dee   :  { %5610 = vmatprep.subr.bf16.mxu1 %v5960_v2 }
0x1df1   :  { %5612 = vmatpush3.bf16.msra.mxu1 %v6545_v58 }
0x1df2   :  { %5613 = vmatprep.subr.bf16.mxu1 %v5960_v2 }
0x1df3   :  { %v2738_v34 = vld [vmem:[#allocation2 + $0x30] sm:$0xff] }
0x1df4   :  { %5244 = vmatmul.mubr.msk.f32.vlgmr.msra.gmra.mrb[30].mxu1 %vm35_vm0, %v2881_v43  ;;  %5232 = vmatprep.mubr.msk.f32.mxu0 %vm35_vm0, %v2738_v34 }
0x1df5   :  { %5615 = vmatpush3.bf16.msra.mxu1 %v6534_v25  ;;  %5254 = vmatprep.mubr.msk.f32.mxu1 %vm5961_vm1, %v5962_v4 }
0x1df6   :  { %5616 = vmatprep.subr.bf16.mxu1 %v5960_v2 }
0x1df9   :  { %5618 = vmatpush3.bf16.msra.mxu1 %v6545_v58 }
0x1dfa   :  { %5625 = vmatprep.subr.bf16.mxu1 %v5960_v2 }
0x1ebf   :  { %v2699_v46 = vpop.f32.mrb[28].mxu1 }
0x1ec0   :  { %v2703_v41 = vadd.f32 %v2699_v46, %v1972_v44  ;;  %v5214_v47 = vpop.f32.mrb[29].mxu1  ;;  %v2845_v44 = vadd.f32 %v6573_v52, %v6520_v16 }
0x1ec2   :  { %v2704_v49 = vmul.f32 0.5, %v2703_v41 }
0x1ec4   :  { %5858 = vtanh.f32 %v2704_v49 }
0x1ec7   :  { %v2953_v53 = vpop.f32.mrb[30].mxu1 }
0x1ec8   :  { %v2957_v54 = vadd.f32 %v2953_v53, %v2835_v35  ;;  %v5245_v3 = vpop.f32.mrb[31].mxu1 }
0x1eca   :  { %v2958_v29 = vmul.f32 0.5, %v2957_v54  ;;  %5860 = vtanh.f32 %v2957_v54 }
0x1ecc   :  { %5862 = vtanh.f32 %v2958_v29 }
0x1ecd   :  { %5864 = vtanh.f32 %v2703_v41 }
0x1ece   :  { %v5859_v55 = vpop.eup %5858 }
0x1ecf   :  { %v2706_v59 = vmul.f32 0.5, %v5859_v55 }
0x1ed1   :  { %v2707_v45 = vadd.f32 0.5, %v2706_v59 }
0x1ed4   :  { %v5861_v50 = vpop.eup %5860 }
0x1ed5   :  { %2965 = vrot.lane.b32.xlu0 %v5861_v50, %s5965_s11 }
0x1ed6   :  { %v5863_v56 = vpop.eup %5862 }
0x1ed7   :  { %v2960_v60 = vmul.f32 0.5, %v5863_v56  ;;  %v5865_v48 = vpop.eup %5864 }
0x1ed9   :  { %2709 = vrot.lane.b32.xlu0 %v2707_v45, %s5964_s10  ;;  %v2961_v61 = vadd.f32 0.5, %v2960_v60 }
0x1edb   :  { %2963 = vrot.lane.b32.xlu1 %v2961_v61, %s5964_s10 }
0x1edf   :  { %2967 = vrot.lane.b32.xlu1 %v2961_v61, %s5963_s9 }
0x1ee3   :  { %2711 = vrot.lane.b32.xlu1 %v5865_v48, %s5965_s11 }
0x1f47   :  { %v2966_v40 = vpop.permute.xlu0 %2965 }
0x1f48   :  { %v2970_v27 = vmul.f32 %v2966_v40, %v2961_v61  ;;  %v2850_v61 = vadd.f32 %v6518_v15, %v6573_v52 }
0x1f4b   :  { %v2710_v6 = vpop.permute.xlu0 %2709 }
0x1f4c   :  { %v2715_v14 = vmul.f32 %v2710_v6, %v2625_v37 }
0x1f4d   :  { %v2964_v5 = vpop.permute.xlu1 %2963 }
0x1f4e   :  { %v2969_v57 = vmul.f32 %v2964_v5, %v2882_v62 }
0x1f50   :  { %v2971_v0 = vadd.f32 %v2970_v27, %v2969_v57 }
0x1f51   :  { %v2968_v9 = vpop.permute.xlu1 %2967 }
0x1f52   :  { %5866 = vtanh.f32 %v2971_v0 }
0x1f55   :  { %v2712_v7 = vpop.permute.xlu1 %2711 }
0x1f56   :  { %v2716_v63 = vmul.f32 %v2712_v7, %v2707_v45 }
0x1f58   :  { %v2717_v8 = vadd.f32 %v2716_v63, %v2715_v14 }
0x1f5a   :  { %2722 = vst.msk [vmem:[%s6873_s3 + $0x38] sm:$0xff] %vm35_vm0, %v2717_v8 }
0x1f5c   :  { %v5867_v17 = vpop.eup %5866 }
0x1f5d   :  { %v2973_v38 = vmul.f32 %v5867_v17, %v2968_v9 }
0x1f5f   :  { %2974 = vst.msk [vmem:[#allocation2] sm:$0xff] %vm35_vm0, %v2973_v38  ;;  %5255 = vmatmul.mubr.msk.f32.vlgmr.msra.gmra.mrb[32].mxu1 %vm35_vm0, %v2973_v38 }
0x1f60   :  { %5627 = vmatpush3.bf16.msra.mxu1 %v6534_v25  ;;  %5276 = vmatprep.mubr.msk.f32.mxu1 %vm5961_vm1, %v5962_v4 }
0x1f61   :  { %5628 = vmatprep.subr.bf16.mxu1 %v5960_v2 }
0x1f64   :  { %5630 = vmatpush3.bf16.msra.mxu1 %v6545_v58 }
0x1f65   :  { %5637 = vmatprep.subr.bf16.mxu1 %v5960_v2 }
0x2032   :  { %v3045_v10 = vpop.f32.mrb[32].mxu1 }
0x2033   :  { %v3049_v11 = vadd.f32 %v3045_v10, %v2840_v1  ;;  %v5256_v13 = vpop.f32.mrb[33].mxu1  ;;  %v2855_v1 = vadd.f32 %v6573_v52, %v6525_v20 }
0x2035   :  { %v3050_v26 = vmul.f32 0.5, %v3049_v11  ;;  %5868 = vtanh.f32 %v3049_v11 }
0x2037   :  { %5870 = vtanh.f32 %v3050_v26 }
0x2038   :  { %5872 = vtanh.f32 %v2717_v8 }
0x203f   :  { %v5869_v18 = vpop.eup %5868 }
0x2040   :  { %3057 = vrot.lane.b32.xlu1 %v5869_v18, %s5965_s11 }
0x2041   :  { %v5871_v51 = vpop.eup %5870 }
0x2042   :  { %v3052_v21 = vmul.f32 0.5, %v5871_v51  ;;  %v5873_v32 = vpop.eup %5872 }
0x2044   :  { %v3053_v22 = vadd.f32 0.5, %v3052_v21 }
0x2046   :  { %3059 = vrot.lane.b32.xlu1 %v3053_v22, %s5963_s9  ;;  %3055 = vrot.lane.b32.xlu0 %v3053_v22, %s5964_s10 }
0x204a   :  { %2713 = vrot.lane.b32.xlu0 %v2707_v45, %s5963_s9 }
0x20b2   :  { %v3058_v12 = vpop.permute.xlu1 %3057 }
0x20b3   :  { %v3062_v36 = vmul.f32 %v3058_v12, %v3053_v22 }
0x20b8   :  { %v3056_v23 = vpop.permute.xlu0 %3055  ;;  %v3060_v39 = vpop.permute.xlu1 %3059 }
0x20b9   :  { %v3061_v28 = vmul.f32 %v3056_v23, %v2971_v0 }
0x20bb   :  { %v3063_v31 = vadd.f32 %v3062_v36, %v3061_v28 }
0x20bc   :  { %v2714_v24 = vpop.permute.xlu0 %2713 }
0x20bd   :  { %5874 = vtanh.f32 %v3063_v31  ;;  %v2719_v33 = vmul.f32 %v5873_v32, %v2714_v24 }
0x20bf   :  { %2720 = vst.msk [vmem:[#allocation2 + $0x38] sm:$0xff] %vm35_vm0, %v2719_v33  ;;  %2721 = vst.msk [vmem:[%s6873_s3 + $0x10] sm:$0xff] %vm35_vm0, %v2719_v33  ;;  %v2860_v33 = vadd.f32 %v6523_v19, %v6573_v52  ;;  %v3622_v19 = vld [vmem:[%s6870_s1 + $0x128] sm:$0xff] }
0x20c6   :  { %v2739_v37 = vld [vmem:[#allocation2 + $0x38] sm:$0xff] }
0x20c7   :  { %v5875_v30 = vpop.eup %5874  ;;  %5233 = vmatmul.mubr.msk.f32.gmra.mrb[48].mxu0 %vm35_vm0, %v2739_v37 }
0x20c8   :  { %v3065_v42 = vmul.f32 %v5875_v30, %v3060_v39  ;;  %5265 = vmatprep.mubr.msk.f32.mxu0 %vm5961_vm1, %v5962_v4 }
0x20ca   :  { %3066 = vst.msk [vmem:[#allocation2 + $0x8] sm:$0xff] %vm35_vm0, %v3065_v42 }
0x20cb   :  { %5266 = vmatmul.mubr.msk.f32.vlgmr.msra.gmra.mrb[50].mxu0 %vm35_vm0, %v3065_v42 }
0x20cc   :  { %5633 = vmatpush3.bf16.msra.mxu0 %v6534_v25  ;;  %5287 = vmatprep.mubr.msk.f32.mxu0 %vm5961_vm1, %v5962_v4 }
0x20cd   :  { %5634 = vmatprep.subr.bf16.mxu0 %v5960_v2 }
0x20d0   :  { %5636 = vmatpush3.bf16.msra.mxu0 %v6545_v58 }
0x20d1   :  { %5643 = vmatprep.subr.bf16.mxu0 %v5960_v2 }
0x219a   :  { %v6618_v43 = vpop.f32.mrb[48].mxu0 }
0x219b   :  { %v6620_v34 = vpop.f32.mrb[49].mxu0 }
0x219e   :  { %v3137_v46 = vpop.f32.mrb[50].mxu0 }
0x219f   :  { %v3141_v41 = vadd.f32 %v3137_v46, %v2845_v44  ;;  %v5267_v47 = vpop.f32.mrb[51].mxu0 }
0x21a1   :  { %v3142_v49 = vmul.f32 0.5, %v3141_v41  ;;  %5876 = vtanh.f32 %v3141_v41 }
0x21a3   :  { %5878 = vtanh.f32 %v3142_v49 }
0x21ab   :  { %v5877_v35 = vpop.eup %5876 }
0x21ac   :  { %3149 = vrot.lane.b32.xlu1 %v5877_v35, %s5965_s11 }
0x21ad   :  { %v5879_v53 = vpop.eup %5878 }
0x21ae   :  { %v3144_v54 = vmul.f32 0.5, %v5879_v53 }
0x21b0   :  { %v3145_v3 = vadd.f32 0.5, %v3144_v54 }
0x21b2   :  { %3147 = vrot.lane.b32.xlu0 %v3145_v3, %s5964_s10 }
0x21b6   :  { %3151 = vrot.lane.b32.xlu0 %v3145_v3, %s5963_s9 }
0x221e   :  { %v3150_v29 = vpop.permute.xlu1 %3149 }
0x221f   :  { %v3154_v59 = vmul.f32 %v3150_v29, %v3145_v3  ;;  %v3623_v29 = vld [vmem:[%s6870_s1 + $0x130] sm:$0xff] }
0x2224   :  { %v3148_v55 = vpop.permute.xlu0 %3147 }
0x2225   :  { %v3153_v16 = vmul.f32 %v3148_v55, %v3063_v31  ;;  %v3624_v55 = vld [vmem:[%s6870_s1 + $0x138] sm:$0xff] }
0x2227   :  { %v3155_v50 = vadd.f32 %v3154_v59, %v3153_v16 }
0x2228   :  { %v3152_v45 = vpop.permute.xlu0 %3151 }
0x2229   :  { %5880 = vtanh.f32 %v3155_v50 }
0x2233   :  { %v5881_v56 = vpop.eup %5880 }
0x2234   :  { %v3157_v60 = vmul.f32 %v5881_v56, %v3152_v45  ;;  %v5659_v56 = vpack.c.bf16 %v3624_v55, %v3623_v29  ;;  %v3630_v45 = vld [vmem:[#allocation2] sm:$0xff]  ;;  %v3780_v55 = vld [vmem:[%s6872_s2 + $0x48] sm:$0xff] }
0x2236   :  { %3158 = vst.msk [vmem:[#allocation2 + $0x10] sm:$0xff] %vm35_vm0, %v3157_v60  ;;  %5277 = vmatmul.mubr.msk.f32.vlgmr.msra.gmra.mrb[34].mxu1 %vm35_vm0, %v3157_v60  ;;  %v3631_v60 = vld [vmem:[#allocation2 + $0x8] sm:$0xff] }
0x2237   :  { %5639 = vmatpush3.bf16.msra.mxu1 %v6534_v25  ;;  %5298 = vmatprep.mubr.msk.f32.mxu1 %vm5961_vm1, %v5962_v4 }
0x2238   :  { %5640 = vmatprep.subr.bf16.mxu1 %v5960_v2 }
0x223b   :  { %5642 = vmatpush3.bf16.msra.mxu1 %v6545_v58 }
0x223c   :  { %5649 = vmatprep.subr.bf16.mxu1 %v5960_v2 }
0x2309   :  { %v3229_v48 = vpop.f32.mrb[34].mxu1 }
0x230a   :  { %v3233_v40 = vadd.f32 %v3229_v48, %v2850_v61  ;;  %v5278_v62 = vpop.f32.mrb[35].mxu1  ;;  %v3632_v61 = vld [vmem:[#allocation2 + $0x10] sm:$0xff] }
0x230c   :  { %v3234_v5 = vmul.f32 0.5, %v3233_v40  ;;  %5882 = vtanh.f32 %v3233_v40 }
0x230e   :  { %5884 = vtanh.f32 %v3234_v5  ;;  %v2865_v5 = vadd.f32 %v6573_v52, %v6620_v34 }
0x2316   :  { %v5883_v27 = vpop.eup %5882 }
0x2317   :  { %3241 = vrot.lane.b32.xlu0 %v5883_v27, %s5965_s11 }
0x2318   :  { %v5885_v57 = vpop.eup %5884 }
0x2319   :  { %v3236_v0 = vmul.f32 0.5, %v5885_v57 }
0x231b   :  { %v3237_v9 = vadd.f32 0.5, %v3236_v0 }
0x231d   :  { %3239 = vrot.lane.b32.xlu1 %v3237_v9, %s5964_s10 }
0x2321   :  { %3243 = vrot.lane.b32.xlu1 %v3237_v9, %s5963_s9 }
0x2389   :  { %v3242_v6 = vpop.permute.xlu0 %3241 }
0x238a   :  { %v3246_v14 = vmul.f32 %v3242_v6, %v3237_v9 }
0x238f   :  { %v3240_v7 = vpop.permute.xlu1 %3239 }
0x2390   :  { %v3245_v15 = vmul.f32 %v3240_v7, %v3155_v50 }
0x2392   :  { %v3247_v63 = vadd.f32 %v3246_v14, %v3245_v15 }
0x2393   :  { %v3244_v17 = vpop.permute.xlu1 %3243 }
0x2394   :  { %5886 = vtanh.f32 %v3247_v63 }
0x239e   :  { %v5887_v8 = vpop.eup %5886 }
0x239f   :  { %v3249_v38 = vmul.f32 %v5887_v8, %v3244_v17 }
0x23a1   :  { %3250 = vst.msk [vmem:[#allocation2 + $0x18] sm:$0xff] %vm35_vm0, %v3249_v38  ;;  %5288 = vmatmul.mubr.msk.f32.vlgmr.msra.gmra.mrb[52].mxu0 %vm35_vm0, %v3249_v38 }
0x23a2   :  { %5645 = vmatpush3.bf16.msra.mxu0 %v6534_v25  ;;  %5309 = vmatprep.mubr.msk.f32.mxu0 %vm5961_vm1, %v5962_v4 }
0x23a3   :  { %5646 = vmatprep.subr.bf16.mxu0 %v5960_v2 }
0x23a6   :  { %5648 = vmatpush3.bf16.msra.mxu0 %v6545_v58 }
0x23a8   :  { %v3633_v48 = vld [vmem:[#allocation2 + $0x18] sm:$0xff] }
0x2474   :  { %v3321_v10 = vpop.f32.mrb[52].mxu0 }
0x2475   :  { %v3325_v11 = vadd.f32 %v3321_v10, %v2855_v1  ;;  %v5289_v13 = vpop.f32.mrb[53].mxu0  ;;  %v3625_v10 = vld [vmem:[%s6870_s1 + $0x140] sm:$0xff] }
0x2477   :  { %v3326_v26 = vmul.f32 0.5, %v3325_v11  ;;  %5888 = vtanh.f32 %v3325_v11  ;;  %v3626_v11 = vld [vmem:[%s6870_s1 + $0x148] sm:$0xff] }
0x2478   :  { %v6706_v13 = vpack.c.bf16 %v3626_v11, %v3625_v10 }
0x2479   :  { %5890 = vtanh.f32 %v3326_v26  ;;  %v3627_v26 = vld [vmem:[%s6870_s1 + $0x150] sm:$0xff] }
0x2481   :  { %v5889_v18 = vpop.eup %5888 }
0x2482   :  { %3333 = vrot.lane.b32.xlu1 %v5889_v18, %s5965_s11  ;;  %v3628_v18 = vld [vmem:[%s6870_s1 + $0x158] sm:$0xff] }
0x2483   :  { %v5891_v51 = vpop.eup %5890 }
0x2484   :  { %v3328_v21 = vmul.f32 0.5, %v5891_v51  ;;  %v6717_v51 = vpack.c.bf16 %v3628_v18, %v3627_v26 }
0x2486   :  { %v3329_v22 = vadd.f32 0.5, %v3328_v21 }
0x2488   :  { %3331 = vrot.lane.b32.xlu0 %v3329_v22, %s5964_s10 }
0x248c   :  { %3335 = vrot.lane.b32.xlu0 %v3329_v22, %s5963_s9 }
0x24f4   :  { %v3334_v12 = vpop.permute.xlu1 %3333 }
0x24f5   :  { %v3338_v36 = vmul.f32 %v3334_v12, %v3329_v22 }
0x24fa   :  { %v3332_v23 = vpop.permute.xlu0 %3331 }
0x24fb   :  { %v3337_v20 = vmul.f32 %v3332_v23, %v3247_v63 }
0x24fd   :  { %v3339_v28 = vadd.f32 %v3338_v36, %v3337_v20 }
0x24fe   :  { %v3336_v32 = vpop.permute.xlu0 %3335 }
0x24ff   :  { %5892 = vtanh.f32 %v3339_v28 }
0x2509   :  { %v5893_v31 = vpop.eup %5892 }
0x250a   :  { %v3341_v24 = vmul.f32 %v5893_v31, %v3336_v32  ;;  %v3779_v32 = vld [vmem:[%s6872_s2 + $0x20] sm:$0xff] }
0x250c   :  { %3342 = vst.msk [vmem:[#allocation2 + $0x20] sm:$0xff] %vm35_vm0, %v3341_v24  ;;  %5299 = vmatmul.mubr.msk.f32.vlgmr.msra.gmra.mrb[36].mxu1 %vm35_vm0, %v3341_v24 }
0x250d   :  { %5651 = vmatpush3.bf16.msra.mxu1 %v6534_v25  ;;  %5320 = vmatprep.mubr.msk.f32.mxu1 %vm5961_vm1, %v5962_v4 }
0x250e   :  { %5652 = vmatprep.subr.bf16.mxu1 %v5960_v2 }
0x2511   :  { %5654 = vmatpush3.bf16.msra.mxu1 %v6545_v58  ;;  %v3621_v58 = vld [vmem:[%s6870_s1 + $0x120] sm:$0xff] }
0x2512   :  { %5663 = vmatprep.subr.bf16.mxu1 %v5960_v2  ;;  %v5655_v47 = vpack.c.bf16 %v3622_v19, %v3621_v58 }
0x2513   :  { %v3634_v40 = vld [vmem:[#allocation2 + $0x20] sm:$0xff] }
0x2514   :  { %5656 = vmatprep.subr.bf16.mxu0 %v5655_v47 }
0x25df   :  { %v3413_v37 = vpop.f32.mrb[36].mxu1 }
0x25e0   :  { %v3417_v30 = vadd.f32 %v3413_v37, %v2860_v33  ;;  %v5300_v39 = vpop.f32.mrb[37].mxu1  ;;  %v2870_v33 = vadd.f32 %v6618_v43, %v6573_v52 }
0x25e2   :  { %v3418_v42 = vmul.f32 0.5, %v3417_v30  ;;  %5894 = vtanh.f32 %v3417_v30 }
0x25e4   :  { %5896 = vtanh.f32 %v3418_v42 }
0x25ec   :  { %v5895_v44 = vpop.eup %5894 }
0x25ed   :  { %3425 = vrot.lane.b32.xlu0 %v5895_v44, %s5965_s11  ;;  %v6745_v44 = vld [vmem:[%s6870_s1 + $0x160] ss:$0 sm:$0xff] }
0x25ee   :  { %v5897_v25 = vpop.eup %5896 }
0x25ef   :  { %v3420_v46 = vmul.f32 0.5, %v5897_v25 }
0x25f1   :  { %v3421_v41 = vadd.f32 0.5, %v3420_v46 }
0x25f3   :  { %3423 = vrot.lane.b32.xlu1 %v3421_v41, %s5964_s10 }
0x25f7   :  { %3427 = vrot.lane.b32.xlu1 %v3421_v41, %s5963_s9 }
0x265f   :  { %v3426_v49 = vpop.permute.xlu0 %3425 }
0x2660   :  { %v3430_v53 = vmul.f32 %v3426_v49, %v3421_v41 }
0x2665   :  { %v3424_v35 = vpop.permute.xlu1 %3423 }
0x2666   :  { %v3429_v54 = vmul.f32 %v3424_v35, %v3339_v28 }
0x2668   :  { %v3431_v3 = vadd.f32 %v3430_v53, %v3429_v54 }
0x2669   :  { %v3428_v16 = vpop.permute.xlu1 %3427 }
0x266a   :  { %5898 = vtanh.f32 %v3431_v3 }
0x2674   :  { %v5899_v59 = vpop.eup %5898 }
0x2675   :  { %v3433_v50 = vmul.f32 %v5899_v59, %v3428_v16 }
0x2677   :  { %3434 = vst.msk [vmem:[#allocation2 + $0x28] sm:$0xff] %vm35_vm0, %v3433_v50  ;;  %5310 = vmatmul.mubr.msk.f32.vlgmr.msra.gmra.mrb[54].mxu0 %vm35_vm0, %v3433_v50 }
0x2678   :  { %5658 = vmatpush3.bf16.msra.mxu0 %v5655_v47  ;;  %5331 = vmatprep.mubr.msk.f32.mxu0 %vm35_vm0, %v3630_v45 }
0x2679   :  { %5660 = vmatprep.subr.bf16.mxu0 %v5659_v56 }
0x267c   :  { %5662 = vmatpush3.bf16.msra.mxu0 %v5659_v56 }
0x267d   :  { %5675 = vmatprep.subr.bf16.mxu0 %v5960_v2 }
0x267e   :  { %v3635_v62 = vld [vmem:[#allocation2 + $0x28] sm:$0xff] }
0x267f   :  { %5332 = vmatmul.mubr.msk.f32.vlgmr.msra.gmra.mrb[56].mxu0 %vm35_vm0, %v3631_v60 }
0x2680   :  { %5334 = vmatprep.mubr.msk.f32.mxu0 %vm35_vm0, %v3632_v61  ;;  %5677 = vmatpush3.bf16.msra.mxu0 %v6706_v13 }
0x2681   :  { %5678 = vmatprep.subr.bf16.mxu0 %v5960_v2 }
0x2683   :  { %5335 = vmatmul.mubr.msk.f32.gmra.mrb[58].mxu0 %vm35_vm0, %v3633_v48 }
0x2684   :  { %5337 = vmatprep.mubr.msk.f32.mxu0 %vm35_vm0, %v3634_v40  ;;  %5680 = vmatpush3.bf16.msra.mxu0 %v6717_v51 }
0x2685   :  { %5687 = vmatprep.subr.bf16.mxu0 %v5960_v2 }
0x2687   :  { %5338 = vmatmul.mubr.msk.f32.gmra.mrb[60].mxu0 %vm35_vm0, %v3635_v62 }
0x274a   :  { %v3505_v27 = vpop.f32.mrb[54].mxu0 }
0x274b   :  { %v3509_v57 = vadd.f32 %v3505_v27, %v2865_v5  ;;  %v5311_v0 = vpop.f32.mrb[55].mxu0 }
0x274d   :  { %v3510_v9 = vmul.f32 0.5, %v3509_v57  ;;  %5900 = vtanh.f32 %v3509_v57 }
0x274f   :  { %5902 = vtanh.f32 %v3510_v9 }
0x2752   :  { %v6688_v6 = vpop.f32.mrb[56].mxu0 }
0x2753   :  { %v3732_v7 = vpop.f32.mrb[57].mxu0  ;;  %v3738_v57 = vadd.f32 %v6688_v6, %v6745_v44 }
0x2754   :  { %v3733_v25 = vadd.f32 %v6745_v44, %v3732_v7 }
0x2756   :  { %v6690_v14 = vpop.f32.mrb[58].mxu0 }
0x2757   :  { %v5901_v15 = vpop.eup %5900  ;;  %v6692_v63 = vpop.f32.mrb[59].mxu0 }
0x2758   :  { %3517 = vrot.lane.b32.xlu1 %v5901_v15, %s5965_s11 }
0x2759   :  { %v5903_v8 = vpop.eup %5902 }
0x275a   :  { %v6695_v17 = vpop.f32.mrb[60].mxu0  ;;  %v3512_v34 = vmul.f32 0.5, %v5903_v8 }
0x275b   :  { %v6697_v38 = vpop.f32.mrb[61].mxu0 }
0x275c   :  { %v3513_v1 = vadd.f32 0.5, %v3512_v34 }
0x275e   :  { %3515 = vrot.lane.b32.xlu0 %v3513_v1, %s5964_s10 }
0x2762   :  { %3519 = vrot.lane.b32.xlu0 %v3513_v1, %s5963_s9 }
0x27ca   :  { %v3518_v21 = vpop.permute.xlu1 %3517 }
0x27cb   :  { %v3522_v12 = vmul.f32 %v3518_v21, %v3513_v1 }
0x27d0   :  { %v3516_v22 = vpop.permute.xlu0 %3515 }
0x27d1   :  { %v3521_v23 = vmul.f32 %v3516_v22, %v3431_v3 }
0x27d3   :  { %v3523_v36 = vadd.f32 %v3522_v12, %v3521_v23 }
0x27d4   :  { %v3520_v28 = vpop.permute.xlu0 %3519 }
0x27d5   :  { %5904 = vtanh.f32 %v3523_v36 }
0x27df   :  { %v5905_v20 = vpop.eup %5904 }
0x27e0   :  { %v3525_v31 = vmul.f32 %v5905_v20, %v3520_v28 }
0x27e2   :  { %3526 = vst.msk [vmem:[#allocation2 + $0x30] sm:$0xff] %vm35_vm0, %v3525_v31  ;;  %5321 = vmatmul.mubr.msk.f32.vlgmr.msra.gmra.mrb[38].mxu1 %vm35_vm0, %v3525_v31 }
0x27e3   :  { %5665 = vmatpush3.bf16.msra.mxu1 %v6706_v13  ;;  %5351 = vmatprep.mubr.msk.f32.mxu1 %vm5961_vm1, %v5962_v4 }
0x27e4   :  { %5666 = vmatprep.subr.bf16.mxu1 %v5960_v2 }
0x27e7   :  { %5668 = vmatpush3.bf16.msra.mxu1 %v6717_v51 }
0x27e8   :  { %5669 = vmatprep.subr.bf16.mxu1 %v5960_v2 }
0x27e9   :  { %v3636_v24 = vld [vmem:[#allocation2 + $0x30] sm:$0xff] }
0x27ea   :  { %5352 = vmatmul.mubr.msk.f32.vlgmr.msra.gmra.mrb[40].mxu1 %vm35_vm0, %v3779_v32  ;;  %5340 = vmatprep.mubr.msk.f32.mxu0 %vm35_vm0, %v3636_v24 }
0x27eb   :  { %5671 = vmatpush3.bf16.msra.mxu1 %v6706_v13  ;;  %5362 = vmatprep.mubr.msk.f32.mxu1 %vm5961_vm1, %v5962_v4 }
0x27ec   :  { %5672 = vmatprep.subr.bf16.mxu1 %v5960_v2 }
0x27ef   :  { %5674 = vmatpush3.bf16.msra.mxu1 %v6717_v51 }
0x27f0   :  { %5681 = vmatprep.subr.bf16.mxu1 %v5960_v2 }
0x28b5   :  { %v3597_v37 = vpop.f32.mrb[38].mxu1 }
0x28b6   :  { %v3601_v30 = vadd.f32 %v3597_v37, %v2870_v33  ;;  %v5322_v39 = vpop.f32.mrb[39].mxu1  ;;  %v3743_v33 = vadd.f32 %v6745_v44, %v6692_v63 }
0x28b8   :  { %v3602_v42 = vmul.f32 0.5, %v3601_v30 }
0x28ba   :  { %5906 = vtanh.f32 %v3602_v42 }
0x28bd   :  { %v3851_v46 = vpop.f32.mrb[40].mxu1 }
0x28be   :  { %v3855_v41 = vadd.f32 %v3851_v46, %v3733_v25  ;;  %v5353_v58 = vpop.f32.mrb[41].mxu1 }
0x28c0   :  { %v3856_v19 = vmul.f32 0.5, %v3855_v41  ;;  %5908 = vtanh.f32 %v3855_v41 }
0x28c2   :  { %5910 = vtanh.f32 %v3856_v19 }
0x28c3   :  { %5912 = vtanh.f32 %v3601_v30 }
0x28c4   :  { %v5907_v47 = vpop.eup %5906 }
0x28c5   :  { %v3604_v52 = vmul.f32 0.5, %v5907_v47 }
0x28c7   :  { %v3605_v35 = vadd.f32 0.5, %v3604_v52 }
0x28ca   :  { %v5909_v43 = vpop.eup %5908 }
0x28cb   :  { %3863 = vrot.lane.b32.xlu0 %v5909_v43, %s5965_s11 }
0x28cc   :  { %v5911_v49 = vpop.eup %5910 }
0x28cd   :  { %v3858_v53 = vmul.f32 0.5, %v5911_v49  ;;  %v5913_v3 = vpop.eup %5912 }
0x28cf   :  { %3607 = vrot.lane.b32.xlu0 %v3605_v35, %s5964_s10  ;;  %v3859_v54 = vadd.f32 0.5, %v3858_v53 }
0x28d1   :  { %3861 = vrot.lane.b32.xlu1 %v3859_v54, %s5964_s10 }
0x28d5   :  { %3865 = vrot.lane.b32.xlu1 %v3859_v54, %s5963_s9 }
0x28d9   :  { %3609 = vrot.lane.b32.xlu1 %v5913_v3, %s5965_s11 }
0x293d   :  { %v3864_v29 = vpop.permute.xlu0 %3863 }
0x293e   :  { %v3868_v16 = vmul.f32 %v3864_v29, %v3859_v54  ;;  %v3748_v54 = vadd.f32 %v6690_v14, %v6745_v44 }
0x2941   :  { %v3608_v60 = vpop.permute.xlu0 %3607 }
0x2942   :  { %v3613_v48 = vmul.f32 %v3608_v60, %v3523_v36 }
0x2943   :  { %v3862_v59 = vpop.permute.xlu1 %3861 }
0x2944   :  { %v3867_v50 = vmul.f32 %v3862_v59, %v3780_v55 }
0x2946   :  { %v3869_v56 = vadd.f32 %v3868_v16, %v3867_v50 }
0x2947   :  { %v3866_v45 = vpop.permute.xlu1 %3865 }
0x2948   :  { %5914 = vtanh.f32 %v3869_v56 }
0x294b   :  { %v3610_v61 = vpop.permute.xlu1 %3609 }
0x294c   :  { %v3614_v40 = vmul.f32 %v3610_v61, %v3605_v35 }
0x294e   :  { %v3615_v62 = vadd.f32 %v3614_v40, %v3613_v48 }
0x2950   :  { %3620 = vst.msk [vmem:[%s6873_s3 + $0x40] sm:$0xff] %vm35_vm0, %v3615_v62 }
0x2952   :  { %v5915_v5 = vpop.eup %5914 }
0x2953   :  { %v3871_v27 = vmul.f32 %v5915_v5, %v3866_v45 }
0x2955   :  { %3872 = vst.msk [vmem:[#allocation2] sm:$0xff] %vm35_vm0, %v3871_v27  ;;  %5363 = vmatmul.mubr.msk.f32.vlgmr.msra.gmra.mrb[42].mxu1 %vm35_vm0, %v3871_v27 }
0x2956   :  { %5683 = vmatpush3.bf16.msra.mxu1 %v6706_v13  ;;  %5384 = vmatprep.mubr.msk.f32.mxu1 %vm5961_vm1, %v5962_v4 }
0x2957   :  { %5684 = vmatprep.subr.bf16.mxu1 %v5960_v2 }
0x295a   :  { %5686 = vmatpush3.bf16.msra.mxu1 %v6717_v51 }
0x295b   :  { %5693 = vmatprep.subr.bf16.mxu1 %v5960_v2 }
0x2a28   :  { %v3943_v0 = vpop.f32.mrb[42].mxu1 }
0x2a29   :  { %v3947_v9 = vadd.f32 %v3943_v0, %v3738_v57  ;;  %v5364_v7 = vpop.f32.mrb[43].mxu1  ;;  %v3753_v57 = vadd.f32 %v6745_v44, %v6697_v38 }
0x2a2b   :  { %v3948_v15 = vmul.f32 0.5, %v3947_v9  ;;  %5916 = vtanh.f32 %v3947_v9 }
0x2a2d   :  { %5918 = vtanh.f32 %v3948_v15 }
0x2a2e   :  { %5920 = vtanh.f32 %v3615_v62 }
0x2a35   :  { %v5917_v8 = vpop.eup %5916 }
0x2a36   :  { %3955 = vrot.lane.b32.xlu1 %v5917_v8, %s5965_s11 }
0x2a37   :  { %v5919_v34 = vpop.eup %5918 }
0x2a38   :  { %v3950_v1 = vmul.f32 0.5, %v5919_v34  ;;  %v5921_v22 = vpop.eup %5920 }
0x2a3a   :  { %v3951_v10 = vadd.f32 0.5, %v3950_v1 }
0x2a3c   :  { %3957 = vrot.lane.b32.xlu1 %v3951_v10, %s5963_s9  ;;  %3953 = vrot.lane.b32.xlu0 %v3951_v10, %s5964_s10 }
0x2a40   :  { %3611 = vrot.lane.b32.xlu0 %v3605_v35, %s5963_s9 }
0x2aa8   :  { %v3956_v6 = vpop.permute.xlu1 %3955 }
0x2aa9   :  { %v3960_v26 = vmul.f32 %v3956_v6, %v3951_v10 }
0x2aae   :  { %v3954_v11 = vpop.permute.xlu0 %3953  ;;  %v3958_v28 = vpop.permute.xlu1 %3957 }
0x2aaf   :  { %v3959_v18 = vmul.f32 %v3954_v11, %v3869_v56 }
0x2ab1   :  { %v3961_v21 = vadd.f32 %v3960_v26, %v3959_v18 }
0x2ab2   :  { %v3612_v12 = vpop.permute.xlu0 %3611 }
0x2ab3   :  { %5922 = vtanh.f32 %v3961_v21  ;;  %v3617_v23 = vmul.f32 %v5921_v22, %v3612_v12 }
0x2ab5   :  { %3618 = vst.msk [vmem:[#allocation2 + $0x38] sm:$0xff] %vm35_vm0, %v3617_v23  ;;  %3619 = vst.msk [vmem:[%s6873_s3 + $0x18] sm:$0xff] %vm35_vm0, %v3617_v23  ;;  %v3758_v23 = vadd.f32 %v6695_v17, %v6745_v44 }
0x2abc   :  { %v3637_v36 = vld [vmem:[#allocation2 + $0x38] sm:$0xff] }
0x2abd   :  { %v5923_v20 = vpop.eup %5922  ;;  %5341 = vmatmul.mubr.msk.f32.gmra.mrb[62].mxu0 %vm35_vm0, %v3637_v36 }
0x2abe   :  { %v3963_v31 = vmul.f32 %v5923_v20, %v3958_v28  ;;  %5373 = vmatprep.mubr.msk.f32.mxu0 %vm5961_vm1, %v5962_v4 }
0x2ac0   :  { %3964 = vst.msk [vmem:[#allocation2 + $0x8] sm:$0xff] %vm35_vm0, %v3963_v31 }
0x2ac1   :  { %5374 = vmatmul.mubr.msk.f32.vlgmr.msra.gmra.mrb[64].mxu0 %vm35_vm0, %v3963_v31 }
0x2ac2   :  { %5689 = vmatpush3.bf16.msra.mxu0 %v6706_v13  ;;  %5395 = vmatprep.mubr.msk.f32.mxu0 %vm5961_vm1, %v5962_v4 }
0x2ac3   :  { %5690 = vmatprep.subr.bf16.mxu0 %v5960_v2 }
0x2ac6   :  { %5692 = vmatpush3.bf16.msra.mxu0 %v6717_v51 }
0x2ac7   :  { %5699 = vmatprep.subr.bf16.mxu0 %v5960_v2 }
0x2b90   :  { %v6790_v32 = vpop.f32.mrb[62].mxu0 }
0x2b91   :  { %v6792_v24 = vpop.f32.mrb[63].mxu0 }
0x2b94   :  { %v4035_v37 = vpop.f32.mrb[64].mxu0 }
0x2b95   :  { %v4039_v30 = vadd.f32 %v4035_v37, %v3743_v33  ;;  %v5375_v39 = vpop.f32.mrb[65].mxu0 }
0x2b97   :  { %v4040_v42 = vmul.f32 0.5, %v4039_v30  ;;  %5924 = vtanh.f32 %v4039_v30 }
0x2b99   :  { %5926 = vtanh.f32 %v4040_v42 }
0x2ba1   :  { %v5925_v25 = vpop.eup %5924 }
0x2ba2   :  { %4047 = vrot.lane.b32.xlu1 %v5925_v25, %s5965_s11 }
0x2ba3   :  { %v5927_v46 = vpop.eup %5926 }
0x2ba4   :  { %v4042_v41 = vmul.f32 0.5, %v5927_v46 }
0x2ba6   :  { %v4043_v58 = vadd.f32 0.5, %v4042_v41  ;;  %v3763_v41 = vadd.f32 %v6745_v44, %v6792_v24 }
0x2ba8   :  { %4045 = vrot.lane.b32.xlu0 %v4043_v58, %s5964_s10 }
0x2bac   :  { %4049 = vrot.lane.b32.xlu0 %v4043_v58, %s5963_s9 }
0x2c14   :  { %v4048_v19 = vpop.permute.xlu1 %4047 }
0x2c15   :  { %v4052_v52 = vmul.f32 %v4048_v19, %v4043_v58 }
0x2c1a   :  { %v4046_v47 = vpop.permute.xlu0 %4045 }
0x2c1b   :  { %v4051_v63 = vmul.f32 %v4046_v47, %v3961_v21 }
0x2c1d   :  { %v4053_v43 = vadd.f32 %v4052_v52, %v4051_v63 }
0x2c1e   :  { %v4050_v35 = vpop.permute.xlu0 %4049 }
0x2c1f   :  { %5928 = vtanh.f32 %v4053_v43 }
0x2c29   :  { %v5929_v49 = vpop.eup %5928 }
0x2c2a   :  { %v4055_v53 = vmul.f32 %v5929_v49, %v4050_v35 }
0x2c2c   :  { %4056 = vst.msk [vmem:[#allocation2 + $0x10] sm:$0xff] %vm35_vm0, %v4055_v53  ;;  %5385 = vmatmul.mubr.msk.f32.vlgmr.msra.gmra.mrb[44].mxu1 %vm35_vm0, %v4055_v53 }
0x2c2d   :  { %5695 = vmatpush3.bf16.msra.mxu1 %v6706_v13  ;;  %5406 = vmatprep.mubr.msk.f32.mxu1 %vm5961_vm1, %v5962_v4 }
0x2c2e   :  { %5696 = vmatprep.subr.bf16.mxu1 %v5960_v2 }
0x2c31   :  { %5698 = vmatpush3.bf16.msra.mxu1 %v6717_v51 }
0x2c32   :  { %5705 = vmatprep.subr.bf16.mxu1 %v5960_v2 }
0x2cff   :  { %v4127_v3 = vpop.f32.mrb[44].mxu1 }
0x2d00   :  { %v4131_v29 = vadd.f32 %v4127_v3, %v3748_v54  ;;  %v5386_v55 = vpop.f32.mrb[45].mxu1 }
0x2d02   :  { %v4132_v59 = vmul.f32 0.5, %v4131_v29  ;;  %5930 = vtanh.f32 %v4131_v29 }
0x2d04   :  { %5932 = vtanh.f32 %v4132_v59 }
0x2d0c   :  { %v5931_v16 = vpop.eup %5930 }
0x2d0d   :  { %4139 = vrot.lane.b32.xlu0 %v5931_v16, %s5965_s11 }
0x2d0e   :  { %v5933_v50 = vpop.eup %5932 }
0x2d0f   :  { %v4134_v56 = vmul.f32 0.5, %v5933_v50  ;;  %v3768_v50 = vadd.f32 %v6790_v32, %v6745_v44 }
0x2d11   :  { %v4135_v45 = vadd.f32 0.5, %v4134_v56 }
0x2d13   :  { %4137 = vrot.lane.b32.xlu1 %v4135_v45, %s5964_s10 }
0x2d17   :  { %4141 = vrot.lane.b32.xlu1 %v4135_v45, %s5963_s9 }
0x2d7f   :  { %v4140_v60 = vpop.permute.xlu0 %4139 }
0x2d80   :  { %v4144_v48 = vmul.f32 %v4140_v60, %v4135_v45 }
0x2d85   :  { %v4138_v61 = vpop.permute.xlu1 %4137 }
0x2d86   :  { %v4143_v14 = vmul.f32 %v4138_v61, %v4053_v43 }
0x2d88   :  { %v4145_v40 = vadd.f32 %v4144_v48, %v4143_v14 }
0x2d89   :  { %v4142_v5 = vpop.permute.xlu1 %4141 }
0x2d8a   :  { %5934 = vtanh.f32 %v4145_v40 }
0x2d94   :  { %v5935_v62 = vpop.eup %5934 }
0x2d95   :  { %v4147_v27 = vmul.f32 %v5935_v62, %v4142_v5 }
0x2d97   :  { %4148 = vst.msk [vmem:[#allocation2 + $0x18] sm:$0xff] %vm35_vm0, %v4147_v27  ;;  %5396 = vmatmul.mubr.msk.f32.vlgmr.msra.gmra.mrb[66].mxu0 %vm35_vm0, %v4147_v27 }
0x2d98   :  { %5701 = vmatpush3.bf16.msra.mxu0 %v6706_v13  ;;  %5417 = vmatprep.mubr.msk.f32.mxu0 %vm5961_vm1, %v5962_v4 }
0x2d99   :  { %5702 = vmatprep.subr.bf16.mxu0 %v5960_v2 }
0x2d9c   :  { %5704 = vmatpush3.bf16.msra.mxu0 %v6717_v51 }
0x2e6a   :  { %v4219_v0 = vpop.f32.mrb[66].mxu0 }
0x2e6b   :  { %v4223_v9 = vadd.f32 %v4219_v0, %v3753_v57  ;;  %v5397_v7 = vpop.f32.mrb[67].mxu0 }
0x2e6c   :  { %v4629_v7 = vld [vmem:[%s6870_s1 + $0x168] ss:$0 sm:$0xff] }
0x2e6d   :  { %v4224_v15 = vmul.f32 0.5, %v4223_v9  ;;  %5936 = vtanh.f32 %v4223_v9 }
0x2e6f   :  { %5938 = vtanh.f32 %v4224_v15 }
0x2e77   :  { %v5937_v8 = vpop.eup %5936 }
0x2e78   :  { %4231 = vrot.lane.b32.xlu1 %v5937_v8, %s5965_s11 }
0x2e79   :  { %v5939_v34 = vpop.eup %5938 }
0x2e7a   :  { %v4226_v1 = vmul.f32 0.5, %v5939_v34 }
0x2e7c   :  { %v4227_v10 = vadd.f32 0.5, %v4226_v1  ;;  %v5966_v1 = vmov 0  }
0x2e7d   :  { %5718 = vset.pattern.permute.xlu1 %v5966_v1  ;;  %5719 = vset.pattern.permute.xlu0 %v5966_v1 }
0x2e7e   :  { %4229 = vrot.lane.b32.xlu0 %v4227_v10, %s5964_s10 }
0x2e82   :  { %4233 = vrot.lane.b32.xlu0 %v4227_v10, %s5963_s9 }
0x2eea   :  { %v4232_v6 = vpop.permute.xlu1 %4231 }
0x2eeb   :  { %v4236_v26 = vmul.f32 %v4232_v6, %v4227_v10  ;;  %v4630_v10 = vld [vmem:[%s6870_s1 + $0x169] ss:$0 sm:$0xff] }
0x2ef0   :  { %v4230_v11 = vpop.permute.xlu0 %4229 }
0x2ef1   :  { %v4235_v38 = vmul.f32 %v4230_v11, %v4145_v40 }
0x2ef3   :  { %v4237_v18 = vadd.f32 %v4236_v26, %v4235_v38 }
0x2ef4   :  { %v4234_v22 = vpop.permute.xlu0 %4233 }
0x2ef5   :  { %5940 = vtanh.f32 %v4237_v18 }
0x2eff   :  { %v5941_v21 = vpop.eup %5940 }
0x2f00   :  { %v4239_v12 = vmul.f32 %v5941_v21, %v4234_v22 }
0x2f02   :  { %4240 = vst.msk [vmem:[#allocation2 + $0x20] sm:$0xff] %vm35_vm0, %v4239_v12  ;;  %5407 = vmatmul.mubr.msk.f32.vlgmr.msra.gmra.mrb[46].mxu1 %vm35_vm0, %v4239_v12 }
0x2f03   :  { %5707 = vmatpush3.bf16.msra.mxu1 %v6706_v13  ;;  %5428 = vmatprep.mubr.msk.f32.mxu1 %vm5961_vm1, %v5962_v4 }
0x2f04   :  { %5708 = vmatprep.subr.bf16.mxu1 %v5960_v2 }
0x2f07   :  { %5710 = vmatpush3.bf16.msra.mxu1 %v6717_v51 }
0x2fd5   :  { %v4311_v36 = vpop.f32.mrb[46].mxu1 }
0x2fd6   :  { %v4315_v20 = vadd.f32 %v4311_v36, %v3758_v23  ;;  %v5408_v28 = vpop.f32.mrb[47].mxu1 }
0x2fd8   :  { %v4316_v31 = vmul.f32 0.5, %v4315_v20  ;;  %5942 = vtanh.f32 %v4315_v20 }
0x2fda   :  { %5944 = vtanh.f32 %v4316_v31 }
0x2fe2   :  { %v5943_v33 = vpop.eup %5942 }
0x2fe3   :  { %4323 = vrot.lane.b32.xlu0 %v5943_v33, %s5965_s11 }
0x2fe4   :  { %v5945_v13 = vpop.eup %5944 }
0x2fe5   :  { %v4318_v37 = vmul.f32 0.5, %v5945_v13 }
0x2fe7   :  { %v4319_v30 = vadd.f32 0.5, %v4318_v37 }
0x2fe9   :  { %4321 = vrot.lane.b32.xlu1 %v4319_v30, %s5964_s10 }
0x2fed   :  { %4325 = vrot.lane.b32.xlu1 %v4319_v30, %s5963_s9 }
0x3055   :  { %v4324_v2 = vpop.permute.xlu0 %4323 }
0x3056   :  { %v4328_v51 = vmul.f32 %v4324_v2, %v4319_v30 }
0x305b   :  { %v4322_v4 = vpop.permute.xlu1 %4321 }
0x305c   :  { %v4327_v17 = vmul.f32 %v4322_v4, %v4237_v18 }
0x305e   :  { %v4329_v39 = vadd.f32 %v4328_v51, %v4327_v17 }
0x305f   :  { %v4326_v25 = vpop.permute.xlu1 %4325 }
0x3060   :  { %5946 = vtanh.f32 %v4329_v39 }
0x306a   :  { %v5947_v42 = vpop.eup %5946 }
0x306b   :  { %v4331_v46 = vmul.f32 %v5947_v42, %v4326_v25 }
0x306d   :  { %4332 = vst.msk [vmem:[#allocation2 + $0x28] sm:$0xff] %vm35_vm0, %v4331_v46  ;;  %5418 = vmatmul.mubr.msk.f32.vlgmr.msra.gmra.mrb[68].mxu0 %vm35_vm0, %v4331_v46 }
0x3140   :  { %v4403_v58 = vpop.f32.mrb[68].mxu0 }
0x3141   :  { %v4407_v19 = vadd.f32 %v4403_v58, %v3763_v41  ;;  %v5419_v47 = vpop.f32.mrb[69].mxu0 }
0x3143   :  { %v4408_v52 = vmul.f32 0.5, %v4407_v19  ;;  %5948 = vtanh.f32 %v4407_v19 }
0x3145   :  { %5950 = vtanh.f32 %v4408_v52 }
0x314d   :  { %v5949_v63 = vpop.eup %5948 }
0x314e   :  { %4415 = vrot.lane.b32.xlu1 %v5949_v63, %s5965_s11 }
0x314f   :  { %v5951_v43 = vpop.eup %5950 }
0x3150   :  { %v4410_v49 = vmul.f32 0.5, %v5951_v43 }
0x3152   :  { %v4411_v35 = vadd.f32 0.5, %v4410_v49 }
0x3154   :  { %4413 = vrot.lane.b32.xlu0 %v4411_v35, %s5964_s10 }
0x3158   :  { %4417 = vrot.lane.b32.xlu0 %v4411_v35, %s5963_s9 }
0x31c0   :  { %v4416_v53 = vpop.permute.xlu1 %4415 }
0x31c1   :  { %v4420_v3 = vmul.f32 %v4416_v53, %v4411_v35 }
0x31c6   :  { %v4414_v54 = vpop.permute.xlu0 %4413 }
0x31c7   :  { %v4419_v24 = vmul.f32 %v4414_v54, %v4329_v39 }
0x31c9   :  { %v4421_v29 = vadd.f32 %v4420_v3, %v4419_v24 }
0x31ca   :  { %v4418_v59 = vpop.permute.xlu0 %4417 }
0x31cb   :  { %5952 = vtanh.f32 %v4421_v29 }
0x31d5   :  { %v5953_v55 = vpop.eup %5952 }
0x31d6   :  { %v4423_v16 = vmul.f32 %v5953_v55, %v4418_v59 }
0x31d8   :  { %4424 = vst.msk [vmem:[#allocation2 + $0x30] sm:$0xff] %vm35_vm0, %v4423_v16  ;;  %5429 = vmatmul.mubr.msk.f32.vlgmr.msra.gmra.mrb[48].mxu1 %vm35_vm0, %v4423_v16 }
0x32ab   :  { %v4495_v56 = vpop.f32.mrb[48].mxu1 }
0x32ac   :  { %v4499_v45 = vadd.f32 %v4495_v56, %v3768_v50  ;;  %v5430_v60 = vpop.f32.mrb[49].mxu1 }
0x32ae   :  { %v4500_v61 = vmul.f32 0.5, %v4499_v45  ;;  %5954 = vtanh.f32 %v4499_v45 }
0x32b0   :  { %5956 = vtanh.f32 %v4500_v61 }
0x32b8   :  { %v5955_v48 = vpop.eup %5954 }
0x32b9   :  { %4507 = vrot.lane.b32.xlu0 %v5955_v48, %s5965_s11 }
0x32ba   :  { %v5957_v14 = vpop.eup %5956 }
0x32bb   :  { %v4502_v40 = vmul.f32 0.5, %v5957_v14 }
0x32bd   :  { %v4503_v62 = vadd.f32 0.5, %v4502_v40 }
0x32bf   :  { %4505 = vrot.lane.b32.xlu1 %v4503_v62, %s5964_s10 }
0x32c3   :  { %4509 = vrot.lane.b32.xlu1 %v4503_v62, %s5963_s9 }
0x332b   :  { %v4508_v5 = vpop.permute.xlu0 %4507 }
0x332c   :  { %v4512_v57 = vmul.f32 %v4508_v5, %v4503_v62 }
0x3331   :  { %v4506_v27 = vpop.permute.xlu1 %4505 }
0x3332   :  { %v4511_v44 = vmul.f32 %v4506_v27, %v4421_v29 }
0x3334   :  { %v4513_v32 = vadd.f32 %v4512_v57, %v4511_v44 }
0x3335   :  { %v4510_v9 = vpop.permute.xlu1 %4509 }
0x3336   :  { %5958 = vtanh.f32 %v4513_v32  ;;  %4518 = vst.msk [vmem:[%s6873_s3 + $0x48] sm:$0xff] %vm35_vm0, %v4513_v32 }
0x3340   :  { %v5959_v0 = vpop.eup %5958 }
0x3341   :  { %v4515_v15 = vmul.f32 %v5959_v0, %v4510_v9 }
0x3343   :  { %4516 = vst.msk [vmem:[#allocation2 + $0x38] sm:$0xff] %vm35_vm0, %v4515_v15  ;;  %4517 = vst.msk [vmem:[%s6873_s3 + $0x20] sm:$0xff] %vm35_vm0, %v4515_v15  ;;  %v4525_v8 = vmul.f32 %v4629_v7, %v4515_v15 }
0x3345   :  { %v4526_v34 = vsel %vm35_vm0, %v4525_v8, 0.0 }
0x3346   :  { %4527 = vadd.xlane.f32.xlu0 %v4526_v34 }
0x33d3   :  { %v4528_v6 = vpop.xlane.xlu0 %4527 }
0x33d4   :  { %v4533_v11 = vadd.f32 %v4630_v10, %v4528_v6 }
0x33d6   :  { %4536 = vperm.xlu1 %5718, %v4533_v11  }
0x3455   :  { %v4537_v26 = vpop.permute.xlu1 %4536 }
0x3456   :  { %4539 = vst.msk [vmem:[%s6873_s3 + $0x50] sm:$0xff] %vm35_vm0, %v4537_v26 }

</bundles_post_ra>
